<compile_context>
chip_gen: v6e
topology: v6e:2x2x1
jax: 0.10.0
libtpu: 0.0.40
codegen_flags: <defaults>
</compile_context>

<pallas_src>
import jax
import jax.numpy as jnp
from jax.experimental import pallas as pl
from jax.experimental.pallas import tpu as pltpu


# ---------------------------------------------------------------------------
# Fused kernel: relu -> packed fc1 -> relu -> split fc2 -> relu ->
#               softmax(classes) and (softmax_T + Z_Loc + G_Loc)/3.
# Everything is channel-major: tiles are (channels, T), outputs are (N, K, T).
# ---------------------------------------------------------------------------
def _wsgn_kernel(x_ref, w1_ref, b1_ref, w2c_ref, b2c_ref, w2l_ref, b2l_ref,
                 mu_ref, inv_sig2_ref, cls_ref, loc_ref):
    n_batch = x_ref.shape[0]
    hid = w2c_ref.shape[1]

    # Hoist constant loads out of the (unrolled) batch loop.
    w1 = w1_ref[...]              # (2H, C)  bf16
    b1 = b1_ref[...]              # (2H, 1)  f32
    w2c = w2c_ref[...]            # (K, H)   bf16
    b2c = b2c_ref[...]            # (K, 1)   f32
    w2l = w2l_ref[...]            # (K, H)   bf16
    b2l = b2l_ref[...]            # (K, 1)   f32
    mu = mu_ref[...]              # (K, 1)   f32
    inv_sig2 = inv_sig2_ref[...]  # (K, 1)   f32

    for n in range(n_batch):      # N is tiny (2); static unroll on one TC.
        # dropout(relu(x)) == relu(x) at inference; cast feeds the MXU.
        x = jnp.maximum(x_ref[n], 0.0).astype(jnp.bfloat16)            # (C, T)

        # Layer 1, both branches packed: (2H, C) @ (C, T) -> (2H, T), f32 acc.
        h = jnp.dot(w1, x, preferred_element_type=jnp.float32) + b1
        h = jnp.maximum(h, 0.0).astype(jnp.bfloat16)                   # (2H, T)

        # Layer 2, split per branch (no all-zero tile pushes on v5e's MXU).
        c = jnp.dot(w2c, h[:hid], preferred_element_type=jnp.float32) + b2c
        c = jnp.maximum(c, 0.0)                                        # (K, T)
        l = jnp.dot(w2l, h[hid:], preferred_element_type=jnp.float32) + b2l
        l = jnp.maximum(l, 0.0)                                        # (K, T)

        # s_Cls: softmax over classes (sublane axis 0).  The approx EUP
        # reciprocal means rows sum to 1 only to ~1e-3; switch to exact
        # division if calibrated probabilities are required downstream.
        ce = jnp.exp(c - jnp.max(c, axis=0, keepdims=True))
        cls_ref[n] = ce * pl.reciprocal(jnp.sum(ce, axis=0, keepdims=True),
                                        approx=True)

        # s_Loc: softmax over T (lane axis 1).
        le = jnp.exp(l - jnp.max(l, axis=1, keepdims=True))
        s_loc = le * pl.reciprocal(jnp.sum(le, axis=1, keepdims=True),
                                   approx=True)
        # Z_Loc: exp(-(x - mean_T(x))^2).
        z_loc = jnp.exp(-(l - jnp.mean(l, axis=1, keepdims=True)) ** 2)
        # G_Loc: exp(-(x - mu_k)^2 / sigma_k^2), with 1/sigma^2 precomputed.
        g_loc = jnp.exp(-(l - mu) ** 2 * inv_sig2)

        loc_ref[n] = (s_loc + z_loc + g_loc) * (1.0 / 3.0)


# ---------------------------------------------------------------------------
# One-time parameter packing (outside the hot path).
# Weights are in PyTorch Conv2d (out_channels, in_channels) layout.
# ---------------------------------------------------------------------------
def pack_wsgn_params(params):
    (w1c, b1c, w2c, b2c, w1l, b1l, w2l, b2l, mu, std) = params
    w1 = jnp.concatenate([w1c, w1l], axis=0).astype(jnp.bfloat16)        # (2H, C)
    b1 = jnp.concatenate([b1c, b1l], axis=0)[:, None].astype(jnp.float32)  # (2H, 1)
    inv_sig2 = (1.0 / (std.astype(jnp.float32) ** 2))[:, None]           # (K, 1)
    return (w1, b1,
            w2c.astype(jnp.bfloat16), b2c[:, None].astype(jnp.float32),
            w2l.astype(jnp.bfloat16), b2l[:, None].astype(jnp.float32),
            mu[:, None].astype(jnp.float32), inv_sig2)


# ---------------------------------------------------------------------------
# Wrapper: one XLA op total (the pallas_call).  Returns (cls, loc), (N, K, T).
# ---------------------------------------------------------------------------
@jax.jit
def wsgn_2fc_forward(x_nchw, packed_params):
    w1, b1, w2c, b2c, w2l, b2l, mu, inv_sig2 = packed_params
    N, C, T, W = x_nchw.shape
    assert W == 1, "spatial_squeeze path assumes W == 1"
    K = w2c.shape[0]

    x3 = x_nchw.reshape(N, C, T)   # metadata-only: drops the unit W dim

    vmem = pl.BlockSpec(memory_space=pltpu.MemorySpace.VMEM)
    cls, loc = pl.pallas_call(
        _wsgn_kernel,
        out_shape=(jax.ShapeDtypeStruct((N, K, T), jnp.float32),
                   jax.ShapeDtypeStruct((N, K, T), jnp.float32)),
        in_specs=[vmem] * 9,
        out_specs=(vmem, vmem),
    )(x3, w1, b1, w2c, b2c, w2l, b2l, mu, inv_sig2)
    return cls, loc


# ---------------------------------------------------------------------------
# Pure-JAX f32 reference (mirrors the PyTorch eval() semantics).
# ---------------------------------------------------------------------------
def ref_forward(x_nchw, params):
    (w1c, b1c, w2c, b2c, w1l, b1l, w2l, b2l, mu, std) = params
    N, C, T, W = x_nchw.shape
    x = jnp.maximum(x_nchw.reshape(N, C, T), 0.0)

    def branch(w1, b1, w2, b2):
        h = jnp.maximum(jnp.einsum('hc,nct->nht', w1, x) + b1[None, :, None], 0.0)
        return jnp.maximum(jnp.einsum('kh,nht->nkt', w2, h) + b2[None, :, None], 0.0)

    cls = branch(w1c, b1c, w2c, b2c)   # (N, K, T)
    loc = branch(w1l, b1l, w2l, b2l)   # (N, K, T)

    cls_out = jax.nn.softmax(cls, axis=1)
    s_loc = jax.nn.softmax(loc, axis=2)
    z_loc = jnp.exp(-(loc - loc.mean(axis=2, keepdims=True)) ** 2)
    g_loc = jnp.exp(-(loc - mu[None, :, None]) ** 2 / (std[None, :, None] ** 2))
    return cls_out, (s_loc + z_loc + g_loc) / 3.0


if __name__ == "__main__":
    # Small shapes consistent with the module (1x1 convs over NCHW, W=1).
    N, C_IN, HID, K, T, W = 2, 128, 128, 128, 8, 1

    key = jax.random.PRNGKey(0)
    ks = jax.random.split(key, 10)
    sc1 = 1.0 / jnp.sqrt(C_IN)
    sc2 = 1.0 / jnp.sqrt(HID)
    params = (
        jax.random.normal(ks[0], (HID, C_IN), jnp.float32) * sc1,   # cls_logits1.weight
        jax.random.normal(ks[1], (HID,), jnp.float32) * sc1,        # cls_logits1.bias
        jax.random.normal(ks[2], (K, HID), jnp.float32) * sc2,      # cls_logits2.weight
        jax.random.normal(ks[3], (K,), jnp.float32) * sc2,          # cls_logits2.bias
        jax.random.normal(ks[4], (HID, C_IN), jnp.float32) * sc1,   # loc_logits1.weight
        jax.random.normal(ks[5], (HID,), jnp.float32) * sc1,        # loc_logits1.bias
        jax.random.normal(ks[6], (K, HID), jnp.float32) * sc2,      # loc_logits2.weight
        jax.random.normal(ks[7], (K,), jnp.float32) * sc2,          # loc_logits2.bias
        jax.random.normal(ks[8], (K,), jnp.float32),                # G_Loc.mean ~ randn
        jnp.ones((K,), jnp.float32),                                # G_Loc.std = ones
    )

    x = jax.random.normal(ks[9], (N, C_IN, T, W), jnp.float32)

    packed = pack_wsgn_params(params)
    cls_out, loc_out = wsgn_2fc_forward(x, packed)
    jax.block_until_ready((cls_out, loc_out))

    cls_ref, loc_ref = ref_forward(x, params)
    assert cls_out.shape == (N, K, T) and loc_out.shape == (N, K, T)
    # Tolerance covers bf16 MXU inputs + approx reciprocal vs the f32 reference.
    assert jnp.allclose(cls_out, cls_ref, rtol=3e-2, atol=3e-2)
    assert jnp.allclose(loc_out, loc_ref, rtol=3e-2, atol=3e-2)

    print("KERNEL_OK")
</pallas_src>

<mosaic_0001>
module attributes {stable_mosaic.version = 11 : i64} {
  func.func @_wsgn_kernel(%arg0: memref<2x128x8xf32, #tpu.memory_space<vmem>>, %arg1: memref<256x128xbf16, #tpu.memory_space<vmem>>, %arg2: memref<256x1xf32, #tpu.memory_space<vmem>>, %arg3: memref<128x128xbf16, #tpu.memory_space<vmem>>, %arg4: memref<128x1xf32, #tpu.memory_space<vmem>>, %arg5: memref<128x128xbf16, #tpu.memory_space<vmem>>, %arg6: memref<128x1xf32, #tpu.memory_space<vmem>>, %arg7: memref<128x1xf32, #tpu.memory_space<vmem>>, %arg8: memref<128x1xf32, #tpu.memory_space<vmem>>, %arg9: memref<2x128x8xf32, #tpu.memory_space<vmem>>, %arg10: memref<2x128x8xf32, #tpu.memory_space<vmem>>) attributes {dimension_semantics = [], scalar_prefetch = 0 : i64, scratch_operands = 0 : i64, tpu.core_type = #tpu.core_type<tc>} {
    %c0 = arith.constant 0 : index
    %c0_0 = arith.constant 0 : index
    %0 = vector.load %arg1[%c0, %c0_0] : memref<256x128xbf16, #tpu.memory_space<vmem>>, vector<256x128xbf16>
    %c0_1 = arith.constant 0 : index
    %c0_2 = arith.constant 0 : index
    %1 = vector.load %arg2[%c0_1, %c0_2] : memref<256x1xf32, #tpu.memory_space<vmem>>, vector<256x1xf32>
    %c0_3 = arith.constant 0 : index
    %c0_4 = arith.constant 0 : index
    %2 = vector.load %arg3[%c0_3, %c0_4] : memref<128x128xbf16, #tpu.memory_space<vmem>>, vector<128x128xbf16>
    %c0_5 = arith.constant 0 : index
    %c0_6 = arith.constant 0 : index
    %3 = vector.load %arg4[%c0_5, %c0_6] : memref<128x1xf32, #tpu.memory_space<vmem>>, vector<128x1xf32>
    %c0_7 = arith.constant 0 : index
    %c0_8 = arith.constant 0 : index
    %4 = vector.load %arg5[%c0_7, %c0_8] : memref<128x128xbf16, #tpu.memory_space<vmem>>, vector<128x128xbf16>
    %c0_9 = arith.constant 0 : index
    %c0_10 = arith.constant 0 : index
    %5 = vector.load %arg6[%c0_9, %c0_10] : memref<128x1xf32, #tpu.memory_space<vmem>>, vector<128x1xf32>
    %c0_11 = arith.constant 0 : index
    %c0_12 = arith.constant 0 : index
    %6 = vector.load %arg7[%c0_11, %c0_12] : memref<128x1xf32, #tpu.memory_space<vmem>>, vector<128x1xf32>
    %c0_13 = arith.constant 0 : index
    %c0_14 = arith.constant 0 : index
    %7 = vector.load %arg8[%c0_13, %c0_14] : memref<128x1xf32, #tpu.memory_space<vmem>>, vector<128x1xf32>
    %c0_15 = arith.constant 0 : index
    %c0_16 = arith.constant 0 : index
    %c0_17 = arith.constant 0 : index
    %8 = vector.load %arg0[%c0_15, %c0_16, %c0_17] : memref<2x128x8xf32, #tpu.memory_space<vmem>>, vector<1x128x8xf32>
    %9 = vector.shape_cast %8 : vector<1x128x8xf32> to vector<128x8xf32>
    %cst = arith.constant 0.000000e+00 : f32
    %10 = vector.broadcast %cst : f32 to vector<128x8xf32>
    %11 = arith.maximumf %9, %10 : vector<128x8xf32>
    %12 = arith.truncf %11 : vector<128x8xf32> to vector<128x8xbf16>
    %cst_18 = arith.constant dense<0.000000e+00> : vector<256x8xf32>
    %13 = tpu.matmul %0, %12, %cst_18 {dimension_numbers = #tpu.dot_dimension_numbers<[1], [0], [0], [1], [0, 0, 1, 1], [], []>} : vector<256x128xbf16>, vector<128x8xbf16>, vector<256x8xf32> -> vector<256x8xf32>
    %14 = vector.broadcast %1 : vector<256x1xf32> to vector<256x8xf32>
    %15 = arith.addf %13, %14 : vector<256x8xf32>
    %cst_19 = arith.constant 0.000000e+00 : f32
    %16 = vector.broadcast %cst_19 : f32 to vector<256x8xf32>
    %17 = arith.maximumf %15, %16 : vector<256x8xf32>
    %18 = arith.truncf %17 : vector<256x8xf32> to vector<256x8xbf16>
    %19 = vector.extract_strided_slice %18 {offsets = [0, 0], sizes = [128, 8], strides = [1, 1]} : vector<256x8xbf16> to vector<128x8xbf16>
    %cst_20 = arith.constant dense<0.000000e+00> : vector<128x8xf32>
    %20 = tpu.matmul %2, %19, %cst_20 {dimension_numbers = #tpu.dot_dimension_numbers<[1], [0], [0], [1], [0, 0, 1, 1], [], []>} : vector<128x128xbf16>, vector<128x8xbf16>, vector<128x8xf32> -> vector<128x8xf32>
    %21 = vector.broadcast %3 : vector<128x1xf32> to vector<128x8xf32>
    %22 = arith.addf %20, %21 : vector<128x8xf32>
    %cst_21 = arith.constant 0.000000e+00 : f32
    %23 = vector.broadcast %cst_21 : f32 to vector<128x8xf32>
    %24 = arith.maximumf %22, %23 : vector<128x8xf32>
    %25 = vector.extract_strided_slice %18 {offsets = [128, 0], sizes = [128, 8], strides = [1, 1]} : vector<256x8xbf16> to vector<128x8xbf16>
    %cst_22 = arith.constant dense<0.000000e+00> : vector<128x8xf32>
    %26 = tpu.matmul %4, %25, %cst_22 {dimension_numbers = #tpu.dot_dimension_numbers<[1], [0], [0], [1], [0, 0, 1, 1], [], []>} : vector<128x128xbf16>, vector<128x8xbf16>, vector<128x8xf32> -> vector<128x8xf32>
    %27 = vector.broadcast %5 : vector<128x1xf32> to vector<128x8xf32>
    %28 = arith.addf %26, %27 : vector<128x8xf32>
    %cst_23 = arith.constant 0.000000e+00 : f32
    %29 = vector.broadcast %cst_23 : f32 to vector<128x8xf32>
    %30 = arith.maximumf %28, %29 : vector<128x8xf32>
    %cst_24 = arith.constant dense<0xFF800000> : vector<8xf32>
    %31 = vector.multi_reduction <maximumf>, %24, %cst_24 [0] : vector<128x8xf32> to vector<8xf32>
    %32 = vector.shape_cast %31 : vector<8xf32> to vector<1x8xf32>
    %33 = vector.broadcast %32 : vector<1x8xf32> to vector<128x8xf32>
    %34 = arith.subf %24, %33 : vector<128x8xf32>
    %35 = math.exp %34 : vector<128x8xf32>
    %cst_25 = arith.constant dense<0.000000e+00> : vector<8xf32>
    %36 = vector.multi_reduction <add>, %35, %cst_25 [0] : vector<128x8xf32> to vector<8xf32>
    %37 = vector.shape_cast %36 : vector<8xf32> to vector<1x8xf32>
    %38 = tpu.reciprocal %37 {approx = true} : vector<1x8xf32> -> vector<1x8xf32>
    %39 = vector.broadcast %38 : vector<1x8xf32> to vector<128x8xf32>
    %40 = arith.mulf %35, %39 : vector<128x8xf32>
    %c0_26 = arith.constant 0 : index
    %c0_27 = arith.constant 0 : index
    %c0_28 = arith.constant 0 : index
    %41 = vector.load %arg9[%c0_26, %c0_27, %c0_28] : memref<2x128x8xf32, #tpu.memory_space<vmem>>, vector<1x128x8xf32>
    %42 = vector.shape_cast %41 : vector<1x128x8xf32> to vector<128x8xf32>
    %43 = vector.shape_cast %40 : vector<128x8xf32> to vector<1x128x8xf32>
    tpu.vector_store %arg9[%c0_26, %c0_27, %c0_28], %43 {strides = array<i32>} : memref<2x128x8xf32, #tpu.memory_space<vmem>>, vector<1x128x8xf32>,
    %cst_29 = arith.constant dense<0xFF800000> : vector<128xf32>
    %44 = vector.multi_reduction <maximumf>, %30, %cst_29 [1] : vector<128x8xf32> to vector<128xf32>
    %45 = vector.shape_cast %44 : vector<128xf32> to vector<128x1xf32>
    %46 = vector.broadcast %45 : vector<128x1xf32> to vector<128x8xf32>
    %47 = arith.subf %30, %46 : vector<128x8xf32>
    %48 = math.exp %47 : vector<128x8xf32>
    %cst_30 = arith.constant dense<0.000000e+00> : vector<128xf32>
    %49 = vector.multi_reduction <add>, %48, %cst_30 [1] : vector<128x8xf32> to vector<128xf32>
    %50 = vector.shape_cast %49 : vector<128xf32> to vector<128x1xf32>
    %51 = tpu.reciprocal %50 {approx = true} : vector<128x1xf32> -> vector<128x1xf32>
    %52 = vector.broadcast %51 : vector<128x1xf32> to vector<128x8xf32>
    %53 = arith.mulf %48, %52 : vector<128x8xf32>
    %cst_31 = arith.constant dense<0.000000e+00> : vector<128xf32>
    %54 = vector.multi_reduction <add>, %30, %cst_31 [1] : vector<128x8xf32> to vector<128xf32>
    %55 = vector.shape_cast %54 : vector<128xf32> to vector<128x1xf32>
    %cst_32 = arith.constant 8.000000e+00 : f32
    %56 = vector.broadcast %cst_32 : f32 to vector<128x1xf32>
    %57 = arith.divf %55, %56 : vector<128x1xf32>
    %58 = vector.broadcast %57 : vector<128x1xf32> to vector<128x8xf32>
    %59 = arith.subf %30, %58 : vector<128x8xf32>
    %60 = arith.mulf %59, %59 : vector<128x8xf32>
    %cst_33 = arith.constant 0.000000e+00 : f32
    %61 = vector.broadcast %cst_33 : f32 to vector<128x8xf32>
    %62 = arith.subf %61, %60 : vector<128x8xf32>
    %63 = math.exp %62 : vector<128x8xf32>
    %64 = vector.broadcast %6 : vector<128x1xf32> to vector<128x8xf32>
    %65 = arith.subf %30, %64 : vector<128x8xf32>
    %66 = arith.mulf %65, %65 : vector<128x8xf32>
    %cst_34 = arith.constant 0.000000e+00 : f32
    %67 = vector.broadcast %cst_34 : f32 to vector<128x8xf32>
    %68 = arith.subf %67, %66 : vector<128x8xf32>
    %69 = vector.broadcast %7 : vector<128x1xf32> to vector<128x8xf32>
    %70 = arith.mulf %68, %69 : vector<128x8xf32>
    %71 = math.exp %70 : vector<128x8xf32>
    %72 = arith.addf %53, %63 : vector<128x8xf32>
    %73 = arith.addf %72, %71 : vector<128x8xf32>
    %cst_35 = arith.constant 0.333333343 : f32
    %74 = vector.broadcast %cst_35 : f32 to vector<128x8xf32>
    %75 = arith.mulf %73, %74 : vector<128x8xf32>
    %c0_36 = arith.constant 0 : index
    %c0_37 = arith.constant 0 : index
    %c0_38 = arith.constant 0 : index
    %76 = vector.load %arg10[%c0_36, %c0_37, %c0_38] : memref<2x128x8xf32, #tpu.memory_space<vmem>>, vector<1x128x8xf32>
    %77 = vector.shape_cast %76 : vector<1x128x8xf32> to vector<128x8xf32>
    %78 = vector.shape_cast %75 : vector<128x8xf32> to vector<1x128x8xf32>
    tpu.vector_store %arg10[%c0_36, %c0_37, %c0_38], %78 {strides = array<i32>} : memref<2x128x8xf32, #tpu.memory_space<vmem>>, vector<1x128x8xf32>,
    %c1 = arith.constant 1 : index
    %c0_39 = arith.constant 0 : index
    %c0_40 = arith.constant 0 : index
    %79 = vector.load %arg0[%c1, %c0_39, %c0_40] : memref<2x128x8xf32, #tpu.memory_space<vmem>>, vector<1x128x8xf32>
    %80 = vector.shape_cast %79 : vector<1x128x8xf32> to vector<128x8xf32>
    %cst_41 = arith.constant 0.000000e+00 : f32
    %81 = vector.broadcast %cst_41 : f32 to vector<128x8xf32>
    %82 = arith.maximumf %80, %81 : vector<128x8xf32>
    %83 = arith.truncf %82 : vector<128x8xf32> to vector<128x8xbf16>
    %cst_42 = arith.constant dense<0.000000e+00> : vector<256x8xf32>
    %84 = tpu.matmul %0, %83, %cst_42 {dimension_numbers = #tpu.dot_dimension_numbers<[1], [0], [0], [1], [0, 0, 1, 1], [], []>} : vector<256x128xbf16>, vector<128x8xbf16>, vector<256x8xf32> -> vector<256x8xf32>
    %85 = vector.broadcast %1 : vector<256x1xf32> to vector<256x8xf32>
    %86 = arith.addf %84, %85 : vector<256x8xf32>
    %cst_43 = arith.constant 0.000000e+00 : f32
    %87 = vector.broadcast %cst_43 : f32 to vector<256x8xf32>
    %88 = arith.maximumf %86, %87 : vector<256x8xf32>
    %89 = arith.truncf %88 : vector<256x8xf32> to vector<256x8xbf16>
    %90 = vector.extract_strided_slice %89 {offsets = [0, 0], sizes = [128, 8], strides = [1, 1]} : vector<256x8xbf16> to vector<128x8xbf16>
    %cst_44 = arith.constant dense<0.000000e+00> : vector<128x8xf32>
    %91 = tpu.matmul %2, %90, %cst_44 {dimension_numbers = #tpu.dot_dimension_numbers<[1], [0], [0], [1], [0, 0, 1, 1], [], []>} : vector<128x128xbf16>, vector<128x8xbf16>, vector<128x8xf32> -> vector<128x8xf32>
    %92 = vector.broadcast %3 : vector<128x1xf32> to vector<128x8xf32>
    %93 = arith.addf %91, %92 : vector<128x8xf32>
    %cst_45 = arith.constant 0.000000e+00 : f32
    %94 = vector.broadcast %cst_45 : f32 to vector<128x8xf32>
    %95 = arith.maximumf %93, %94 : vector<128x8xf32>
    %96 = vector.extract_strided_slice %89 {offsets = [128, 0], sizes = [128, 8], strides = [1, 1]} : vector<256x8xbf16> to vector<128x8xbf16>
    %cst_46 = arith.constant dense<0.000000e+00> : vector<128x8xf32>
    %97 = tpu.matmul %4, %96, %cst_46 {dimension_numbers = #tpu.dot_dimension_numbers<[1], [0], [0], [1], [0, 0, 1, 1], [], []>} : vector<128x128xbf16>, vector<128x8xbf16>, vector<128x8xf32> -> vector<128x8xf32>
    %98 = vector.broadcast %5 : vector<128x1xf32> to vector<128x8xf32>
    %99 = arith.addf %97, %98 : vector<128x8xf32>
    %cst_47 = arith.constant 0.000000e+00 : f32
    %100 = vector.broadcast %cst_47 : f32 to vector<128x8xf32>
    %101 = arith.maximumf %99, %100 : vector<128x8xf32>
    %cst_48 = arith.constant dense<0xFF800000> : vector<8xf32>
    %102 = vector.multi_reduction <maximumf>, %95, %cst_48 [0] : vector<128x8xf32> to vector<8xf32>
    %103 = vector.shape_cast %102 : vector<8xf32> to vector<1x8xf32>
    %104 = vector.broadcast %103 : vector<1x8xf32> to vector<128x8xf32>
    %105 = arith.subf %95, %104 : vector<128x8xf32>
    %106 = math.exp %105 : vector<128x8xf32>
    %cst_49 = arith.constant dense<0.000000e+00> : vector<8xf32>
    %107 = vector.multi_reduction <add>, %106, %cst_49 [0] : vector<128x8xf32> to vector<8xf32>
    %108 = vector.shape_cast %107 : vector<8xf32> to vector<1x8xf32>
    %109 = tpu.reciprocal %108 {approx = true} : vector<1x8xf32> -> vector<1x8xf32>
    %110 = vector.broadcast %109 : vector<1x8xf32> to vector<128x8xf32>
    %111 = arith.mulf %106, %110 : vector<128x8xf32>
    %c1_50 = arith.constant 1 : index
    %c0_51 = arith.constant 0 : index
    %c0_52 = arith.constant 0 : index
    %112 = vector.load %arg9[%c1_50, %c0_51, %c0_52] : memref<2x128x8xf32, #tpu.memory_space<vmem>>, vector<1x128x8xf32>
    %113 = vector.shape_cast %112 : vector<1x128x8xf32> to vector<128x8xf32>
    %114 = vector.shape_cast %111 : vector<128x8xf32> to vector<1x128x8xf32>
    tpu.vector_store %arg9[%c1_50, %c0_51, %c0_52], %114 {strides = array<i32>} : memref<2x128x8xf32, #tpu.memory_space<vmem>>, vector<1x128x8xf32>,
    %cst_53 = arith.constant dense<0xFF800000> : vector<128xf32>
    %115 = vector.multi_reduction <maximumf>, %101, %cst_53 [1] : vector<128x8xf32> to vector<128xf32>
    %116 = vector.shape_cast %115 : vector<128xf32> to vector<128x1xf32>
    %117 = vector.broadcast %116 : vector<128x1xf32> to vector<128x8xf32>
    %118 = arith.subf %101, %117 : vector<128x8xf32>
    %119 = math.exp %118 : vector<128x8xf32>
    %cst_54 = arith.constant dense<0.000000e+00> : vector<128xf32>
    %120 = vector.multi_reduction <add>, %119, %cst_54 [1] : vector<128x8xf32> to vector<128xf32>
    %121 = vector.shape_cast %120 : vector<128xf32> to vector<128x1xf32>
    %122 = tpu.reciprocal %121 {approx = true} : vector<128x1xf32> -> vector<128x1xf32>
    %123 = vector.broadcast %122 : vector<128x1xf32> to vector<128x8xf32>
    %124 = arith.mulf %119, %123 : vector<128x8xf32>
    %cst_55 = arith.constant dense<0.000000e+00> : vector<128xf32>
    %125 = vector.multi_reduction <add>, %101, %cst_55 [1] : vector<128x8xf32> to vector<128xf32>
    %126 = vector.shape_cast %125 : vector<128xf32> to vector<128x1xf32>
    %cst_56 = arith.constant 8.000000e+00 : f32
    %127 = vector.broadcast %cst_56 : f32 to vector<128x1xf32>
    %128 = arith.divf %126, %127 : vector<128x1xf32>
    %129 = vector.broadcast %128 : vector<128x1xf32> to vector<128x8xf32>
    %130 = arith.subf %101, %129 : vector<128x8xf32>
    %131 = arith.mulf %130, %130 : vector<128x8xf32>
    %cst_57 = arith.constant 0.000000e+00 : f32
    %132 = vector.broadcast %cst_57 : f32 to vector<128x8xf32>
    %133 = arith.subf %132, %131 : vector<128x8xf32>
    %134 = math.exp %133 : vector<128x8xf32>
    %135 = vector.broadcast %6 : vector<128x1xf32> to vector<128x8xf32>
    %136 = arith.subf %101, %135 : vector<128x8xf32>
    %137 = arith.mulf %136, %136 : vector<128x8xf32>
    %cst_58 = arith.constant 0.000000e+00 : f32
    %138 = vector.broadcast %cst_58 : f32 to vector<128x8xf32>
    %139 = arith.subf %138, %137 : vector<128x8xf32>
    %140 = vector.broadcast %7 : vector<128x1xf32> to vector<128x8xf32>
    %141 = arith.mulf %139, %140 : vector<128x8xf32>
    %142 = math.exp %141 : vector<128x8xf32>
    %143 = arith.addf %124, %134 : vector<128x8xf32>
    %144 = arith.addf %143, %142 : vector<128x8xf32>
    %cst_59 = arith.constant 0.333333343 : f32
    %145 = vector.broadcast %cst_59 : f32 to vector<128x8xf32>
    %146 = arith.mulf %144, %145 : vector<128x8xf32>
    %c1_60 = arith.constant 1 : index
    %c0_61 = arith.constant 0 : index
    %c0_62 = arith.constant 0 : index
    %147 = vector.load %arg10[%c1_60, %c0_61, %c0_62] : memref<2x128x8xf32, #tpu.memory_space<vmem>>, vector<1x128x8xf32>
    %148 = vector.shape_cast %147 : vector<1x128x8xf32> to vector<128x8xf32>
    %149 = vector.shape_cast %146 : vector<128x8xf32> to vector<1x128x8xf32>
    tpu.vector_store %arg10[%c1_60, %c0_61, %c0_62], %149 {strides = array<i32>} : memref<2x128x8xf32, #tpu.memory_space<vmem>>, vector<1x128x8xf32>,
    return
  }
}

</mosaic_0001>

<bundles_post_ra>
// kernel: wsgn_2fc_forward.1
= control target key start
LH: loop header
LB: loop body
LE: loop exit
PB: predicated region body
PF: predicated region fallthrough
CT: control target
= control target key end

     0   :  { %v3875_v0 = vmov 0   ;;  %vm1182_vm0 = vcmask 64512   ;;  %s6323_s2 = inlined_call_operand.vmem [shape: f32[256,1], index: 2, kind: input, shape index: {}]   ;;  %s6324_s0 = inlined_call_operand.vmem [shape: f32[2,128,8], index: 0, kind: input, shape index: {}]   ;;  %s6325_s1 = inlined_call_operand.vmem [shape: bf16[256,128], index: 1, kind: input, shape index: {}]   ;;  %s6326_s4 = inlined_call_operand.vmem [shape: f32[128,1], index: 4, kind: input, shape index: {}]   ;;  %s6327_s6 = inlined_call_operand.vmem [shape: f32[128,1], index: 6, kind: input, shape index: {}]   ;;  %s6328_s7 = inlined_call_operand.vmem [shape: f32[128,1], index: 7, kind: input, shape index: {}]   ;;  %s6329_s8 = inlined_call_operand.vmem [shape: f32[128,1], index: 8, kind: input, shape index: {}]   ;;  %s6330_s3 = inlined_call_operand.vmem [shape: bf16[128,128], index: 3, kind: input, shape index: {}]   ;;  %s6331_s5 = inlined_call_operand.vmem [shape: bf16[128,128], index: 5, kind: input, shape index: {}]   ;;  %s6332_s9 = inlined_call_operand.vmem [shape: f32[2,128,8], index: 9, kind: output, shape index: {0}]   ;;  %s6333_s10 = inlined_call_operand.vmem [shape: f32[2,128,8], index: 10, kind: output, shape index: {1}]  }
   0x1   :  { %3518 = vset.pattern.permute.xlu1 %v3875_v0  ;;  %3517 = vset.pattern.permute.xlu0 %v3875_v0  ;;  %v69_v1 = vld [vmem:[%s6323_s2 + $0x10] sm:$0xff]  ;;  %v67_v2 = vld [vmem:[%s6323_s2] sm:$0xff]  ;;  %v210_v4 = vld [vmem:[%s6324_s0 + $0x78] sm:$0xff] }
   0x2   :  { %247 = vperm.xlu1 %3518, %v69_v1   ;;  %237 = vperm.xlu0 %3517, %v67_v2   ;;  %v209_v3 = vld [vmem:[%s6324_s0 + $0x70] sm:$0xff]  ;;  %v70_v5 = vld [vmem:[%s6323_s2 + $0x18] sm:$0xff]  ;;  %v68_v6 = vld [vmem:[%s6323_s2 + $0x8] sm:$0xff]  ;;  %v226_v8 = vmax.f32 %v210_v4, 0.0 }
   0x3   :  { %v225_v7 = vmax.f32 %v209_v3, 0.0  ;;  %v207_v9 = vld [vmem:[%s6324_s0 + $0x60] sm:$0xff]  ;;  %v208_v10 = vld [vmem:[%s6324_s0 + $0x68] sm:$0xff]  ;;  %v205_v14 = vld [vmem:[%s6324_s0 + $0x50] sm:$0xff] }
   0x4   :  { %v223_v11 = vmax.f32 %v207_v9, 0.0  ;;  %v224_v13 = vmax.f32 %v208_v10, 0.0  ;;  %v206_v15 = vld [vmem:[%s6324_s0 + $0x58] sm:$0xff]  ;;  %v221_v16 = vmax.f32 %v205_v14, 0.0  ;;  %v203_v18 = vld [vmem:[%s6324_s0 + $0x40] sm:$0xff]  ;;  %v204_v19 = vld [vmem:[%s6324_s0 + $0x48] sm:$0xff] }
   0x5   :  { %v234_v12 = vpack.c.bf16 %v226_v8, %v225_v7  ;;  %v222_v17 = vmax.f32 %v206_v15, 0.0  ;;  %v82_v20 = vld [vmem:[%s6323_s2 + $0x78] sm:$0xff]  ;;  %v81_v21 = vld [vmem:[%s6323_s2 + $0x70] sm:$0xff]  ;;  %v219_v24 = vmax.f32 %v203_v18, 0.0  ;;  %v220_v25 = vmax.f32 %v204_v19, 0.0  ;;  %v80_v28 = vld [vmem:[%s6323_s2 + $0x68] sm:$0xff] }
   0x6   :  { %252 = vperm.xlu1 %3518, %v70_v5   ;;  %242 = vperm.xlu0 %3517, %v68_v6   ;;  %v233_v22 = vpack.c.bf16 %v224_v13, %v223_v11  ;;  %v201_v26 = vld [vmem:[%s6324_s0 + $0x30] sm:$0xff]  ;;  %v202_v27 = vld [vmem:[%s6324_s0 + $0x38] sm:$0xff]  ;;  %v79_v29 = vld [vmem:[%s6323_s2 + $0x60] sm:$0xff] }
   0x7   :  { %3292 = vmatprep.subr.bf16.mxu0 %v234_v12  ;;  %v232_v23 = vpack.c.bf16 %v222_v17, %v221_v16  ;;  %v231_v30 = vpack.c.bf16 %v220_v25, %v219_v24  ;;  %v217_v31 = vmax.f32 %v201_v26, 0.0  ;;  %v218_v32 = vmax.f32 %v202_v27, 0.0  ;;  %v199_v33 = vld [vmem:[%s6324_s0 + $0x20] sm:$0xff]  ;;  %v200_v35 = vld [vmem:[%s6324_s0 + $0x28] sm:$0xff]  ;;  %v78_v36 = vld [vmem:[%s6323_s2 + $0x58] sm:$0xff] }
   0x8   :  { %3293 = vmatpush3.bf16.msra.mxu0 %v234_v12  ;;  %v3991_v34 = vld [vmem:[%s6325_s1] sm:$0xff]   ;;  %v77_v37 = vld [vmem:[%s6323_s2 + $0x50] sm:$0xff]  ;;  %v215_v39 = vmax.f32 %v199_v33, 0.0  ;;  %v216_v40 = vmax.f32 %v200_v35, 0.0  ;;  %v198_v42 = vld [vmem:[%s6324_s0 + $0x18] sm:$0xff] }
   0x9   :  { %3294 = vmatprep.subr.bf16.mxu0 %v233_v22  ;;  %3308 = vmatprep.mubr.bf16.mxu0 %v3991_v34  ;;  %v230_v38 = vpack.c.bf16 %v218_v32, %v217_v31  ;;  %v197_v41 = vld [vmem:[%s6324_s0 + $0x10] sm:$0xff]  ;;  %v76_v43 = vld [vmem:[%s6323_s2 + $0x48] sm:$0xff]  ;;  %v75_v44 = vld [vmem:[%s6323_s2 + $0x40] sm:$0xff]  ;;  %v214_v47 = vmax.f32 %v198_v42, 0.0 }
   0xa   :  { %312 = vperm.xlu1 %3518, %v82_v20   ;;  %307 = vperm.xlu0 %3517, %v81_v21   ;;  %v229_v45 = vpack.c.bf16 %v216_v40, %v215_v39  ;;  %v213_v46 = vmax.f32 %v197_v41, 0.0  ;;  %v195_v48 = vld [vmem:[%s6324_s0] sm:$0xff]  ;;  %v196_v49 = vld [vmem:[%s6324_s0 + $0x8] sm:$0xff]  ;;  %v74_v50 = vld [vmem:[%s6323_s2 + $0x38] sm:$0xff] }
   0xb   :  { %v73_v51 = vld [vmem:[%s6323_s2 + $0x30] sm:$0xff]  ;;  %v211_v53 = vmax.f32 %v195_v48, 0.0  ;;  %v212_v54 = vmax.f32 %v196_v49, 0.0  ;;  %v3147_v56 = vld [vmem:[%s6324_s0 + $0xf8] sm:$0xff]  ;;  %v72_v57 = vld [vmem:[%s6323_s2 + $0x28] sm:$0xff] }
   0xc   :  { %3295 = vmatpush3.bf16.msra.mxu0 %v233_v22  ;;  %v228_v52 = vpack.c.bf16 %v214_v47, %v213_v46  ;;  %v3146_v55 = vld [vmem:[%s6324_s0 + $0xf0] sm:$0xff]  ;;  %v71_v58 = vld [vmem:[%s6323_s2 + $0x20] sm:$0xff]  ;;  %v2011_v61 = vmax.f32 %v3147_v56, 0.0  ;;  %v3145_v63 = vld [vmem:[%s6324_s0 + $0xe8] sm:$0xff] }
   0xd   :  { %3296 = vmatprep.subr.bf16.mxu0 %v232_v23  ;;  %v227_v59 = vpack.c.bf16 %v212_v54, %v211_v53  ;;  %v2010_v60 = vmax.f32 %v3146_v55, 0.0  ;;  %v3144_v62 = vld [vmem:[%s6324_s0 + $0xe0] sm:$0xff]  ;;  %v98_v0 = vld [vmem:[%s6323_s2 + $0xf8] sm:$0xff]  ;;  %v97_v1 = vld [vmem:[%s6323_s2 + $0xf0] sm:$0xff]  ;;  %v2009_v4 = vmax.f32 %v3145_v63, 0.0 }
   0xe   :  { %302 = vperm.xlu1 %3518, %v80_v28   ;;  %297 = vperm.xlu0 %3517, %v79_v29   ;;  %v2008_v3 = vmax.f32 %v3144_v62, 0.0  ;;  %v3142_v5 = vld [vmem:[%s6324_s0 + $0xd0] sm:$0xff]  ;;  %v3143_v6 = vld [vmem:[%s6324_s0 + $0xd8] sm:$0xff]  ;;  %v96_v7 = vld [vmem:[%s6323_s2 + $0xe8] sm:$0xff] }
   0xf   :  { %v2019_v2 = vpack.c.bf16 %v2011_v61, %v2010_v60  ;;  %v95_v8 = vld [vmem:[%s6323_s2 + $0xe0] sm:$0xff]  ;;  %v4066_v9 = vld [vmem:[%s6325_s1 + $0x8] sm:$0xff]   ;;  %v4071_v10 = vld [vmem:[%s6325_s1 + $0x10] sm:$0xff]   ;;  %v2006_v12 = vmax.f32 %v3142_v5, 0.0  ;;  %v2007_v13 = vmax.f32 %v3143_v6, 0.0 }
  0x10   :  { %3297 = vmatpush3.bf16.msra.mxu0 %v232_v23  ;;  %v2018_v11 = vpack.c.bf16 %v2009_v4, %v2008_v3  ;;  %v3140_v14 = vld [vmem:[%s6324_s0 + $0xc0] sm:$0xff]  ;;  %v3141_v15 = vld [vmem:[%s6324_s0 + $0xc8] sm:$0xff]  ;;  %v94_v16 = vld [vmem:[%s6323_s2 + $0xd8] sm:$0xff] }
  0x11   :  { %3298 = vmatprep.subr.bf16.mxu0 %v231_v30  ;;  %v93_v17 = vld [vmem:[%s6323_s2 + $0xd0] sm:$0xff]  ;;  %v2017_v18 = vpack.c.bf16 %v2007_v13, %v2006_v12  ;;  %v2004_v19 = vmax.f32 %v3140_v14, 0.0  ;;  %v2005_v20 = vmax.f32 %v3141_v15, 0.0  ;;  %v3139_v22 = vld [vmem:[%s6324_s0 + $0xb8] sm:$0xff]  ;;  %v92_v23 = vld [vmem:[%s6323_s2 + $0xc8] sm:$0xff] }
  0x12   :  { %292 = vperm.xlu1 %3518, %v78_v36   ;;  %287 = vperm.xlu0 %3517, %v77_v37   ;;  %v3138_v21 = vld [vmem:[%s6324_s0 + $0xb0] sm:$0xff]  ;;  %v91_v24 = vld [vmem:[%s6323_s2 + $0xc0] sm:$0xff]  ;;  %v4102_v25 = vld [vmem:[%s6325_s1 + $0x18] sm:$0xff]   ;;  %v2003_v29 = vmax.f32 %v3139_v22, 0.0 }
  0x13   :  { %v4107_v26 = vld [vmem:[%s6325_s1 + $0x20] sm:$0xff]   ;;  %v2016_v27 = vpack.c.bf16 %v2005_v20, %v2004_v19  ;;  %v2002_v28 = vmax.f32 %v3138_v21, 0.0  ;;  %v3137_v31 = vld [vmem:[%s6324_s0 + $0xa8] sm:$0xff]  ;;  %v90_v32 = vld [vmem:[%s6323_s2 + $0xb8] sm:$0xff] }
  0x14   :  { %3299 = vmatpush3.bf16.msra.mxu0 %v231_v30  ;;  %v3136_v30 = vld [vmem:[%s6324_s0 + $0xa0] sm:$0xff]  ;;  %v89_v33 = vld [vmem:[%s6323_s2 + $0xb0] sm:$0xff]  ;;  %v2001_v37 = vmax.f32 %v3137_v31, 0.0  ;;  %v3135_v39 = vld [vmem:[%s6324_s0 + $0x98] sm:$0xff] }
  0x15   :  { %3300 = vmatprep.subr.bf16.mxu0 %v230_v38  ;;  %v2015_v35 = vpack.c.bf16 %v2003_v29, %v2002_v28  ;;  %v2000_v36 = vmax.f32 %v3136_v30, 0.0  ;;  %v88_v40 = vld [vmem:[%s6323_s2 + $0xa8] sm:$0xff]  ;;  %v87_v41 = vld [vmem:[%s6323_s2 + $0xa0] sm:$0xff]  ;;  %v1999_v46 = vmax.f32 %v3135_v39, 0.0  ;;  %v86_v49 = vld [vmem:[%s6323_s2 + $0x98] sm:$0xff] }
  0x16   :  { %282 = vperm.xlu1 %3518, %v76_v43   ;;  %277 = vperm.xlu0 %3517, %v75_v44   ;;  %v4138_v42 = vld [vmem:[%s6325_s1 + $0x28] sm:$0xff]   ;;  %v4143_v43 = vld [vmem:[%s6325_s1 + $0x30] sm:$0xff]   ;;  %v3132_v47 = vld [vmem:[%s6324_s0 + $0x80] sm:$0xff] }
  0x17   :  { %v2014_v44 = vpack.c.bf16 %v2001_v37, %v2000_v36  ;;  %v3133_v48 = vld [vmem:[%s6324_s0 + $0x88] sm:$0xff]  ;;  %v83_v55 = vld [vmem:[%s6323_s2 + $0x80] sm:$0xff]  ;;  %v4168_v56 = vld [vmem:[%s6325_s1 + $0x38] sm:$0xff]  }
  0x18   :  { %3301 = vmatpush3.bf16.msra.mxu0 %v230_v38  ;;  %v3134_v38 = vld [vmem:[%s6324_s0 + $0x90] sm:$0xff]  ;;  %v1997_v53 = vmax.f32 %v3133_v48, 0.0  ;;  %v84_v54 = vld [vmem:[%s6323_s2 + $0x88] sm:$0xff]  ;;  %v115_v60 = vld [vmem:[%s6326_s4] sm:$0xff] }
  0x19   :  { %3302 = vmatprep.subr.bf16.mxu0 %v229_v45  ;;  %v118_v61 = vld [vmem:[%s6326_s4 + $0x18] sm:$0xff]  ;;  %v117_v62 = vld [vmem:[%s6326_s4 + $0x10] sm:$0xff]  ;;  %v4192_v63 = vld [vmem:[%s6325_s1 + $0x48] sm:$0xff]  }
  0x1a   :  { %272 = vperm.xlu1 %3518, %v74_v50   ;;  %267 = vperm.xlu0 %3517, %v73_v51   ;;  %v85_v50 = vld [vmem:[%s6323_s2 + $0x90] sm:$0xff]  ;;  %v122_v3 = vld [vmem:[%s6326_s4 + $0x38] sm:$0xff]  ;;  %v4221_v6 = vld [vmem:[%s6325_s1 + $0x60] sm:$0xff]  }
  0x1b   :  { %v121_v4 = vld [vmem:[%s6326_s4 + $0x30] sm:$0xff]  ;;  %v4216_v5 = vld [vmem:[%s6325_s1 + $0x58] sm:$0xff]   ;;  %v4240_v13 = vld [vmem:[%s6325_s1 + $0x68] sm:$0xff]  }
  0x1c   :  { %3303 = vmatpush3.bf16.msra.mxu0 %v229_v45  ;;  %v1998_v45 = vmax.f32 %v3134_v38, 0.0  ;;  %v125_v12 = vld [vmem:[%s6326_s4 + $0x50] sm:$0xff]  ;;  %v128_v15 = vld [vmem:[%s6326_s4 + $0x68] sm:$0xff]  ;;  %v4264_v19 = vld [vmem:[%s6325_s1 + $0x78] sm:$0xff]  }
  0x1d   :  { %3304 = vmatprep.subr.bf16.mxu0 %v228_v52  ;;  %v4245_v14 = vld [vmem:[%s6325_s1 + $0x70] sm:$0xff]   ;;  %v148_v20 = vld [vmem:[%s6327_s6 + $0x8] sm:$0xff]  ;;  %v147_v21 = vld [vmem:[%s6327_s6] sm:$0xff] }
  0x1e   :  { %262 = vperm.xlu1 %3518, %v72_v57   ;;  %257 = vperm.xlu0 %3517, %v71_v58   ;;  %v2013_v51 = vpack.c.bf16 %v1999_v46, %v1998_v45  ;;  %v4173_v57 = vld [vmem:[%s6325_s1 + $0x40] sm:$0xff]   ;;  %v150_v22 = vld [vmem:[%s6327_s6 + $0x18] sm:$0xff]  ;;  %v156_v28 = vld [vmem:[%s6327_s6 + $0x48] sm:$0xff] }
  0x1f   :  { %v158_v29 = vld [vmem:[%s6327_s6 + $0x58] sm:$0xff]  ;;  %v160_v30 = vld [vmem:[%s6327_s6 + $0x68] sm:$0xff]  ;;  %v165_v36 = vld [vmem:[%s6328_s7 + $0x10] sm:$0xff] }
  0x20   :  { %3305 = vmatpush3.bf16.msra.mxu0 %v228_v52  ;;  %v1996_v52 = vmax.f32 %v3132_v47, 0.0  ;;  %v162_v31 = vld [vmem:[%s6327_s6 + $0x78] sm:$0xff]  ;;  %v167_v37 = vld [vmem:[%s6328_s7 + $0x20] sm:$0xff]  ;;  %v169_v39 = vld [vmem:[%s6328_s7 + $0x30] sm:$0xff] }
  0x21   :  { %3306 = vmatprep.subr.bf16.mxu0 %v227_v59  ;;  %v166_v38 = vld [vmem:[%s6328_s7 + $0x18] sm:$0xff]  ;;  %v175_v45 = vld [vmem:[%s6328_s7 + $0x60] sm:$0xff]  ;;  %v177_v47 = vld [vmem:[%s6328_s7 + $0x70] sm:$0xff] }
  0x22   :  { %392 = vperm.xlu1 %3518, %v98_v0   ;;  %387 = vperm.xlu0 %3517, %v97_v1   ;;  %v2012_v58 = vpack.c.bf16 %v1997_v53, %v1996_v52  ;;  %v4197_v0 = vld [vmem:[%s6325_s1 + $0x50] sm:$0xff]   ;;  %v120_v1 = vld [vmem:[%s6326_s4 + $0x28] sm:$0xff]  ;;  %v174_v46 = vld [vmem:[%s6328_s7 + $0x58] sm:$0xff] }
  0x23   :  { %v176_v48 = vld [vmem:[%s6328_s7 + $0x68] sm:$0xff]  ;;  %v182_v53 = vld [vmem:[%s6329_s8 + $0x18] sm:$0xff] }
  0x24   :  { %3307 = vmatpush3.bf16.msra.mxu0 %v227_v59  ;;  %v116_v59 = vld [vmem:[%s6326_s4 + $0x8] sm:$0xff] }
  0x25   :  { %3404 = vmatprep.subr.bf16.mxu0 %v2019_v2  ;;  %v180_v52 = vld [vmem:[%s6329_s8 + $0x8] sm:$0xff] }
  0x26   :  { %382 = vperm.xlu1 %3518, %v96_v7   ;;  %377 = vperm.xlu0 %3517, %v95_v8   ;;  %v124_v7 = vld [vmem:[%s6326_s4 + $0x48] sm:$0xff]  ;;  %v123_v8 = vld [vmem:[%s6326_s4 + $0x40] sm:$0xff] }
  0x27   :  { %3309 = vmatmul.mubr.bf16.vlgmr.msra.gmra.mxu0 %v4066_v9 }
  0x28   :  { %3405 = vmatpush3.bf16.msra.mxu0 %v2019_v2  ;;  %3312 = vmatprep.mubr.bf16.mxu0 %v4071_v10  ;;  %v119_v2 = vld [vmem:[%s6326_s4 + $0x20] sm:$0xff] }
  0x29   :  { %3406 = vmatprep.subr.bf16.mxu0 %v2018_v11 }
  0x2a   :  { %372 = vperm.xlu1 %3518, %v94_v16   ;;  %367 = vperm.xlu0 %3517, %v93_v17   ;;  %v127_v16 = vld [vmem:[%s6326_s4 + $0x60] sm:$0xff]  ;;  %v130_v17 = vld [vmem:[%s6326_s4 + $0x78] sm:$0xff] }
  0x2c   :  { %3407 = vmatpush3.bf16.msra.mxu0 %v2018_v11  ;;  %v126_v11 = vld [vmem:[%s6326_s4 + $0x58] sm:$0xff] }
  0x2d   :  { %3408 = vmatprep.subr.bf16.mxu0 %v2017_v18 }
  0x2e   :  { %362 = vperm.xlu1 %3518, %v92_v23   ;;  %357 = vperm.xlu0 %3517, %v91_v24   ;;  %v149_v23 = vld [vmem:[%s6327_s6 + $0x10] sm:$0xff]  ;;  %v152_v24 = vld [vmem:[%s6327_s6 + $0x28] sm:$0xff] }
  0x2f   :  { %3313 = vmatmul.mubr.bf16.gmra.mxu0 %v4102_v25 }
  0x30   :  { %3316 = vmatprep.mubr.bf16.mxu0 %v4107_v26  ;;  %3409 = vmatpush3.bf16.msra.mxu0 %v2017_v18  ;;  %v129_v18 = vld [vmem:[%s6326_s4 + $0x70] sm:$0xff] }
  0x31   :  { %3410 = vmatprep.subr.bf16.mxu0 %v2016_v27 }
  0x32   :  { %352 = vperm.xlu1 %3518, %v90_v32   ;;  %347 = vperm.xlu0 %3517, %v89_v33   ;;  %v161_v32 = vld [vmem:[%s6327_s6 + $0x70] sm:$0xff]  ;;  %v163_v33 = vld [vmem:[%s6328_s7] sm:$0xff] }
  0x34   :  { %3411 = vmatpush3.bf16.msra.mxu0 %v2016_v27  ;;  %v154_v27 = vld [vmem:[%s6327_s6 + $0x38] sm:$0xff] }
  0x35   :  { %3412 = vmatprep.subr.bf16.mxu0 %v2015_v35 }
  0x36   :  { %342 = vperm.xlu1 %3518, %v88_v40   ;;  %337 = vperm.xlu0 %3517, %v87_v41   ;;  %v168_v40 = vld [vmem:[%s6328_s7 + $0x28] sm:$0xff]  ;;  %v171_v41 = vld [vmem:[%s6328_s7 + $0x40] sm:$0xff] }
  0x37   :  { %3317 = vmatmul.mubr.bf16.gmra.mxu0 %v4138_v42 }
  0x38   :  { %3320 = vmatprep.mubr.bf16.mxu0 %v4143_v43  ;;  %3413 = vmatpush3.bf16.msra.mxu0 %v2015_v35  ;;  %v164_v35 = vld [vmem:[%s6328_s7 + $0x8] sm:$0xff] }
  0x39   :  { %3414 = vmatprep.subr.bf16.mxu0 %v2014_v44 }
  0x3a   :  { %332 = vperm.xlu1 %3518, %v86_v49   ;;  %327 = vperm.xlu0 %3517, %v85_v50   ;;  %v178_v49 = vld [vmem:[%s6328_s7 + $0x78] sm:$0xff]  ;;  %v179_v50 = vld [vmem:[%s6329_s8] sm:$0xff] }
  0x3c   :  { %3415 = vmatpush3.bf16.msra.mxu0 %v2014_v44  ;;  %v172_v44 = vld [vmem:[%s6328_s7 + $0x48] sm:$0xff] }
  0x3d   :  { %3416 = vmatprep.subr.bf16.mxu0 %v2013_v51 }
  0x3e   :  { %322 = vperm.xlu1 %3518, %v84_v54   ;;  %317 = vperm.xlu0 %3517, %v83_v55   ;;  %v183_v54 = vld [vmem:[%s6329_s8 + $0x20] sm:$0xff]  ;;  %v185_v55 = vld [vmem:[%s6329_s8 + $0x30] sm:$0xff] }
  0x3f   :  { %3321 = vmatmul.mubr.bf16.gmra.mxu0 %v4168_v56 }
  0x40   :  { %3324 = vmatprep.mubr.bf16.mxu0 %v4173_v57  ;;  %3417 = vmatpush3.bf16.msra.mxu0 %v2013_v51  ;;  %v181_v51 = vld [vmem:[%s6329_s8 + $0x10] sm:$0xff] }
  0x41   :  { %3418 = vmatprep.subr.bf16.mxu0 %v2012_v58 }
  0x42   :  { %707 = vperm.xlu1 %3518, %v116_v59   ;;  %702 = vperm.xlu0 %3517, %v115_v60   ;;  %v186_v59 = vld [vmem:[%s6329_s8 + $0x38] sm:$0xff]  ;;  %v189_v60 = vld [vmem:[%s6329_s8 + $0x50] sm:$0xff] }
  0x44   :  { %3419 = vmatpush3.bf16.msra.mxu0 %v2012_v58  ;;  %v187_v58 = vld [vmem:[%s6329_s8 + $0x40] sm:$0xff] }
  0x46   :  { %717 = vperm.xlu1 %3518, %v118_v61   ;;  %712 = vperm.xlu0 %3517, %v117_v62   ;;  %v188_v61 = vld [vmem:[%s6329_s8 + $0x48] sm:$0xff]  ;;  %v191_v62 = vld [vmem:[%s6329_s8 + $0x60] sm:$0xff] }
  0x47   :  { %3325 = vmatmul.mubr.bf16.gmra.mxu0 %v4192_v63 }
  0x48   :  { %3328 = vmatprep.mubr.bf16.mxu0 %v4197_v0 }
  0x4a   :  { %727 = vperm.xlu1 %3518, %v120_v1   ;;  %722 = vperm.xlu0 %3517, %v119_v2  }
  0x4e   :  { %737 = vperm.xlu1 %3518, %v122_v3   ;;  %732 = vperm.xlu0 %3517, %v121_v4  }
  0x4f   :  { %3329 = vmatmul.mubr.bf16.gmra.mxu0 %v4216_v5 }
  0x50   :  { %3332 = vmatprep.mubr.bf16.mxu0 %v4221_v6 }
  0x52   :  { %747 = vperm.xlu1 %3518, %v124_v7   ;;  %742 = vperm.xlu0 %3517, %v123_v8  }
  0x56   :  { %757 = vperm.xlu1 %3518, %v126_v11   ;;  %752 = vperm.xlu0 %3517, %v125_v12  }
  0x57   :  { %3333 = vmatmul.mubr.bf16.gmra.mxu0 %v4240_v13 }
  0x58   :  { %3336 = vmatprep.mubr.bf16.mxu0 %v4245_v14 }
  0x5a   :  { %767 = vperm.xlu1 %3518, %v128_v15   ;;  %762 = vperm.xlu0 %3517, %v127_v16  }
  0x5e   :  { %777 = vperm.xlu1 %3518, %v130_v17   ;;  %772 = vperm.xlu0 %3517, %v129_v18  }
  0x5f   :  { %3337 = vmatmul.mubr.bf16.gmra.mxu0 %v4264_v19 }
  0x60   :  { %3420 = vmatprep.mubr.bf16.mxu0 %v3991_v34  ;;  %v151_v34 = vld [vmem:[%s6327_s6 + $0x20] sm:$0xff] }
  0x62   :  { %948 = vperm.xlu1 %3518, %v148_v20   ;;  %943 = vperm.xlu0 %3517, %v147_v21  }
  0x66   :  { %958 = vperm.xlu1 %3518, %v150_v22   ;;  %953 = vperm.xlu0 %3517, %v149_v23  }
  0x67   :  { %3421 = vmatmul.mubr.bf16.vlgmr.msra.gmra.mxu0 %v4066_v9  ;;  %v153_v9 = vld [vmem:[%s6327_s6 + $0x30] sm:$0xff] }
  0x68   :  { %3424 = vmatprep.mubr.bf16.mxu0 %v4071_v10  ;;  %v155_v10 = vld [vmem:[%s6327_s6 + $0x40] sm:$0xff] }
  0x6a   :  { %968 = vperm.xlu1 %3518, %v152_v24   ;;  %963 = vperm.xlu0 %3517, %v151_v34  }
  0x6e   :  { %978 = vperm.xlu1 %3518, %v154_v27   ;;  %973 = vperm.xlu0 %3517, %v153_v9  }
  0x6f   :  { %3425 = vmatmul.mubr.bf16.gmra.mxu0 %v4102_v25  ;;  %v157_v25 = vld [vmem:[%s6327_s6 + $0x50] sm:$0xff] }
  0x70   :  { %3428 = vmatprep.mubr.bf16.mxu0 %v4107_v26  ;;  %v159_v26 = vld [vmem:[%s6327_s6 + $0x60] sm:$0xff] }
  0x72   :  { %988 = vperm.xlu1 %3518, %v156_v28   ;;  %983 = vperm.xlu0 %3517, %v155_v10  }
  0x76   :  { %998 = vperm.xlu1 %3518, %v158_v29   ;;  %993 = vperm.xlu0 %3517, %v157_v25  }
  0x77   :  { %3429 = vmatmul.mubr.bf16.gmra.mxu0 %v4138_v42  ;;  %v170_v42 = vld [vmem:[%s6328_s7 + $0x38] sm:$0xff] }
  0x78   :  { %3432 = vmatprep.mubr.bf16.mxu0 %v4143_v43  ;;  %v173_v43 = vld [vmem:[%s6328_s7 + $0x50] sm:$0xff] }
  0x7a   :  { %1008 = vperm.xlu1 %3518, %v160_v30   ;;  %1003 = vperm.xlu0 %3517, %v159_v26  }
  0x7d   :  { %v4427_v1 = vpop.permute.xlu1 %247  ;;  %v4429_v2 = vpop.permute.xlu0 %237 }
  0x7e   :  { %1018 = vperm.xlu1 %3518, %v162_v31   ;;  %1013 = vperm.xlu0 %3517, %v161_v32  }
  0x7f   :  { %3433 = vmatmul.mubr.bf16.gmra.mxu0 %v4168_v56  ;;  %v4400_v56 = vld [vmem:[%s6330_s3] sm:$0xff]  }
  0x80   :  { %3436 = vmatprep.mubr.bf16.mxu0 %v4173_v57  ;;  %v184_v57 = vld [vmem:[%s6329_s8 + $0x28] sm:$0xff]  ;;  %3356 = vmatprep.mubr.bf16.mxu1 %v4400_v56 }
  0x81   :  { %v4431_v3 = vpop.permute.xlu1 %252  ;;  %v4433_v4 = vpop.permute.xlu0 %242 }
  0x82   :  { %1661 = vperm.xlu1 %3518, %v163_v33   ;;  %1666 = vperm.xlu0 %3517, %v164_v35  }
  0x85   :  { %v4439_v7 = vpop.permute.xlu1 %312  ;;  %v4443_v11 = vpop.permute.xlu0 %307 }
  0x86   :  { %1671 = vperm.xlu1 %3518, %v165_v36   ;;  %1681 = vperm.xlu0 %3517, %v167_v37  }
  0x87   :  { %3437 = vmatmul.mubr.bf16.gmra.mxu0 %v4192_v63  ;;  %v190_v63 = vld [vmem:[%s6329_s8 + $0x58] sm:$0xff] }
  0x88   :  { %3440 = vmatprep.mubr.bf16.mxu0 %v4197_v0  ;;  %v192_v0 = vld [vmem:[%s6329_s8 + $0x68] sm:$0xff] }
  0x89   :  { %v4449_v16 = vpop.permute.xlu0 %297 }
  0x8a   :  { %1676 = vperm.xlu1 %3518, %v166_v38   ;;  %1691 = vperm.xlu0 %3517, %v169_v39  }
  0x8d   :  { %v4453_v21 = vpop.permute.xlu0 %287 }
  0x8e   :  { %1686 = vperm.xlu1 %3518, %v168_v40   ;;  %1701 = vperm.xlu0 %3517, %v171_v41  }
  0x8f   :  { %3441 = vmatmul.mubr.bf16.gmra.mxu0 %v4216_v5 }
  0x90   :  { %3444 = vmatprep.mubr.bf16.mxu0 %v4221_v6 }
  0x91   :  { %v4457_v27 = vpop.permute.xlu0 %277 }
  0x92   :  { %1696 = vperm.xlu1 %3518, %v170_v42   ;;  %1711 = vperm.xlu0 %3517, %v173_v43  }
  0x95   :  { %v4464_v31 = vpop.permute.xlu0 %267 }
  0x96   :  { %1706 = vperm.xlu1 %3518, %v172_v44   ;;  %1721 = vperm.xlu0 %3517, %v175_v45  }
  0x97   :  { %3445 = vmatmul.mubr.bf16.gmra.mxu0 %v4240_v13 }
  0x98   :  { %3448 = vmatprep.mubr.bf16.mxu0 %v4245_v14  ;;  %v4447_v14 = vpop.permute.xlu1 %302 }
  0x9a   :  { %1716 = vperm.xlu1 %3518, %v174_v46   ;;  %1731 = vperm.xlu0 %3517, %v177_v47  }
  0x9e   :  { %1726 = vperm.xlu1 %3518, %v176_v48   ;;  %1736 = vperm.xlu0 %3517, %v178_v49   ;;  %v4476_v48 = vpop.permute.xlu0 %257 }
  0x9f   :  { %3449 = vmatmul.mubr.bf16.gmra.mxu0 %v4264_v19  ;;  %v4451_v19 = vpop.permute.xlu1 %292 }
  0xa2   :  { %1789 = vperm.xlu1 %3518, %v179_v50   ;;  %1799 = vperm.xlu0 %3517, %v181_v51  }
  0xa3   :  { %v4455_v24 = vpop.permute.xlu1 %282 }
  0xa6   :  { %1794 = vperm.xlu1 %3518, %v180_v52   ;;  %1804 = vperm.xlu0 %3517, %v182_v53  }
  0xa7   :  { %v4460_v29 = vpop.permute.xlu1 %272 }
  0xaa   :  { %1809 = vperm.xlu1 %3518, %v183_v54   ;;  %1819 = vperm.xlu0 %3517, %v185_v55  }
  0xab   :  { %v4471_v43 = vpop.permute.xlu1 %262 }
  0xae   :  { %1814 = vperm.xlu1 %3518, %v184_v57   ;;  %1829 = vperm.xlu0 %3517, %v187_v58  }
  0xaf   :  { %v4484_v57 = vpop.permute.xlu1 %392 }
  0xb2   :  { %1824 = vperm.xlu1 %3518, %v186_v59   ;;  %1839 = vperm.xlu0 %3517, %v189_v60  }
  0xb6   :  { %1834 = vperm.xlu1 %3518, %v188_v61   ;;  %1849 = vperm.xlu0 %3517, %v191_v62   ;;  %v4489_v61 = vpop.permute.xlu0 %387 }
  0xba   :  { %1844 = vperm.xlu1 %3518, %v190_v63  }
  0xbe   :  { %1854 = vperm.xlu1 %3518, %v192_v0  }
  0xe7   :  { %v4435_v5 = vpop.f32.mrf.mxu0 }
  0xe9   :  { %v4437_v6 = vpop.f32.mrf.mxu0 }
  0xeb   :  { %v4441_v8 = vpop.f32.mrf.mxu0 }
  0xed   :  { %v4445_v12 = vpop.f32.mrf.mxu0 }
  0xef   :  { %v3314_v13 = vpop.f32.mrf.mxu0 }
  0xf0   :  { %v550_v59 = vadd.f32 %v3314_v13, %v4464_v31 }
  0xf1   :  { %v541_v15 = vpop.f32.mrf.mxu0 }
  0xf3   :  { %v3315_v17 = vpop.f32.mrf.mxu0 }
  0xf4   :  { %v553_v53 = vadd.f32 %v3315_v17, %v4460_v29 }
  0xf5   :  { %v544_v18 = vpop.f32.mrf.mxu0 }
  0xf6   :  { %v659_v63 = vmax.f32 %v553_v53, 0.0  ;;  %v545_v0 = vadd.f32 %v544_v18, %v4471_v43 }
  0xf7   :  { %v3318_v20 = vpop.f32.mrf.mxu0 }
  0xf8   :  { %v566_v39 = vadd.f32 %v3318_v20, %v4453_v21 }
  0xf9   :  { %v557_v22 = vpop.f32.mrf.mxu0 }
  0xfa   :  { %v662_v50 = vmax.f32 %v566_v39, 0.0  ;;  %v558_v51 = vadd.f32 %v557_v22, %v4457_v27  ;;  %v658_v22 = vmax.f32 %v550_v59, 0.0  ;;  %v526_v39 = vadd.f32 %v4437_v6, %v4429_v2 }
  0xfb   :  { %v3319_v23 = vpop.f32.mrf.mxu0 }
  0xfc   :  { %v569_v33 = vadd.f32 %v3319_v23, %v4451_v19  ;;  %v660_v60 = vmax.f32 %v558_v51, 0.0  ;;  %v542_v23 = vadd.f32 %v541_v15, %v4476_v48 }
  0xfd   :  { %v560_v34 = vpop.f32.mrf.mxu0 }
  0xfe   :  { %v663_v45 = vmax.f32 %v569_v33, 0.0  ;;  %v561_v46 = vadd.f32 %v560_v34, %v4455_v24  ;;  %v4497_v34 = vpop.permute.xlu1 %382  ;;  %v529_v33 = vadd.f32 %v4445_v12, %v4433_v4 }
  0xff   :  { %v3322_v9 = vpop.f32.mrf.mxu0 }
 0x100   :  { %v582_v10 = vadd.f32 %v3322_v9, %v4443_v11  ;;  %v689_v54 = vpack.c.bf16 %v663_v45, %v662_v50  ;;  %v661_v55 = vmax.f32 %v561_v46, 0.0  ;;  %v537_v9 = vadd.f32 %v4441_v8, %v4431_v3 }
 0x101   :  { %v573_v28 = vpop.f32.mrf.mxu0  ;;  %v652_v46 = vmax.f32 %v526_v39, 0.0 }
 0x102   :  { %v574_v30 = vadd.f32 %v573_v28, %v4449_v16  ;;  %v666_v35 = vmax.f32 %v582_v10, 0.0  ;;  %v688_v20 = vpack.c.bf16 %v661_v55, %v660_v60  ;;  %v687_v28 = vpack.c.bf16 %v659_v63, %v658_v22  ;;  %v4527_v22 = vld [vmem:[%s6330_s3 + $0x8] sm:$0xff]  }
 0x103   :  { %v3323_v25 = vpop.f32.mrf.mxu0  ;;  %v657_v10 = vmax.f32 %v545_v0, 0.0 }
 0x104   :  { %v585_v26 = vadd.f32 %v3323_v25, %v4439_v7  ;;  %v664_v40 = vmax.f32 %v574_v30, 0.0  ;;  %v4503_v25 = vpop.permute.xlu0 %377  ;;  %v534_v30 = vadd.f32 %v4435_v5, %v4427_v1 }
 0x105   :  { %v576_v32 = vpop.f32.mrf.mxu0 }
 0x106   :  { %v667_v36 = vmax.f32 %v585_v26, 0.0  ;;  %v577_v37 = vadd.f32 %v576_v32, %v4447_v14  ;;  %v656_v26 = vmax.f32 %v542_v23, 0.0  ;;  %v655_v32 = vmax.f32 %v537_v9, 0.0 }
 0x107   :  { %v4468_v38 = vpop.f32.mrf.mxu0 }
 0x108   :  { %v665_v41 = vmax.f32 %v577_v37, 0.0  ;;  %v691_v42 = vpack.c.bf16 %v667_v36, %v666_v35  ;;  %v686_v35 = vpack.c.bf16 %v657_v10, %v656_v26  ;;  %v4509_v36 = vpop.permute.xlu1 %372  ;;  %v654_v37 = vmax.f32 %v534_v30, 0.0 }
 0x109   :  { %v4473_v44 = vpop.f32.mrf.mxu0 }
 0x10a   :  { %v690_v47 = vpack.c.bf16 %v665_v41, %v664_v40  ;;  %3340 = vmatprep.subr.bf16.mxu1 %v691_v42  ;;  %v4513_v40 = vpop.permute.xlu0 %367  ;;  %v685_v41 = vpack.c.bf16 %v655_v32, %v654_v37 }
 0x10b   :  { %v4478_v49 = vpop.f32.mrf.mxu0  ;;  %3341 = vmatpush3.bf16.msra.mxu1 %v691_v42  ;;  %v653_v42 = vmax.f32 %v529_v33, 0.0 }
 0x10c   :  { %3342 = vmatprep.subr.bf16.mxu1 %v690_v47  ;;  %v4515_v12 = vpop.permute.xlu1 %362 }
 0x10d   :  { %v4481_v52 = vpop.f32.mrf.mxu0  ;;  %v684_v50 = vpack.c.bf16 %v653_v42, %v652_v46 }
 0x10e   :  { %v4518_v53 = vpop.permute.xlu0 %357 }
 0x10f   :  { %v4486_v58 = vpop.f32.mrf.mxu0  ;;  %3343 = vmatpush3.bf16.msra.mxu1 %v690_v47 }
 0x110   :  { %3344 = vmatprep.subr.bf16.mxu1 %v689_v54  ;;  %v4529_v23 = vpop.permute.xlu1 %352 }
 0x111   :  { %v4491_v62 = vpop.f32.mrf.mxu0 }
 0x112   :  { %v4539_v33 = vpop.permute.xlu0 %347 }
 0x113   :  { %v4494_v17 = vpop.f32.mrf.mxu0  ;;  %3345 = vmatpush3.bf16.msra.mxu1 %v689_v54 }
 0x114   :  { %3346 = vmatprep.subr.bf16.mxu1 %v688_v20 }
 0x115   :  { %v4499_v13 = vpop.f32.mrf.mxu0 }
 0x117   :  { %v3334_v18 = vpop.f32.mrf.mxu0  ;;  %3347 = vmatpush3.bf16.msra.mxu1 %v688_v20 }
 0x118   :  { %3348 = vmatprep.subr.bf16.mxu1 %v687_v28  ;;  %v630_v10 = vadd.f32 %v3334_v18, %v4513_v40 }
 0x119   :  { %v621_v15 = vpop.f32.mrf.mxu0 }
 0x11a   :  { %v678_v18 = vmax.f32 %v630_v10, 0.0  ;;  %v622_v42 = vadd.f32 %v621_v15, %v4518_v53  ;;  %v4567_v15 = vld [vmem:[%s6330_s3 + $0x20] sm:$0xff]  }
 0x11b   :  { %v3335_v8 = vpop.f32.mrf.mxu0  ;;  %3349 = vmatpush3.bf16.msra.mxu1 %v687_v28  ;;  %v4536_v28 = vld [vmem:[%s6330_s3 + $0x10] sm:$0xff]  }
 0x11c   :  { %3350 = vmatprep.subr.bf16.mxu1 %v686_v35  ;;  %v633_v60 = vadd.f32 %v3335_v8, %v4509_v36 }
 0x11d   :  { %v624_v5 = vpop.f32.mrf.mxu0 }
 0x11e   :  { %v679_v8 = vmax.f32 %v633_v60, 0.0  ;;  %v625_v37 = vadd.f32 %v624_v5, %v4515_v12  ;;  %v617_v5 = vadd.f32 %v4494_v17, %v4529_v23  ;;  %v614_v17 = vadd.f32 %v4486_v58, %v4539_v33 }
 0x11f   :  { %v3338_v45 = vpop.f32.mrf.mxu0  ;;  %3351 = vmatpush3.bf16.msra.mxu1 %v686_v35 }
 0x120   :  { %3352 = vmatprep.subr.bf16.mxu1 %v685_v41  ;;  %v646_v51 = vadd.f32 %v3338_v45, %v4489_v61  ;;  %v4549_v45 = vpop.permute.xlu1 %342  ;;  %v675_v60 = vmax.f32 %v617_v5, 0.0 }
 0x121   :  { %v637_v47 = vpop.f32.mrf.mxu0 }
 0x122   :  { %v638_v6 = vadd.f32 %v637_v47, %v4503_v25  ;;  %v682_v63 = vmax.f32 %v646_v51, 0.0  ;;  %v697_v47 = vpack.c.bf16 %v679_v8, %v678_v18  ;;  %v4558_v51 = vld [vmem:[%s6330_s3 + $0x18] sm:$0xff]  }
 0x123   :  { %v3339_v54 = vpop.f32.mrf.mxu0  ;;  %3353 = vmatpush3.bf16.msra.mxu1 %v685_v41 }
 0x124   :  { %v649_v55 = vadd.f32 %v3339_v54, %v4484_v57  ;;  %3354 = vmatprep.subr.bf16.mxu1 %v684_v50  ;;  %v680_v30 = vmax.f32 %v638_v6, 0.0  ;;  %v4560_v54 = vpop.permute.xlu0 %337 }
 0x125   :  { %v640_v59 = vpop.f32.mrf.mxu0  ;;  %v606_v58 = vadd.f32 %v4491_v62, %v4560_v54  ;;  %v4597_v62 = vld [vmem:[%s6330_s3 + $0x30] sm:$0xff]  }
 0x126   :  { %v683_v0 = vmax.f32 %v649_v55, 0.0  ;;  %v641_v20 = vadd.f32 %v640_v59, %v4497_v34  ;;  %v676_v55 = vmax.f32 %v622_v42, 0.0  ;;  %6483 = vst [vmem:[#allocation3_spill] sm:$0xff] %v4597_v62 }
 0x127   :  { %3355 = vmatpush3.bf16.msra.mxu1 %v684_v50  ;;  %v4531_v9 = vpop.f32.mrf.mxu0  ;;  %v677_v50 = vmax.f32 %v625_v37, 0.0  ;;  %v672_v5 = vmax.f32 %v606_v58, 0.0 }
 0x128   :  { %v699_v26 = vpack.c.bf16 %v683_v0, %v682_v63  ;;  %v681_v32 = vmax.f32 %v641_v20, 0.0  ;;  %v609_v63 = vadd.f32 %v4499_v13, %v4549_v45  ;;  %v4576_v20 = vpop.permute.xlu1 %332 }
 0x129   :  { %v4541_v35 = vpop.f32.mrf.mxu0  ;;  %v696_v0 = vpack.c.bf16 %v677_v50, %v676_v55  ;;  %v601_v13 = vadd.f32 %v4478_v49, %v4576_v20 }
 0x12a   :  { %v698_v39 = vpack.c.bf16 %v681_v32, %v680_v30  ;;  %3357 = vmatmul.mubr.bf16.vlgmr.msra.gmra.mxu1 %v4527_v22  ;;  %3372 = vmatprep.subr.bf16.mxu1 %v699_v26  ;;  %v674_v30 = vmax.f32 %v614_v17, 0.0  ;;  %v673_v37 = vmax.f32 %v609_v63, 0.0 }
 0x12b   :  { %3373 = vmatpush3.bf16.msra.mxu1 %v699_v26  ;;  %v4545_v41 = vpop.f32.mrf.mxu0  ;;  %3360 = vmatprep.mubr.bf16.mxu1 %v4536_v28  ;;  %v4583_v26 = vpop.permute.xlu0 %327  ;;  %v671_v50 = vmax.f32 %v601_v13, 0.0 }
 0x12c   :  { %3374 = vmatprep.subr.bf16.mxu1 %v698_v39  ;;  %v695_v8 = vpack.c.bf16 %v675_v60, %v674_v30  ;;  %v598_v42 = vadd.f32 %v4468_v38, %v4583_v26  ;;  %v4601_v49 = vpop.permute.xlu1 %322  ;;  %v694_v55 = vpack.c.bf16 %v673_v37, %v672_v5 }
 0x12d   :  { %v4551_v46 = vpop.f32.mrf.mxu0  ;;  %v593_v17 = vadd.f32 %v4481_v52, %v4601_v49  ;;  %v4614_v52 = vld [vmem:[%s6330_s3 + $0x38] sm:$0xff]  }
 0x12f   :  { %3375 = vmatpush3.bf16.msra.mxu1 %v698_v39  ;;  %v4562_v6 = vpop.f32.mrf.mxu0  ;;  %v4592_v39 = vld [vmem:[%s6330_s3 + $0x28] sm:$0xff]   ;;  %v4606_v60 = vpop.permute.xlu0 %317  ;;  %v669_v13 = vmax.f32 %v593_v17, 0.0 }
 0x130   :  { %3376 = vmatprep.subr.bf16.mxu1 %v697_v47  ;;  %6482 = vst [vmem:[#allocation2_spill] sm:$0xff] %v4592_v39  ;;  %6484 = vst [vmem:[#allocation4_spill] sm:$0xff] %v4606_v60  ;;  %v590_v38 = vadd.f32 %v4473_v44, %v4606_v60 }
 0x131   :  { %v4571_v59 = vpop.f32.mrf.mxu0 }
 0x132   :  { %3361 = vmatmul.mubr.bf16.gmra.mxu1 %v4558_v51 }
 0x133   :  { %3377 = vmatpush3.bf16.msra.mxu1 %v697_v47  ;;  %v4578_v10 = vpop.f32.mrf.mxu0  ;;  %3364 = vmatprep.mubr.bf16.mxu1 %v4567_v15 }
 0x134   :  { %3378 = vmatprep.subr.bf16.mxu1 %v696_v0 }
 0x135   :  { %v4585_v32 = vpop.f32.mrf.mxu0 }
 0x137   :  { %3379 = vmatpush3.bf16.msra.mxu1 %v696_v0  ;;  %v3430_v18 = vpop.f32.mrf.mxu0  ;;  %v670_v0 = vmax.f32 %v598_v42, 0.0  ;;  %v668_v42 = vmax.f32 %v590_v38, 0.0 }
 0x138   :  { %3380 = vmatprep.subr.bf16.mxu1 %v695_v8 }
 0x139   :  { %v2086_v47 = vpop.f32.mrf.mxu0  ;;  %v693_v58 = vpack.c.bf16 %v671_v50, %v670_v0  ;;  %v692_v44 = vpack.c.bf16 %v669_v13, %v668_v42 }
 0x13a   :  { %3365 = vmatmul.mubr.bf16.gmra.mxu1 %v4592_v39 }
 0x13b   :  { %3381 = vmatpush3.bf16.msra.mxu1 %v695_v8  ;;  %v3431_v63 = vpop.f32.mrf.mxu0  ;;  %3368 = vmatprep.mubr.bf16.mxu1 %v4597_v62  ;;  %v4619_v8 = vld [vmem:[%s6331_s5] sm:$0xff]  }
 0x13c   :  { %3382 = vmatprep.subr.bf16.mxu1 %v694_v55  ;;  %v2098_v62 = vadd.f32 %v3431_v63, %v4451_v19 }
 0x13d   :  { %v2089_v30 = vpop.f32.mrf.mxu0 }
 0x13e   :  { %v2090_v42 = vadd.f32 %v2089_v30, %v4455_v24  ;;  %v4656_v30 = vld [vmem:[%s6331_s5 + $0x18] sm:$0xff]  }
 0x13f   :  { %3383 = vmatpush3.bf16.msra.mxu1 %v694_v55  ;;  %v3434_v37 = vpop.f32.mrf.mxu0 }
 0x140   :  { %3384 = vmatprep.subr.bf16.mxu1 %v693_v58  ;;  %v2111_v60 = vadd.f32 %v3434_v37, %v4443_v11  ;;  %v4631_v11 = vld [vmem:[%s6331_s5 + $0x8] sm:$0xff]   ;;  %v2190_v24 = vmax.f32 %v2090_v42, 0.0  ;;  %v2058_v42 = vadd.f32 %v4551_v46, %v4433_v4 }
 0x141   :  { %v2102_v5 = vpop.f32.mrf.mxu0 }
 0x142   :  { %3369 = vmatmul.mubr.bf16.gmra.mxu1 %v4614_v52  ;;  %v2103_v17 = vadd.f32 %v2102_v5, %v4449_v16  ;;  %v2195_v38 = vmax.f32 %v2111_v60, 0.0  ;;  %v2095_v16 = vadd.f32 %v3430_v18, %v4453_v21  ;;  %v2087_v21 = vadd.f32 %v2086_v47, %v4457_v27  ;;  %v4663_v27 = vld [vmem:[%s6331_s5 + $0x20] sm:$0xff]  }
 0x143   :  { %3385 = vmatpush3.bf16.msra.mxu1 %v693_v58  ;;  %v3435_v50 = vpop.f32.mrf.mxu0  ;;  %3388 = vmatprep.mubr.bf16.mxu1 %v4619_v8  ;;  %v2082_v18 = vadd.f32 %v4578_v10, %v4460_v29  ;;  %v2079_v47 = vadd.f32 %v4562_v6, %v4464_v31  ;;  %v2071_v31 = vadd.f32 %v4571_v59, %v4476_v48 }
 0x144   :  { %v2114_v55 = vadd.f32 %v3435_v50, %v4439_v7  ;;  %3386 = vmatprep.subr.bf16.mxu1 %v692_v44  ;;  %v4638_v7 = vld [vmem:[%s6331_s5 + $0x10] sm:$0xff]   ;;  %v2193_v19 = vmax.f32 %v2103_v17, 0.0  ;;  %v2191_v50 = vmax.f32 %v2095_v16, 0.0  ;;  %v2063_v48 = vadd.f32 %v4531_v9, %v4427_v1 }
 0x145   :  { %v2105_v0 = vpop.f32.mrf.mxu0  ;;  %v2188_v10 = vmax.f32 %v2082_v18, 0.0  ;;  %v2187_v16 = vmax.f32 %v2079_v47, 0.0  ;;  %v2185_v59 = vmax.f32 %v2071_v31, 0.0  ;;  %v2055_v18 = vadd.f32 %v4541_v35, %v4429_v2 }
 0x146   :  { %v2196_v39 = vmax.f32 %v2114_v55, 0.0  ;;  %v2106_v13 = vadd.f32 %v2105_v0, %v4447_v14  ;;  %v2192_v14 = vmax.f32 %v2098_v62, 0.0  ;;  %v2189_v55 = vmax.f32 %v2087_v21, 0.0 }
 0x147   :  { %3387 = vmatpush3.bf16.msra.mxu1 %v692_v44  ;;  %v4633_v58 = vpop.f32.mrf.mxu0  ;;  %v2074_v0 = vadd.f32 %v4585_v32, %v4471_v43  ;;  %v4684_v32 = vld [vmem:[%s6331_s5 + $0x28] sm:$0xff]   ;;  %v2183_v21 = vmax.f32 %v2063_v48, 0.0  ;;  %v2181_v46 = vmax.f32 %v2055_v18, 0.0 }
 0x148   :  { %v2220_v60 = vpack.c.bf16 %v2196_v39, %v2195_v38  ;;  %v2194_v63 = vmax.f32 %v2106_v13, 0.0  ;;  %v2218_v62 = vpack.c.bf16 %v2192_v14, %v2191_v50  ;;  %v2217_v38 = vpack.c.bf16 %v2190_v24, %v2189_v55  ;;  %v4689_v14 = vld [vmem:[%s6331_s5 + $0x30] sm:$0xff]   ;;  %v4702_v24 = vld [vmem:[%s6331_s5 + $0x38] sm:$0xff]  }
 0x149   :  { %v4641_v37 = vpop.f32.mrf.mxu0  ;;  %v2186_v43 = vmax.f32 %v2074_v0, 0.0 }
 0x14a   :  { %v2219_v5 = vpack.c.bf16 %v2194_v63, %v2193_v19  ;;  %3389 = vmatmul.mubr.bf16.vlgmr.msra.gmra.mxu1 %v4631_v11  ;;  %3452 = vmatprep.subr.bf16.mxu1 %v2220_v60  ;;  %v2066_v19 = vadd.f32 %v4545_v41, %v4431_v3 }
 0x14b   :  { %v4645_v44 = vpop.f32.mrf.mxu0  ;;  %3453 = vmatpush3.bf16.msra.mxu1 %v2220_v60  ;;  %3392 = vmatprep.mubr.bf16.mxu1 %v4638_v7  ;;  %v2216_v60 = vpack.c.bf16 %v2188_v10, %v2187_v16 }
 0x14c   :  { %3454 = vmatprep.subr.bf16.mxu1 %v2219_v5  ;;  %v2184_v41 = vmax.f32 %v2066_v19, 0.0 }
 0x14d   :  { %v4649_v39 = vpop.f32.mrf.mxu0 }
 0x14e   :  { %v2214_v9 = vpack.c.bf16 %v2184_v41, %v2183_v21 }
 0x14f   :  { %v4658_v17 = vpop.f32.mrf.mxu0  ;;  %3455 = vmatpush3.bf16.msra.mxu1 %v2219_v5  ;;  %v2215_v5 = vpack.c.bf16 %v2186_v43, %v2185_v59 }
 0x150   :  { %3456 = vmatprep.subr.bf16.mxu1 %v2218_v62 }
 0x151   :  { %v4667_v29 = vpop.f32.mrf.mxu0 }
 0x152   :  { %3393 = vmatmul.mubr.bf16.gmra.mxu1 %v4656_v30 }
 0x153   :  { %v4672_v13 = vpop.f32.mrf.mxu0  ;;  %3457 = vmatpush3.bf16.msra.mxu1 %v2218_v62  ;;  %3396 = vmatprep.mubr.bf16.mxu1 %v4663_v27  ;;  %v2182_v62 = vmax.f32 %v2058_v42, 0.0 }
 0x154   :  { %3458 = vmatprep.subr.bf16.mxu1 %v2217_v38 }
 0x155   :  { %v4677_v6 = vpop.f32.mrf.mxu0  ;;  %v2213_v55 = vpack.c.bf16 %v2182_v62, %v2181_v46 }
 0x157   :  { %v3446_v63 = vpop.f32.mrf.mxu0  ;;  %3459 = vmatpush3.bf16.msra.mxu1 %v2217_v38 }
 0x158   :  { %3460 = vmatprep.subr.bf16.mxu1 %v2216_v60 }
 0x159   :  { %v2150_v3 = vpop.f32.mrf.mxu0 }
 0x15a   :  { %3397 = vmatmul.mubr.bf16.gmra.mxu1 %v4684_v32 }
 0x15b   :  { %v3447_v50 = vpop.f32.mrf.mxu0  ;;  %3461 = vmatpush3.bf16.msra.mxu1 %v2216_v60  ;;  %3400 = vmatprep.mubr.bf16.mxu1 %v4689_v14 }
 0x15c   :  { %3462 = vmatprep.subr.bf16.mxu1 %v2215_v5  ;;  %v2162_v16 = vadd.f32 %v3447_v50, %v4509_v36  ;;  %v2151_v36 = vadd.f32 %v2150_v3, %v4518_v53  ;;  %v6485_v50 = vld [vmem:[#allocation2_spill] sm:$0xff] }
 0x15d   :  { %v2153_v1 = vpop.f32.mrf.mxu0 }
 0x15e   :  { %v2208_v41 = vmax.f32 %v2162_v16, 0.0  ;;  %v2205_v42 = vmax.f32 %v2151_v36, 0.0 }
 0x15f   :  { %v3450_v4 = vpop.f32.mrf.mxu0  ;;  %3463 = vmatpush3.bf16.msra.mxu1 %v2215_v5  ;;  %v2138_v5 = vadd.f32 %v4677_v6, %v4549_v45  ;;  %v2127_v45 = vadd.f32 %v4633_v58, %v4583_v26 }
 0x160   :  { %3464 = vmatprep.subr.bf16.mxu1 %v2214_v9  ;;  %v2175_v10 = vadd.f32 %v3450_v4, %v4489_v61  ;;  %v2159_v61 = vadd.f32 %v3446_v63, %v4513_v40 }
 0x161   :  { %v2166_v47 = vpop.f32.mrf.mxu0 }
 0x162   :  { %3401 = vmatmul.mubr.bf16.gmra.mxu1 %v4702_v24  ;;  %v2167_v35 = vadd.f32 %v2166_v47, %v4503_v25  ;;  %v2211_v31 = vmax.f32 %v2175_v10, 0.0 }
 0x163   :  { %v3451_v2 = vpop.f32.mrf.mxu0  ;;  %3465 = vmatpush3.bf16.msra.mxu1 %v2214_v9  ;;  %3468 = vmatprep.mubr.bf16.mxu1 %v4400_v56  ;;  %v2154_v56 = vadd.f32 %v2153_v1, %v4515_v12  ;;  %v2143_v12 = vadd.f32 %v4658_v17, %v4539_v33  ;;  %v2130_v33 = vadd.f32 %v4645_v44, %v4576_v20  ;;  %v6487_v20 = vld [vmem:[#allocation4_spill] sm:$0xff] }
 0x164   :  { %v2178_v0 = vadd.f32 %v3451_v2, %v4484_v57  ;;  %3466 = vmatprep.subr.bf16.mxu1 %v2213_v55  ;;  %v2209_v43 = vmax.f32 %v2167_v35, 0.0  ;;  %v2207_v57 = vmax.f32 %v2159_v61, 0.0  ;;  %v2119_v44 = vadd.f32 %v4641_v37, %v6487_v20 }
 0x165   :  { %v2169_v38 = vpop.f32.mrf.mxu0  ;;  %v2206_v63 = vmax.f32 %v2154_v56, 0.0  ;;  %v2203_v53 = vmax.f32 %v2143_v12, 0.0 }
 0x166   :  { %v2212_v19 = vmax.f32 %v2178_v0, 0.0  ;;  %v2170_v60 = vadd.f32 %v2169_v38, %v4497_v34  ;;  %v2146_v34 = vadd.f32 %v4672_v13, %v4529_v23  ;;  %v2226_v40 = vpack.c.bf16 %v2208_v41, %v2207_v57 }
 0x167   :  { %3467 = vmatpush3.bf16.msra.mxu1 %v2213_v55  ;;  %v2135_v23 = vadd.f32 %v4667_v29, %v4560_v54  ;;  %v2202_v13 = vmax.f32 %v2138_v5, 0.0  ;;  %v6486_v54 = vld [vmem:[#allocation3_spill] sm:$0xff]  ;;  %v2199_v29 = vmax.f32 %v2127_v45, 0.0  ;;  %v2197_v26 = vmax.f32 %v2119_v44, 0.0 }
 0x168   :  { %v2228_v48 = vpack.c.bf16 %v2212_v19, %v2211_v31  ;;  %v2210_v59 = vmax.f32 %v2170_v60, 0.0 }
 0x169   :  { %v2201_v6 = vmax.f32 %v2135_v23, 0.0 }
 0x16a   :  { %v2227_v25 = vpack.c.bf16 %v2210_v59, %v2209_v43  ;;  %3469 = vmatmul.mubr.bf16.vlgmr.msra.gmra.mxu1 %v4527_v22  ;;  %3484 = vmatprep.subr.bf16.mxu1 %v2228_v48  ;;  %v2204_v22 = vmax.f32 %v2146_v34, 0.0 }
 0x16b   :  { %3485 = vmatpush3.bf16.msra.mxu1 %v2228_v48  ;;  %3472 = vmatprep.mubr.bf16.mxu1 %v4536_v28  ;;  %v2225_v28 = vpack.c.bf16 %v2206_v63, %v2205_v42  ;;  %v2223_v3 = vpack.c.bf16 %v2202_v13, %v2201_v6 }
 0x16c   :  { %3486 = vmatprep.subr.bf16.mxu1 %v2227_v25  ;;  %v2224_v17 = vpack.c.bf16 %v2204_v22, %v2203_v53 }
 0x16f   :  { %3487 = vmatpush3.bf16.msra.mxu1 %v2227_v25 }
 0x170   :  { %3488 = vmatprep.subr.bf16.mxu1 %v2226_v40 }
 0x172   :  { %3473 = vmatmul.mubr.bf16.gmra.mxu1 %v4558_v51  ;;  %v2200_v51 = vmax.f32 %v2130_v33, 0.0 }
 0x173   :  { %3489 = vmatpush3.bf16.msra.mxu1 %v2226_v40  ;;  %3476 = vmatprep.mubr.bf16.mxu1 %v4567_v15  ;;  %v2122_v15 = vadd.f32 %v4649_v39, %v4601_v49  ;;  %v4745_v49 = vpop.permute.xlu0 %702 }
 0x174   :  { %3490 = vmatprep.subr.bf16.mxu1 %v2225_v28  ;;  %v2222_v21 = vpack.c.bf16 %v2200_v51, %v2199_v29 }
 0x175   :  { %v2198_v18 = vmax.f32 %v2122_v15, 0.0 }
 0x177   :  { %3491 = vmatpush3.bf16.msra.mxu1 %v2225_v28  ;;  %v2221_v58 = vpack.c.bf16 %v2198_v18, %v2197_v26 }
 0x178   :  { %3492 = vmatprep.subr.bf16.mxu1 %v2224_v17 }
 0x17a   :  { %3477 = vmatmul.mubr.bf16.gmra.mxu1 %v6485_v50 }
 0x17b   :  { %3493 = vmatpush3.bf16.msra.mxu1 %v2224_v17  ;;  %3480 = vmatprep.mubr.bf16.mxu1 %v6486_v54 }
 0x17c   :  { %3494 = vmatprep.subr.bf16.mxu1 %v2223_v3 }
 0x17f   :  { %3495 = vmatpush3.bf16.msra.mxu1 %v2223_v3 }
 0x180   :  { %3496 = vmatprep.subr.bf16.mxu1 %v2222_v21 }
 0x182   :  { %3481 = vmatmul.mubr.bf16.gmra.mxu1 %v4614_v52  ;;  %v4747_v52 = vpop.permute.xlu1 %707 }
 0x183   :  { %3497 = vmatpush3.bf16.msra.mxu1 %v2222_v21  ;;  %3500 = vmatprep.mubr.bf16.mxu1 %v4619_v8  ;;  %v4749_v8 = vpop.permute.xlu0 %712 }
 0x184   :  { %3498 = vmatprep.subr.bf16.mxu1 %v2221_v58 }
 0x186   :  { %v4751_v37 = vpop.permute.xlu1 %717 }
 0x187   :  { %3499 = vmatpush3.bf16.msra.mxu1 %v2221_v58 }
 0x18a   :  { %3501 = vmatmul.mubr.bf16.vlgmr.msra.gmra.mxu1 %v4631_v11  ;;  %v4753_v11 = vpop.permute.xlu0 %722 }
 0x18b   :  { %3504 = vmatprep.mubr.bf16.mxu1 %v4638_v7  ;;  %v4755_v7 = vpop.permute.xlu1 %727 }
 0x18e   :  { %v4757_v39 = vpop.permute.xlu0 %732 }
 0x192   :  { %3505 = vmatmul.mubr.bf16.gmra.mxu1 %v4656_v30 }
 0x193   :  { %3508 = vmatprep.mubr.bf16.mxu1 %v4663_v27  ;;  %v4759_v27 = vpop.permute.xlu1 %737 }
 0x197   :  { %v4763_v62 = vpop.permute.xlu1 %747 }
 0x19a   :  { %3509 = vmatmul.mubr.bf16.gmra.mxu1 %v4684_v32  ;;  %v4761_v32 = vpop.permute.xlu0 %742 }
 0x19b   :  { %3512 = vmatprep.mubr.bf16.mxu1 %v4689_v14  ;;  %v4767_v55 = vpop.permute.xlu1 %757 }
 0x19f   :  { %v4777_v31 = vpop.permute.xlu1 %767 }
 0x1a2   :  { %3513 = vmatmul.mubr.bf16.gmra.mxu1 %v4702_v24  ;;  %v4765_v24 = vpop.permute.xlu0 %752 }
 0x1a3   :  { %v4817_v23 = vpop.permute.xlu1 %777 }
 0x1a6   :  { %v4769_v10 = vpop.permute.xlu0 %762 }
 0x1aa   :  { %v4782_v60 = vpop.permute.xlu0 %772 }
 0x1ae   :  { %v4824_v45 = vpop.permute.xlu0 %943 }
 0x1ea   :  { %v3358_v30 = vpop.f32.mrf.mxu1 }
 0x1eb   :  { %v4772_v0 = vadd.f32 %v3358_v30, %v4749_v8 }
 0x1ec   :  { %v862_v14 = vpop.f32.mrf.mxu1 }
 0x1ed   :  { %v4785_v61 = vadd.f32 %v862_v14, %v4745_v49  ;;  %v927_v25 = vmax.f32 %v4772_v0, 0.0 }
 0x1ee   :  { %v3359_v1 = vpop.f32.mrf.mxu1 }
 0x1ef   :  { %v4788_v43 = vadd.f32 %v3359_v1, %v4751_v37  ;;  %v925_v22 = vmax.f32 %v4785_v61, 0.0  ;;  %v1185_v6 = vsel %vm1182_vm0, %v927_v25, -inf }
 0x1f0   :  { %v865_v9 = vpop.f32.mrf.mxu1 }
 0x1f1   :  { %v4801_v57 = vadd.f32 %v865_v9, %v4747_v52  ;;  %v6348_v5 = vmax.f32 %v4788_v43, 0.0  ;;  %v1183_v21 = vsel %vm1182_vm0, %v925_v22, -inf }
 0x1f2   :  { %v3362_v4 = vpop.f32.mrf.mxu1 }
 0x1f3   :  { %v4775_v38 = vadd.f32 %v3362_v4, %v4757_v39  ;;  %v926_v51 = vmax.f32 %v4801_v57, 0.0  ;;  %v1186_v18 = vsel %vm1182_vm0, %v6348_v5, -inf }
 0x1f4   :  { %v878_v46 = vpop.f32.mrf.mxu1 }
 0x1f5   :  { %v4791_v48 = vadd.f32 %v878_v46, %v4753_v11  ;;  %v6344_v36 = vmax.f32 %v4775_v38, 0.0  ;;  %v1184_v46 = vsel %vm1182_vm0, %v926_v51, -inf }
 0x1f6   :  { %v3363_v47 = vpop.f32.mrf.mxu1 }
 0x1f7   :  { %v4780_v19 = vadd.f32 %v3363_v47, %v4759_v27  ;;  %v6347_v28 = vmax.f32 %v4791_v48, 0.0  ;;  %v1191_v15 = vsel %vm1182_vm0, %v6344_v36, -inf  ;;  %v6500_v61 = vmax.f32 %v4791_v48, 0.0 }
 0x1f8   :  { %v881_v2 = vpop.f32.mrf.mxu1  ;;  %v1192_v47 = vmax.f32 %v1185_v6, %v1191_v15  ;;  %v4880_v15 = vpop.permute.xlu0 %953 }
 0x1f9   :  { %v4794_v41 = vadd.f32 %v881_v2, %v4755_v7  ;;  %v6341_v63 = vmax.f32 %v4780_v19, 0.0  ;;  %v1187_v26 = vsel %vm1182_vm0, %v6347_v28, -inf  ;;  %6489 = vst [vmem:[#allocation3_spill] sm:$0xff] %v4880_v15 }
 0x1fa   :  { %v3366_v35 = vpop.f32.mrf.mxu1 }
 0x1fb   :  { %v4805_v34 = vadd.f32 %v3366_v35, %v4765_v24  ;;  %v6345_v33 = vmax.f32 %v4794_v41, 0.0  ;;  %v1193_v54 = vsel %vm1182_vm0, %v6341_v63, -inf }
 0x1fc   :  { %v894_v16 = vpop.f32.mrf.mxu1  ;;  %v1194_v2 = vmax.f32 %v1186_v18, %v1193_v54  ;;  %v1188_v54 = vmax.f32 %v1183_v21, %v1187_v26 }
 0x1fd   :  { %v4809_v12 = vadd.f32 %v894_v16, %v4761_v32  ;;  %v6338_v3 = vmax.f32 %v4805_v34, 0.0  ;;  %v1189_v14 = vsel %vm1182_vm0, %v6345_v33, -inf }
 0x1fe   :  { %v3367_v59 = vpop.f32.mrf.mxu1  ;;  %v1190_v18 = vmax.f32 %v1184_v46, %v1189_v14 }
 0x1ff   :  { %v4797_v56 = vadd.f32 %v3367_v59, %v4767_v55  ;;  %v6339_v29 = vmax.f32 %v4809_v12, 0.0  ;;  %v1199_v35 = vsel %vm1182_vm0, %v6338_v3, -inf  ;;  %v4868_v59 = vpop.permute.xlu1 %948 }
 0x200   :  { %v897_v40 = vpop.f32.mrf.mxu1  ;;  %6488 = vst [vmem:[#allocation2_spill] sm:$0xff] %v4868_v59  ;;  %v1200_v21 = vmax.f32 %v1192_v47, %v1199_v35 }
 0x201   :  { %v4812_v42 = vadd.f32 %v897_v40, %v4763_v62  ;;  %v6337_v17 = vmax.f32 %v4797_v56, 0.0  ;;  %v1195_v40 = vsel %vm1182_vm0, %v6339_v29, -inf }
 0x202   :  { %v3370_v53 = vpop.f32.mrf.mxu1  ;;  %v1196_v26 = vmax.f32 %v1188_v54, %v1195_v40 }
 0x203   :  { %v4822_v13 = vadd.f32 %v3370_v53, %v4782_v60  ;;  %v6340_v20 = vmax.f32 %v4812_v42, 0.0  ;;  %v1201_v1 = vsel %vm1182_vm0, %v6337_v17, -inf  ;;  %v4899_v5 = vpop.permute.xlu1 %958 }
 0x204   :  { %v910_v50 = vpop.f32.mrf.mxu1 }
 0x205   :  { %v4840_v44 = vadd.f32 %v910_v50, %v4769_v10  ;;  %v6342_v58 = vmax.f32 %v4822_v13, 0.0  ;;  %v1197_v53 = vsel %vm1182_vm0, %v6340_v20, -inf }
 0x206   :  { %v3371_v30 = vpop.f32.mrf.mxu1  ;;  %v1198_v14 = vmax.f32 %v1190_v18, %v1197_v53 }
 0x207   :  { %v6343_v9 = vmax.f32 %v4840_v44, 0.0  ;;  %v4860_v4 = vadd.f32 %v3371_v30, %v4817_v23  ;;  %v1202_v30 = vmax.f32 %v1194_v2, %v1201_v1  ;;  %v1207_v17 = vsel %vm1182_vm0, %v6342_v58, -inf }
 0x208   :  { %v913_v16 = vpop.f32.mrf.mxu1  ;;  %v1208_v36 = vmax.f32 %v1200_v21, %v1207_v17 }
 0x209   :  { %v6346_v50 = vmax.f32 %v4860_v4, 0.0  ;;  %v4878_v6 = vadd.f32 %v913_v16, %v4777_v31  ;;  %v1203_v29 = vsel %vm1182_vm0, %v6343_v9, -inf }
 0x20a   :  { %v3390_v3 = vpop.f32.mrf.mxu1  ;;  %v1204_v33 = vmax.f32 %v1196_v26, %v1203_v29  ;;  %v4921_v26 = vpop.permute.xlu1 %968 }
 0x20b   :  { %v1209_v20 = vsel %vm1182_vm0, %v6346_v50, -inf  ;;  %v6349_v16 = vmax.f32 %v4878_v6, 0.0  ;;  %v1112_v63 = vadd.f32 %v3390_v3, %v4880_v15  ;;  %6494 = vst [vmem:[#allocation8_spill] sm:$0xff] %v4921_v26 }
 0x20c   :  { %v1210_v1 = vmax.f32 %v1202_v30, %v1209_v20  ;;  %v1103_v46 = vpop.f32.mrf.mxu1 }
 0x20d   :  { %v1205_v2 = vsel %vm1182_vm0, %v6349_v16, -inf  ;;  %v4896_v58 = vmax.f32 %v1112_v63, 0.0  ;;  %v1104_v9 = vadd.f32 %v1103_v46, %v4824_v45 }
 0x20e   :  { %v1206_v50 = vmax.f32 %v1198_v14, %v1205_v2  ;;  %v3391_v28 = vpop.f32.mrf.mxu1  ;;  %v1212_v47 = vmax.f32 %v1208_v36, %v1210_v1 }
 0x20f   :  { %6490 = vst [vmem:[#allocation4_spill] sm:$0xff] %v4896_v58  ;;  %v4901_v3 = vmax.f32 %v1104_v9, 0.0  ;;  %v1520_v20 = vsel %vm1182_vm0, %v4896_v58, 0.0  ;;  %v1115_v40 = vadd.f32 %v3391_v28, %v4899_v5  ;;  %v1344_v63 = vsel %vm1182_vm0, %v4896_v58, -inf }
 0x210   :  { %v1211_v35 = vmax.f32 %v1204_v33, %v1206_v50  ;;  %1521 = vadd.xlane.f32.xlu1 %v1520_v20  ;;  %v1106_v53 = vpop.f32.mrf.mxu1  ;;  %1345 = vmax.xlane.f32.xlu0 %v1344_v63  ;;  %v6502_v58 = vmax.f32 %v4775_v38, 0.0  ;;  %v6507_v38 = vmax.f32 %v4812_v42, 0.0  ;;  %v6511_v42 = vmax.f32 %v4840_v44, 0.0 }
 0x211   :  { %6491 = vst [vmem:[#allocation5_spill] sm:$0xff] %v4901_v3  ;;  %v1107_v17 = vadd.f32 %v1106_v53, %v4868_v59  ;;  %v1514_v9 = vsel %vm1182_vm0, %v4901_v3, 0.0  ;;  %v4913_v36 = vmax.f32 %v1115_v40, 0.0  ;;  %v1338_v28 = vsel %vm1182_vm0, %v4901_v3, -inf }
 0x212   :  { %v1213_v29 = vmax.f32 %v1211_v35, %v1212_v47  ;;  %v3394_v54 = vpop.f32.mrf.mxu1  ;;  %v4931_v35 = vpop.permute.xlu0 %963 }
 0x213   :  { %v4909_v18 = vmax.f32 %v1107_v17, 0.0  ;;  %6493 = vst [vmem:[#allocation7_spill] sm:$0xff] %v4913_v36  ;;  %v1347_v2 = vsel %vm1182_vm0, %v4913_v36, -inf  ;;  %6495 = vst [vmem:[#allocation9_spill] sm:$0xff] %v4931_v35  ;;  %v1523_v53 = vsel %vm1182_vm0, %v4913_v36, 0.0  ;;  %v4937_v17 = vpop.permute.xlu1 %978  ;;  %v6501_v36 = vmax.f32 %v4794_v41, 0.0 }
 0x214   :  { %v1214_v30 = vrot.slane %v1213_v29, 4  ;;  %v4915_v33 = vpop.f32.mrf.mxu1  ;;  %1515 = vadd.xlane.f32.xlu1 %v1514_v9  ;;  %1339 = vmax.xlane.f32.xlu0 %v1338_v28  ;;  %6496 = vst [vmem:[#allocation10_spill] sm:$0xff] %v4937_v17  ;;  %v6506_v41 = vmax.f32 %v4809_v12, 0.0  ;;  %v6510_v12 = vmax.f32 %v4797_v56, 0.0  ;;  %v6513_v56 = vmax.f32 %v4822_v13, 0.0 }
 0x215   :  { %6492 = vst [vmem:[#allocation6_spill] sm:$0xff] %v4909_v18  ;;  %v1341_v14 = vsel %vm1182_vm0, %v4909_v18, -inf  ;;  %v1120_v13 = vadd.f32 %v4915_v33, %v4931_v35 }
 0x216   :  { %v1215_v50 = vmax.f32 %v1213_v29, %v1214_v30  ;;  %v4919_v21 = vpop.f32.mrf.mxu1  ;;  %v4951_v16 = vpop.permute.xlu0 %973 }
 0x217   :  { %6498 = vst [vmem:[#allocation11_spill] sm:$0xff] %v4951_v16  ;;  %v1128_v57 = vadd.f32 %v3394_v54, %v4951_v16  ;;  %v6504_v54 = vmax.f32 %v4780_v19, 0.0 }
 0x218   :  { %v1216_v1 = vrot.slane %v1215_v50, 2  ;;  %v4925_v46 = vpop.f32.mrf.mxu1  ;;  %1342 = vmax.xlane.f32.xlu1 %v1341_v14  ;;  %1348 = vmax.xlane.f32.xlu0 %v1347_v2 }
 0x21a   :  { %v1217_v20 = vmax.f32 %v1215_v50, %v1216_v1  ;;  %v4929_v47 = vpop.f32.mrf.mxu1  ;;  %v6497_v1 = vmax.f32 %v4788_v43, 0.0 }
 0x21c   :  { %v1218_v40 = vrot.slane %v1217_v20, 1  ;;  %v4933_v63 = vpop.f32.mrf.mxu1  ;;  %1524 = vadd.xlane.f32.xlu0 %v1523_v53 }
 0x21e   :  { %v1219_v29 = vmax.f32 %v1217_v20, %v1218_v40  ;;  %v4939_v9 = vpop.f32.mrf.mxu1  ;;  %v4955_v20 = vpop.permute.xlu1 %988 }
 0x21f   :  { %6499 = vst [vmem:[#allocation12_spill] sm:$0xff] %v4955_v20 }
 0x220   :  { %v1220_v30 = vsub.f32 %v925_v22, %v1219_v29  ;;  %v1221_v28 = vsub.f32 %v926_v51, %v1219_v29  ;;  %v1222_v50 = vsub.f32 %v927_v25, %v1219_v29  ;;  %v4947_v14 = vpop.f32.mrf.mxu1  ;;  %v1223_v2 = vsub.f32 %v6497_v1, %v1219_v29 }
 0x221   :  { %v1224_v22 = vsub.f32 %v6500_v61, %v1219_v29  ;;  %v1225_v43 = vsub.f32 %v6501_v36, %v1219_v29  ;;  %v1226_v59 = vsub.f32 %v6502_v58, %v1219_v29  ;;  %v4968_v61 = vmax.f32 %v1128_v57, 0.0 }
 0x222   :  { %v4953_v53 = vpop.f32.mrf.mxu1  ;;  %v1236_v51 = vmul.f32 1.442695, %v1220_v30  ;;  %v1238_v40 = vmul.f32 1.442695, %v1221_v28  ;;  %v1240_v0 = vmul.f32 1.442695, %v1222_v50  ;;  %v1227_v30 = vsub.f32 %v6504_v54, %v1219_v29  ;;  %v4974_v50 = vpop.permute.xlu1 %998 }
 0x223   :  { %v1242_v1 = vmul.f32 1.442695, %v1223_v2  ;;  %v1244_v48 = vmul.f32 1.442695, %v1224_v22  ;;  %6503 = vst [vmem:[#allocation13_spill] sm:$0xff] %v4968_v61  ;;  %6505 = vst [vmem:[#allocation14_spill] sm:$0xff] %v4974_v50  ;;  %v1228_v36 = vsub.f32 %v6506_v41, %v1219_v29  ;;  %v1229_v58 = vsub.f32 %v6507_v38, %v1219_v29 }
 0x224   :  { %v4960_v25 = vpop.f32.mrf.mxu1  ;;  %3551 = vpow2.f32 %v1236_v51  ;;  %v1246_v2 = vmul.f32 1.442695, %v1225_v43  ;;  %v6508_v22 = vmax.f32 %v4805_v34, 0.0  ;;  %v1248_v19 = vmul.f32 1.442695, %v1226_v59 }
 0x225   :  { %3553 = vpow2.f32 %v1238_v40  ;;  %v1356_v40 = vsel %vm1182_vm0, %v4968_v61, -inf  ;;  %v1231_v54 = vsub.f32 %v6510_v12, %v1219_v29  ;;  %v1232_v41 = vsub.f32 %v6511_v42, %v1219_v29 }
 0x226   :  { %v4964_v3 = vpop.f32.mrf.mxu1  ;;  %3555 = vpow2.f32 %v1240_v0  ;;  %v1230_v57 = vsub.f32 %v6508_v22, %v1219_v29  ;;  %v4986_v0 = vpop.permute.xlu0 %983  ;;  %1357 = vmax.xlane.f32.xlu1 %v1356_v40  ;;  %v1252_v34 = vmul.f32 1.442695, %v1228_v36  ;;  %v1254_v38 = vmul.f32 1.442695, %v1229_v58 }
 0x227   :  { %3557 = vpow2.f32 %v1242_v1  ;;  %6509 = vst [vmem:[#allocation15_spill] sm:$0xff] %v4986_v0  ;;  %v1250_v1 = vmul.f32 1.442695, %v1227_v30  ;;  %v4998_v16 = vpop.permute.xlu1 %1008  ;;  %v1234_v12 = vsub.f32 %v6513_v56, %v1219_v29  ;;  %v6514_v30 = vmax.f32 %v4860_v4, 0.0 }
 0x228   :  { %v4972_v28 = vpop.f32.mrf.mxu1  ;;  %3559 = vpow2.f32 %v1244_v48  ;;  %v6512_v48 = vmax.f32 %v4878_v6, 0.0  ;;  %v1256_v15 = vmul.f32 1.442695, %v1230_v57  ;;  %v1258_v44 = vmul.f32 1.442695, %v1231_v54 }
 0x229   :  { %3561 = vpow2.f32 %v1246_v2  ;;  %v1235_v40 = vsub.f32 %v6514_v30, %v1219_v29  ;;  %v1532_v36 = vsel %vm1182_vm0, %v4968_v61, 0.0  ;;  %v1517_v6 = vsel %vm1182_vm0, %v4909_v18, 0.0 }
 0x22a   :  { %v4980_v51 = vpop.f32.mrf.mxu1  ;;  %v1233_v59 = vsub.f32 %v6512_v48, %v1219_v29  ;;  %3563 = vpow2.f32 %v1248_v19  ;;  %v1260_v58 = vmul.f32 1.442695, %v1232_v41  ;;  %1533 = vadd.xlane.f32.xlu1 %v1532_v36  ;;  %1518 = vadd.xlane.f32.xlu0 %v1517_v6  ;;  %v5012_v4 = vpop.permute.xlu0 %993  ;;  %v1264_v54 = vmul.f32 1.442695, %v1234_v12 }
 0x22b   :  { %3565 = vpow2.f32 %v1250_v1  ;;  %6515 = vst [vmem:[#allocation16_spill] sm:$0xff] %v5012_v4  ;;  %v1131_v1 = vadd.f32 %v4919_v21, %v4937_v17  ;;  %v1266_v41 = vmul.f32 1.442695, %v1235_v40 }
 0x22c   :  { %v4990_v43 = vpop.f32.mrf.mxu1  ;;  %3567 = vpow2.f32 %v1252_v34  ;;  %v1262_v29 = vmul.f32 1.442695, %v1233_v59  ;;  %v5028_v59 = vpop.permute.xlu1 %1018 }
 0x22d   :  { %3569 = vpow2.f32 %v1254_v38  ;;  %6516 = vst [vmem:[#allocation17_spill] sm:$0xff] %v5028_v59  ;;  %v5032_v38 = vmax.f32 %v1120_v13, 0.0  ;;  %v5040_v40 = vmax.f32 %v1131_v1, 0.0 }
 0x22e   :  { %v4996_v22 = vpop.f32.mrf.mxu1  ;;  %3571 = vpow2.f32 %v1256_v15  ;;  %v5044_v36 = vpop.permute.xlu0 %1003 }
 0x22f   :  { %3573 = vpow2.f32 %v1258_v44  ;;  %6517 = vst [vmem:[#allocation18_spill] sm:$0xff] %v5032_v38  ;;  %6518 = vst [vmem:[#allocation19_spill] sm:$0xff] %v5040_v40 }
 0x230   :  { %v5008_v2 = vpop.f32.mrf.mxu1  ;;  %3575 = vpow2.f32 %v1260_v58  ;;  %6519 = vst [vmem:[#allocation20_spill] sm:$0xff] %v5044_v36  ;;  %v5058_v61 = vpop.permute.xlu1 %1661 }
 0x231   :  { %v5016_v19 = vpop.eup %3551  ;;  %3577 = vpow2.f32 %v1262_v29  ;;  %v1144_v29 = vadd.f32 %v4929_v47, %v5012_v4  ;;  %6520 = vst [vmem:[#allocation21_spill] sm:$0xff] %v5058_v61  ;;  %v1359_v47 = vsel %vm1182_vm0, %v5040_v40, -inf  ;;  %v1136_v61 = vadd.f32 %v4933_v63, %v4986_v0 }
 0x232   :  { %v5014_v57 = vpop.f32.mrf.mxu1  ;;  %v5020_v42 = vpop.eup %3553  ;;  %v1268_v33 = vsel %vm1182_vm0, %v5016_v19, 0.0  ;;  %3579 = vpow2.f32 %v1264_v54  ;;  %v1350_v54 = vsel %vm1182_vm0, %v5032_v38, -inf  ;;  %1360 = vmax.xlane.f32.xlu0 %v1359_v47  ;;  %v1526_v47 = vsel %vm1182_vm0, %v5032_v38, 0.0 }
 0x233   :  { %v5026_v48 = vpop.eup %3555  ;;  %v1269_v15 = vsel %vm1182_vm0, %v5020_v42, 0.0  ;;  %3581 = vpow2.f32 %v1266_v41  ;;  %1351 = vmax.xlane.f32.xlu1 %v1350_v54  ;;  %v5074_v54 = vmax.f32 %v1144_v29, 0.0  ;;  %v5080_v35 = vpop.permute.xlu0 %1013  ;;  %v1152_v38 = vadd.f32 %v4960_v25, %v5044_v36 }
 0x234   :  { %v5024_v34 = vpop.f32.mrf.mxu1  ;;  %v5034_v21 = vpop.eup %3557  ;;  %v1270_v56 = vadd.f32 %v1269_v15, %v1268_v33  ;;  %v1271_v30 = vsel %vm1182_vm0, %v5026_v48, 0.0  ;;  %6523 = vst [vmem:[#allocation24_spill] sm:$0xff] %v5080_v35 }
 0x235   :  { %v5042_v44 = vpop.eup %3559  ;;  %v1273_v13 = vsel %vm1182_vm0, %v5034_v21, 0.0  ;;  %6521 = vst [vmem:[#allocation22_spill] sm:$0xff] %v5074_v54 }
 0x236   :  { %v5036_v12 = vpop.f32.mrf.mxu1  ;;  %v1272_v6 = vadd.f32 %v1271_v30, %v1270_v56  ;;  %v5054_v33 = vpop.eup %3561  ;;  %v1275_v41 = vsel %vm1182_vm0, %v5042_v44, 0.0  ;;  %v1123_v56 = vadd.f32 %v4925_v46, %v4921_v26 }
 0x237   :  { %v5066_v30 = vpop.eup %3563  ;;  %1527 = vadd.xlane.f32.xlu1 %v1526_v47  ;;  %v5112_v47 = vmax.f32 %v1136_v61, 0.0 }
 0x238   :  { %v5046_v58 = vpop.f32.mrf.mxu1  ;;  %v1274_v1 = vadd.f32 %v1273_v13, %v1272_v6  ;;  %v5070_v6 = vpop.eup %3565  ;;  %v1277_v13 = vsel %vm1182_vm0, %v5054_v33, 0.0  ;;  %v1279_v63 = vsel %vm1182_vm0, %v5066_v30, 0.0  ;;  %v5094_v0 = vmax.f32 %v1123_v56, 0.0 }
 0x239   :  { %v5078_v46 = vpop.eup %3567  ;;  %v5108_v56 = vpop.permute.xlu1 %1671  ;;  %6528 = vst [vmem:[#allocation29_spill] sm:$0xff] %v5112_v47 }
 0x23a   :  { %v5056_v15 = vpop.f32.mrf.mxu1  ;;  %v1276_v18 = vadd.f32 %v1275_v41, %v1274_v1  ;;  %6522 = vst [vmem:[#allocation23_spill] sm:$0xff] %v5078_v46  ;;  %v1147_v1 = vadd.f32 %v4939_v9, %v4974_v50  ;;  %v1139_v41 = vadd.f32 %v4947_v14, %v4955_v20  ;;  %v5090_v29 = vpop.eup %3569  ;;  %6525 = vst [vmem:[#allocation26_spill] sm:$0xff] %v5094_v0  ;;  %v1535_v9 = vsel %vm1182_vm0, %v5040_v40, 0.0 }
 0x23b   :  { %6524 = vst [vmem:[#allocation25_spill] sm:$0xff] %v5090_v29  ;;  %v5100_v14 = vpop.eup %3571  ;;  %1536 = vadd.xlane.f32.xlu0 %v1535_v9  ;;  %6527 = vst [vmem:[#allocation28_spill] sm:$0xff] %v5108_v56  ;;  %v1163_v40 = vadd.f32 %v4964_v3, %v5028_v59  ;;  %v1368_v56 = vsel %vm1182_vm0, %v5074_v54, -inf  ;;  %v1283_v3 = vsel %vm1182_vm0, %v5078_v46, 0.0  ;;  %v5148_v46 = vmax.f32 %v1152_v38, 0.0 }
 0x23c   :  { %v5068_v4 = vpop.f32.mrf.mxu1  ;;  %v1278_v26 = vadd.f32 %v1277_v13, %v1276_v18  ;;  %v1160_v18 = vadd.f32 %v4953_v53, %v5080_v35  ;;  %v5106_v50 = vpop.eup %3573  ;;  %v1281_v53 = vsel %vm1182_vm0, %v5070_v6, 0.0  ;;  %v5122_v9 = vmax.f32 %v1147_v1, 0.0  ;;  %1369 = vmax.xlane.f32.xlu1 %v1368_v56 }
 0x23d   :  { %6526 = vst [vmem:[#allocation27_spill] sm:$0xff] %v5106_v50  ;;  %v5120_v25 = vpop.eup %3575  ;;  %v5124_v36 = vmax.f32 %v1139_v41, 0.0  ;;  %6530 = vst [vmem:[#allocation31_spill] sm:$0xff] %v5148_v46  ;;  %v1544_v38 = vsel %vm1182_vm0, %v5074_v54, 0.0 }
 0x23e   :  { %v5088_v17 = vpop.f32.mrf.mxu1  ;;  %v1280_v13 = vadd.f32 %v1279_v63, %v1278_v26  ;;  %v5118_v26 = vadd.f32 %v4980_v51, %v4749_v8  ;;  %6529 = vst [vmem:[#allocation30_spill] sm:$0xff] %v5122_v9  ;;  %v5130_v61 = vpop.eup %3577  ;;  %v5134_v59 = vmax.f32 %v1160_v18, 0.0  ;;  %v5138_v8 = vadd.f32 %v4990_v43, %v4745_v49 }
 0x23f   :  { %v1353_v51 = vsel %vm1182_vm0, %v5094_v0, -inf  ;;  %v5142_v1 = vpop.eup %3579  ;;  %v1289_v49 = vsel %vm1182_vm0, %v5106_v50, 0.0  ;;  %v5154_v43 = vmax.f32 %v1163_v40, 0.0  ;;  %v5171_v40 = vadd.f32 %v5024_v34, %v4753_v11  ;;  %v5173_v50 = vpop.permute.xlu1 %1676 }
 0x240   :  { %v5104_v20 = vpop.f32.mrf.mxu1  ;;  %v1282_v63 = vadd.f32 %v1281_v53, %v1280_v13  ;;  %v1285_v13 = vsel %vm1182_vm0, %v5090_v29, 0.0  ;;  %v1287_v53 = vsel %vm1182_vm0, %v5100_v14, 0.0  ;;  %1354 = vmax.xlane.f32.xlu0 %v1353_v51  ;;  %v5150_v18 = vpop.eup %3581  ;;  %v5167_v51 = vadd.f32 %v5014_v57, %v4757_v39  ;;  %6532 = vst [vmem:[#allocation33_spill] sm:$0xff] %v5173_v50  ;;  %1545 = vadd.xlane.f32.xlu1 %v1544_v38 }
 0x241   :  { %6531 = vst [vmem:[#allocation32_spill] sm:$0xff] %v5154_v43  ;;  %v1529_v39 = vsel %vm1182_vm0, %v5094_v0, 0.0  ;;  %v5184_v57 = vpop.permute.xlu0 %1666  ;;  %v1293_v11 = vsel %vm1182_vm0, %v5130_v61, 0.0  ;;  %v1295_v34 = vsel %vm1182_vm0, %v5142_v1, 0.0  ;;  %v5196_v38 = vadd.f32 %v5036_v12, %v4759_v27 }
 0x242   :  { %v5128_v35 = vpop.f32.mrf.mxu1  ;;  %v1284_v41 = vadd.f32 %v1283_v3, %v1282_v63  ;;  %v5159_v63 = vadd.f32 %v4996_v22, %v4751_v37  ;;  %v1291_v37 = vsel %vm1182_vm0, %v5120_v25, 0.0  ;;  %6533 = vst [vmem:[#allocation34_spill] sm:$0xff] %v5184_v57  ;;  %v1297_v22 = vsel %vm1182_vm0, %v5150_v18, 0.0 }
 0x243   :  { %v6534_v57 = vmax.f32 %v5118_v26, 0.0 }
 0x244   :  { %v5161_v3 = vpop.f32.mrf.mxu1  ;;  %v1286_v29 = vadd.f32 %v1285_v13, %v1284_v41  ;;  %v5180_v41 = vadd.f32 %v5008_v2, %v4747_v52  ;;  %1530 = vadd.xlane.f32.xlu0 %v1529_v39  ;;  %v1362_v52 = vsel %vm1182_vm0, %v5112_v47, -inf  ;;  %v6535_v2 = vmax.f32 %v5138_v8, 0.0 }
 0x245   :  { %v2457_v50 = vsel %vm1182_vm0, %v6534_v57, -inf  ;;  %1363 = vmax.xlane.f32.xlu1 %v1362_v52  ;;  %v5222_v39 = vadd.f32 %v5068_v4, %v4761_v32  ;;  %v6537_v52 = vmax.f32 %v5159_v63, 0.0  ;;  %v5238_v32 = vpop.permute.xlu0 %1681 }
 0x246   :  { %v1288_v13 = vadd.f32 %v1287_v53, %v1286_v29  ;;  %v5200_v29 = vadd.f32 %v5046_v58, %v4755_v7  ;;  %v3483_v53 = vpop.f32.mrf.mxu1  ;;  %v2455_v27 = vsel %vm1182_vm0, %v6535_v2, -inf  ;;  %v1371_v7 = vsel %vm1182_vm0, %v5122_v9, -inf  ;;  %v5224_v2 = vpop.permute.xlu1 %1686  ;;  %6539 = vst [vmem:[#allocation36_spill] sm:$0xff] %v5238_v32 }
 0x247   :  { %6536 = vst [vmem:[#allocation35_spill] sm:$0xff] %v5224_v2  ;;  %v2458_v12 = vsel %vm1182_vm0, %v6537_v52, -inf  ;;  %v6538_v58 = vmax.f32 %v5167_v51, 0.0  ;;  %v6541_v52 = vmax.f32 %v5196_v38, 0.0  ;;  %v6543_v32 = vmax.f32 %v5180_v41, 0.0 }
 0x248   :  { %v1290_v56 = vadd.f32 %v1289_v49, %v1288_v13  ;;  %1372 = vmax.xlane.f32.xlu0 %v1371_v7  ;;  %v5218_v13 = vadd.f32 %v5056_v15, %v4765_v24  ;;  %v5236_v24 = vadd.f32 %v5088_v17, %v4767_v55  ;;  %v2314_v15 = vpop.f32.mrf.mxu1  ;;  %v6540_v7 = vmax.f32 %v5171_v40, 0.0 }
 0x249   :  { %v2465_v2 = vsel %vm1182_vm0, %v6541_v52, -inf  ;;  %v2456_v52 = vsel %vm1182_vm0, %v6543_v32, -inf }
 0x24a   :  { %v1292_v49 = vadd.f32 %v1291_v37, %v1290_v56  ;;  %v2463_v56 = vsel %vm1182_vm0, %v6538_v58, -inf  ;;  %v1538_v37 = vsel %vm1182_vm0, %v5112_v47, 0.0  ;;  %v2459_v57 = vsel %vm1182_vm0, %v6540_v7, -inf }
 0x24b   :  { %v1547_v58 = vsel %vm1182_vm0, %v5122_v9, 0.0  ;;  %v6542_v47 = vmax.f32 %v5200_v29, 0.0  ;;  %1539 = vadd.xlane.f32.xlu1 %v1538_v37  ;;  %v6395_v17 = vmax.f32 %v5218_v13, 0.0  ;;  %v2464_v0 = vmax.f32 %v2457_v50, %v2463_v56  ;;  %v5272_v56 = vpop.permute.xlu1 %1696 }
 0x24c   :  { %v1294_v4 = vadd.f32 %v1293_v11, %v1292_v49  ;;  %v5255_v49 = vadd.f32 %v5104_v20, %v4763_v62  ;;  %1548 = vadd.xlane.f32.xlu0 %v1547_v58  ;;  %v6394_v9 = vmax.f32 %v5236_v24, 0.0  ;;  %v2460_v54 = vmax.f32 %v2455_v27, %v2459_v57  ;;  %v5266_v62 = vpop.f32.mrf.mxu1  ;;  %6544 = vst [vmem:[#allocation37_spill] sm:$0xff] %v5272_v56 }
 0x24d   :  { %v2461_v55 = vsel %vm1182_vm0, %v6542_v47, -inf  ;;  %v1380_v47 = vsel %vm1182_vm0, %v5134_v59, -inf  ;;  %v1365_v37 = vsel %vm1182_vm0, %v5124_v36, -inf  ;;  %v5270_v50 = vadd.f32 %v5128_v35, %v4782_v60  ;;  %v5286_v60 = vpop.permute.xlu0 %1691 }
 0x24e   :  { %v1296_v7 = vadd.f32 %v1295_v34, %v1294_v4  ;;  %v6396_v11 = vmax.f32 %v5255_v49, 0.0  ;;  %v2466_v34 = vmax.f32 %v2458_v12, %v2465_v2  ;;  %v2462_v4 = vmax.f32 %v2456_v52, %v2461_v55  ;;  %6546 = vst [vmem:[#allocation38_spill] sm:$0xff] %v5286_v60 }
 0x24f   :  { %v2471_v27 = vsel %vm1182_vm0, %v6395_v17, -inf  ;;  %v6545_v57 = vmax.f32 %v5222_v39, 0.0  ;;  %1381 = vmax.xlane.f32.xlu1 %v1380_v47  ;;  %v5284_v12 = vadd.f32 %v5161_v3, %v4769_v10  ;;  %v2473_v2 = vsel %vm1182_vm0, %v6394_v9, -inf  ;;  %v2376_v47 = vpop.f32.mrf.mxu1 }
 0x250   :  { %v1298_v20 = vadd.f32 %v1297_v22, %v1296_v7  ;;  %v1556_v22 = vsel %vm1182_vm0, %v5134_v59, 0.0  ;;  %1366 = vmax.xlane.f32.xlu0 %v1365_v37  ;;  %v6399_v58 = vmax.f32 %v5270_v50, 0.0  ;;  %v5293_v55 = vadd.f32 %v3483_v53, %v4817_v23 }
 0x251   :  { %v2467_v32 = vsel %vm1182_vm0, %v6545_v57, -inf  ;;  %v2469_v7 = vsel %vm1182_vm0, %v6396_v11, -inf  ;;  %v1541_v10 = vsel %vm1182_vm0, %v5124_v36, 0.0  ;;  %v6401_v3 = vmax.f32 %v5284_v12, 0.0 }
 0x252   :  { %v1299_v35 = vrot.slane %v1298_v20, 4  ;;  %v5302_v52 = vadd.f32 %v2314_v15, %v4777_v31  ;;  %v2472_v57 = vmax.f32 %v2464_v0, %v2471_v27  ;;  %v2468_v9 = vmax.f32 %v2460_v54, %v2467_v32 }
 0x253   :  { %v6398_v17 = vmax.f32 %v5293_v55, 0.0  ;;  %v2474_v23 = vmax.f32 %v2466_v34, %v2473_v2  ;;  %1557 = vadd.xlane.f32.xlu1 %v1556_v22  ;;  %v2479_v53 = vsel %vm1182_vm0, %v6399_v58, -inf  ;;  %v2475_v11 = vsel %vm1182_vm0, %v6401_v3, -inf  ;;  %v5323_v22 = vpop.permute.xlu0 %1701 }
 0x254   :  { %v1300_v37 = vadd.f32 %v1299_v35, %v1298_v20  ;;  %v6400_v56 = vmax.f32 %v5302_v52, 0.0  ;;  %v2470_v15 = vmax.f32 %v2462_v4, %v2469_v7  ;;  %1542 = vadd.xlane.f32.xlu0 %v1541_v10  ;;  %v2377_v54 = vadd.f32 %v2376_v47, %v4824_v45  ;;  %v5316_v20 = vpop.permute.xlu1 %1706  ;;  %6548 = vst [vmem:[#allocation40_spill] sm:$0xff] %v5323_v22 }
 0x255   :  { %v2481_v0 = vsel %vm1182_vm0, %v6398_v17, -inf  ;;  %6547 = vst [vmem:[#allocation39_spill] sm:$0xff] %v5316_v20  ;;  %v1374_v34 = vsel %vm1182_vm0, %v5148_v46, -inf  ;;  %v2480_v35 = vmax.f32 %v2472_v57, %v2479_v53  ;;  %v2476_v2 = vmax.f32 %v2468_v9, %v2475_v11  ;;  %v3503_v57 = vpop.f32.mrf.mxu1 }
 0x256   :  { %v1301_v31 = vrot.slane %v1300_v37, 2  ;;  %v2482_v27 = vmax.f32 %v2474_v23, %v2481_v0  ;;  %v2477_v32 = vsel %vm1182_vm0, %v6400_v56, -inf  ;;  %v1155_v10 = vadd.f32 %v4972_v28, %v4998_v16 }
 0x257   :  { %v2478_v7 = vmax.f32 %v2470_v15, %v2477_v32  ;;  %1375 = vmax.xlane.f32.xlu1 %v1374_v34  ;;  %v1383_v45 = vsel %vm1182_vm0, %v5154_v43, -inf  ;;  %v5329_v17 = vmax.f32 %v2377_v54, 0.0  ;;  %v1559_v28 = vsel %vm1182_vm0, %v5154_v43, 0.0  ;;  %v5339_v53 = vpop.permute.xlu0 %1711 }
 0x258   :  { %v1302_v4 = vadd.f32 %v1301_v31, %v1300_v37  ;;  %1384 = vmax.xlane.f32.xlu0 %v1383_v45  ;;  %v2484_v23 = vmax.f32 %v2480_v35, %v2482_v27  ;;  %v1550_v37 = vsel %vm1182_vm0, %v5148_v46, 0.0  ;;  %v5333_v9 = vpop.permute.xlu1 %1716  ;;  %v5335_v11 = vmax.f32 %v1155_v10, 0.0  ;;  %6551 = vst [vmem:[#allocation43_spill] sm:$0xff] %v5339_v53  ;;  %v6552_v27 = vld [vmem:[#allocation3_spill] sm:$0xff] }
 0x259   :  { %v2483_v0 = vmax.f32 %v2476_v2, %v2478_v7  ;;  %6549 = vst [vmem:[#allocation41_spill] sm:$0xff] %v5333_v9  ;;  %v2611_v15 = vsel %vm1182_vm0, %v5329_v17, -inf  ;;  %v2388_v34 = vadd.f32 %v3503_v57, %v4899_v5  ;;  %v2385_v32 = vadd.f32 %v5266_v62, %v6552_v27 }
 0x25a   :  { %v1303_v47 = vrot.slane %v1302_v4, 1  ;;  %6550 = vst [vmem:[#allocation42_spill] sm:$0xff] %v5335_v11  ;;  %v1553_v62 = vsel %vm1182_vm0, %v5335_v11, 0.0  ;;  %v6557_v27 = vmax.f32 %v5180_v41, 0.0 }
 0x25b   :  { %v2485_v56 = vmax.f32 %v2483_v0, %v2484_v23  ;;  %1551 = vadd.xlane.f32.xlu1 %v1550_v37  ;;  %v5352_v10 = vmax.f32 %v2388_v34, 0.0  ;;  %v5356_v5 = vmax.f32 %v2385_v32, 0.0  ;;  %v2379_v23 = vpop.f32.mrf.mxu1 }
 0x25c   :  { %v1304_v58 = vadd.f32 %v1303_v47, %v1302_v4  ;;  %1560 = vadd.xlane.f32.xlu0 %v1559_v28  ;;  %v1377_v4 = vsel %vm1182_vm0, %v5335_v11, -inf  ;;  %v5348_v2 = vpop.permute.xlu1 %1726 }
 0x25d   :  { %v2486_v31 = vrot.slane %v2485_v56, 4  ;;  %6553 = vst [vmem:[#allocation3_spill] sm:$0xff] %v5348_v2  ;;  %v2620_v0 = vsel %vm1182_vm0, %v5352_v10, -inf  ;;  %v2617_v28 = vsel %vm1182_vm0, %v5356_v5, -inf }
 0x25e   :  { %3583 = vrcp.f32 %v1304_v58  ;;  %v5350_v58 = vpop.permute.xlu0 %1721 }
 0x25f   :  { %v2487_v54 = vmax.f32 %v2485_v56, %v2486_v31  ;;  %2612 = vmax.xlane.f32.xlu1 %v2611_v15  ;;  %6554 = vst [vmem:[#allocation44_spill] sm:$0xff] %v5350_v58  ;;  %v2787_v56 = vsel %vm1182_vm0, %v5329_v17, 0.0  ;;  %v2793_v31 = vsel %vm1182_vm0, %v5356_v5, 0.0 }
 0x260   :  { %1378 = vmax.xlane.f32.xlu0 %v1377_v4  ;;  %v5364_v37 = vpop.permute.xlu1 %1789  ;;  %v6558_v4 = vmax.f32 %v5118_v26, 0.0 }
 0x261   :  { %v2488_v35 = vrot.slane %v2487_v54, 2 }
 0x262   :  { %v5368_v57 = vpop.permute.xlu0 %1731 }
 0x263   :  { %v2489_v7 = vmax.f32 %v2487_v54, %v2488_v35  ;;  %2788 = vadd.xlane.f32.xlu1 %v2787_v56  ;;  %6555 = vst [vmem:[#allocation45_spill] sm:$0xff] %v5368_v57  ;;  %v6556_v54 = vmax.f32 %v5138_v8, 0.0 }
 0x264   :  { %1554 = vadd.xlane.f32.xlu0 %v1553_v62 }
 0x265   :  { %v2490_v45 = vrot.slane %v2489_v7, 1 }
 0x267   :  { %v5360_v47 = vmax.f32 %v2489_v7, %v2490_v45  ;;  %2621 = vmax.xlane.f32.xlu1 %v2620_v0  ;;  %v6559_v7 = vmax.f32 %v5159_v63, 0.0 }
 0x268   :  { %2618 = vmax.xlane.f32.xlu0 %v2617_v28  ;;  %v3506_v28 = vpop.f32.mrf.mxu1 }
 0x269   :  { %v2492_v34 = vsub.f32 %v6556_v54, %v5360_v47  ;;  %v2493_v32 = vsub.f32 %v6557_v27, %v5360_v47  ;;  %v2494_v35 = vsub.f32 %v6558_v4, %v5360_v47  ;;  %v2495_v56 = vsub.f32 %v6559_v7, %v5360_v47  ;;  %v6560_v4 = vld [vmem:[#allocation23_spill] sm:$0xff]  ;;  %v6561_v7 = vld [vmem:[#allocation25_spill] sm:$0xff] }
 0x26b   :  { %v3584_v15 = vpop.eup %3583 }
 0x26c   :  { %v1306_v62 = vmul.f32 %v3584_v15, %v5016_v19  ;;  %v1307_v45 = vmul.f32 %v3584_v15, %v5020_v42  ;;  %v1308_v0 = vmul.f32 %v3584_v15, %v5026_v48  ;;  %v1309_v8 = vmul.f32 %v3584_v15, %v5034_v21  ;;  %v6562_v42 = vld [vmem:[#allocation27_spill] sm:$0xff]  ;;  %2794 = vadd.xlane.f32.xlu0 %v2793_v31  ;;  %v5412_v48 = vpop.permute.xlu1 %1794 }
 0x26d   :  { %v1310_v41 = vmul.f32 %v3584_v15, %v5042_v44  ;;  %v1311_v54 = vmul.f32 %v3584_v15, %v5054_v33  ;;  %v1312_v26 = vmul.f32 %v3584_v15, %v5066_v30  ;;  %v1313_v27 = vmul.f32 %v3584_v15, %v5070_v6  ;;  %6563 = vst [vmem:[#allocation23_spill] sm:$0xff] %v5412_v48  ;;  %v5434_v6 = vpop.permute.xlu0 %1736  ;;  %v6613_v48 = vld [vmem:[#allocation20_spill] sm:$0xff] }
 0x26e   :  { %v1314_v63 = vmul.f32 %v3584_v15, %v6560_v4  ;;  %v1315_v3 = vmul.f32 %v3584_v15, %v6561_v7  ;;  %v1316_v19 = vmul.f32 %v3584_v15, %v5100_v14  ;;  %v1317_v57 = vmul.f32 %v3584_v15, %v6562_v42  ;;  %1322 = vst.msk [vmem:[%s6332_s9] sm:$0xff] %vm1182_vm0, %v1306_v62  ;;  %v6565_v14 = vld [vmem:[#allocation2_spill] sm:$0xff] }
 0x26f   :  { %1323 = vst.msk [vmem:[%s6332_s9 + $0x8] sm:$0xff] %vm1182_vm0, %v1307_v45  ;;  %1324 = vst.msk [vmem:[%s6332_s9 + $0x10] sm:$0xff] %vm1182_vm0, %v1308_v0  ;;  %v1318_v21 = vmul.f32 %v3584_v15, %v5120_v25  ;;  %v1319_v44 = vmul.f32 %v3584_v15, %v5130_v61  ;;  %v1320_v33 = vmul.f32 %v3584_v15, %v5142_v1  ;;  %v5453_v61 = vpop.f32.mrf.mxu1  ;;  %v6566_v1 = vmax.f32 %v5171_v40, 0.0 }
 0x270   :  { %1325 = vst.msk [vmem:[%s6332_s9 + $0x18] sm:$0xff] %vm1182_vm0, %v1309_v8  ;;  %v1321_v30 = vmul.f32 %v3584_v15, %v5150_v18  ;;  %1326 = vst.msk [vmem:[%s6332_s9 + $0x20] sm:$0xff] %vm1182_vm0, %v1310_v41  ;;  %v2380_v25 = vadd.f32 %v2379_v23, %v6565_v14  ;;  %v2510_v23 = vmul.f32 1.442695, %v2493_v32  ;;  %v6567_v31 = vmax.f32 %v5200_v29, 0.0  ;;  %v5479_v8 = vpop.permute.xlu1 %1809 }
 0x271   :  { %1327 = vst.msk [vmem:[%s6332_s9 + $0x28] sm:$0xff] %vm1182_vm0, %v1311_v54  ;;  %1328 = vst.msk [vmem:[%s6332_s9 + $0x30] sm:$0xff] %vm1182_vm0, %v1312_v26  ;;  %v2496_v18 = vsub.f32 %v6566_v1, %v5360_v47  ;;  %v2514_v62 = vmul.f32 1.442695, %v2495_v56  ;;  %v3507_v0 = vpop.f32.mrf.mxu1  ;;  %v6570_v41 = vmax.f32 %v5167_v51, 0.0  ;;  %v6571_v29 = vmax.f32 %v5196_v38, 0.0 }
 0x272   :  { %1329 = vst.msk [vmem:[%s6332_s9 + $0x38] sm:$0xff] %vm1182_vm0, %v1313_v27  ;;  %6564 = vst [vmem:[#allocation25_spill] sm:$0xff] %v5434_v6  ;;  %v2497_v15 = vsub.f32 %v6567_v31, %v5360_v47  ;;  %v5477_v45 = vmax.f32 %v2380_v25, 0.0  ;;  %v6572_v56 = vld [vmem:[#allocation10_spill] sm:$0xff]  ;;  %v6573_v27 = vld [vmem:[#allocation11_spill] sm:$0xff]  ;;  %v6574_v51 = vmax.f32 %v5222_v39, 0.0 }
 0x273   :  { %1330 = vst.msk [vmem:[%s6332_s9 + $0x40] sm:$0xff] %vm1182_vm0, %v1314_v63  ;;  %1331 = vst.msk [vmem:[%s6332_s9 + $0x48] sm:$0xff] %vm1182_vm0, %v1315_v3  ;;  %v2508_v3 = vmul.f32 1.442695, %v2492_v34  ;;  %v2498_v54 = vsub.f32 %v6570_v41, %v5360_v47  ;;  %v2516_v40 = vmul.f32 1.442695, %v2496_v18  ;;  %v5484_v34 = vpop.permute.xlu0 %1799  ;;  %v2499_v32 = vsub.f32 %v6571_v29, %v5360_v47 }
 0x274   :  { %1332 = vst.msk [vmem:[%s6332_s9 + $0x50] sm:$0xff] %vm1182_vm0, %v1316_v19  ;;  %1333 = vst.msk [vmem:[%s6332_s9 + $0x58] sm:$0xff] %vm1182_vm0, %v1317_v57  ;;  %v2512_v57 = vmul.f32 1.442695, %v2494_v35  ;;  %v2518_v35 = vmul.f32 1.442695, %v2497_v15  ;;  %v2404_v26 = vadd.f32 %v3507_v0, %v6572_v56  ;;  %v2401_v4 = vadd.f32 %v3506_v28, %v6573_v27  ;;  %v5498_v42 = vpop.permute.xlu1 %1814 }
 0x275   :  { %1334 = vst.msk [vmem:[%s6332_s9 + $0x60] sm:$0xff] %vm1182_vm0, %v1318_v21  ;;  %1335 = vst.msk [vmem:[%s6332_s9 + $0x68] sm:$0xff] %vm1182_vm0, %v1319_v44  ;;  %3585 = vpow2.f32 %v2508_v3  ;;  %v2614_v63 = vsel %vm1182_vm0, %v5477_v45, -inf  ;;  %v2500_v7 = vsub.f32 %v6574_v51, %v5360_v47  ;;  %v2520_v19 = vmul.f32 1.442695, %v2498_v54  ;;  %v6585_v51 = vld [vmem:[#allocation8_spill] sm:$0xff] }
 0x276   :  { %1336 = vst.msk [vmem:[%s6332_s9 + $0x70] sm:$0xff] %vm1182_vm0, %v1320_v33  ;;  %1337 = vst.msk [vmem:[%s6332_s9 + $0x78] sm:$0xff] %vm1182_vm0, %v1321_v30  ;;  %3587 = vpow2.f32 %v2510_v23  ;;  %2615 = vmax.xlane.f32.xlu0 %v2614_v63  ;;  %v2796_v38 = vsel %vm1182_vm0, %v5352_v10, 0.0  ;;  %v6576_v21 = vmax.f32 %v5255_v49, 0.0  ;;  %v2522_v28 = vmul.f32 1.442695, %v2499_v32  ;;  %v2395_v49 = vpop.f32.mrf.mxu1 }
 0x277   :  { %6568 = vst [vmem:[#allocation27_spill] sm:$0xff] %v5477_v45  ;;  %6569 = vst [vmem:[#allocation2_spill] sm:$0xff] %v5479_v8  ;;  %3589 = vpow2.f32 %v2512_v57  ;;  %v5503_v33 = vmax.f32 %v2404_v26, 0.0  ;;  %2797 = vadd.xlane.f32.xlu1 %v2796_v38  ;;  %v5505_v30 = vpop.permute.xlu0 %1804  ;;  %v5507_v39 = vmax.f32 %v2401_v4, 0.0  ;;  %v6579_v14 = vmax.f32 %v5218_v13, 0.0 }
 0x278   :  { %3591 = vpow2.f32 %v2514_v62  ;;  %6575 = vst [vmem:[#allocation10_spill] sm:$0xff] %v5498_v42  ;;  %v2501_v44 = vsub.f32 %v6576_v21, %v5360_v47  ;;  %v2524_v1 = vmul.f32 1.442695, %v2500_v7  ;;  %v2790_v18 = vsel %vm1182_vm0, %v5477_v45, 0.0  ;;  %v5521_v13 = vpop.permute.xlu1 %1824  ;;  %v3510_v32 = vpop.f32.mrf.mxu1  ;;  %v6607_v42 = vld [vmem:[#allocation24_spill] sm:$0xff] }
 0x279   :  { %3593 = vpow2.f32 %v2516_v40  ;;  %6577 = vst [vmem:[#allocation11_spill] sm:$0xff] %v5503_v33  ;;  %6578 = vst [vmem:[#allocation46_spill] sm:$0xff] %v5507_v39  ;;  %v2502_v25 = vsub.f32 %v6579_v14, %v5360_v47  ;;  %v6580_v3 = vmax.f32 %v5236_v24, 0.0  ;;  %v2632_v31 = vsel %vm1182_vm0, %v5503_v33, -inf  ;;  %v6587_v14 = vld [vmem:[#allocation9_spill] sm:$0xff] }
 0x27a   :  { %3595 = vpow2.f32 %v2518_v35  ;;  %2791 = vadd.xlane.f32.xlu0 %v2790_v18  ;;  %v2526_v57 = vmul.f32 1.442695, %v2501_v44  ;;  %6581 = vst [vmem:[#allocation47_spill] sm:$0xff] %v5521_v13  ;;  %v6582_v62 = vmax.f32 %v5284_v12, 0.0  ;;  %v2629_v24 = vsel %vm1182_vm0, %v5507_v39, -inf }
 0x27b   :  { %3597 = vpow2.f32 %v2520_v19  ;;  %v2503_v23 = vsub.f32 %v6580_v3, %v5360_v47  ;;  %2633 = vmax.xlane.f32.xlu1 %v2632_v31  ;;  %v2528_v41 = vmul.f32 1.442695, %v2502_v25  ;;  %v5530_v40 = vpop.permute.xlu0 %1819  ;;  %v6584_v12 = vmax.f32 %v5302_v52, 0.0 }
 0x27c   :  { %3599 = vpow2.f32 %v2522_v28  ;;  %v2504_v0 = vsub.f32 %v6582_v62, %v5360_v47  ;;  %6583 = vst [vmem:[#allocation48_spill] sm:$0xff] %v5530_v40  ;;  %v2396_v7 = vadd.f32 %v2395_v49, %v6585_v51  ;;  %v6586_v19 = vmax.f32 %v5270_v50, 0.0  ;;  %v5555_v18 = vpop.permute.xlu1 %1834 }
 0x27d   :  { %3601 = vpow2.f32 %v2524_v1  ;;  %v2505_v56 = vsub.f32 %v6584_v12, %v5360_v47  ;;  %v2530_v26 = vmul.f32 1.442695, %v2503_v23  ;;  %v2393_v25 = vadd.f32 %v5453_v61, %v6587_v14  ;;  %v5553_v1 = vpop.f32.mrf.mxu1  ;;  %6588 = vst [vmem:[#allocation8_spill] sm:$0xff] %v5555_v18 }
 0x27e   :  { %2630 = vmax.xlane.f32.xlu0 %v2629_v24  ;;  %3603 = vpow2.f32 %v2526_v57  ;;  %v2506_v38 = vsub.f32 %v6586_v19, %v5360_v47  ;;  %v2532_v21 = vmul.f32 1.442695, %v2504_v0  ;;  %v6589_v49 = vmax.f32 %v5293_v55, 0.0 }
 0x27f   :  { %3605 = vpow2.f32 %v2528_v41  ;;  %v2534_v3 = vmul.f32 1.442695, %v2505_v56  ;;  %v5564_v31 = vpop.permute.xlu0 %1829  ;;  %v5566_v0 = vmax.f32 %v2396_v7, 0.0  ;;  %v2808_v55 = vsel %vm1182_vm0, %v5503_v33, 0.0  ;;  %v3511_v12 = vpop.f32.mrf.mxu1 }
 0x280   :  { %v2507_v50 = vsub.f32 %v6589_v49, %v5360_v47  ;;  %3607 = vpow2.f32 %v2530_v26  ;;  %6590 = vst [vmem:[#allocation9_spill] sm:$0xff] %v5564_v31  ;;  %v2536_v61 = vmul.f32 1.442695, %v2506_v38  ;;  %2809 = vadd.xlane.f32.xlu1 %v2808_v55  ;;  %v5582_v7 = vpop.permute.xlu1 %1844  ;;  %v6594_v38 = vld [vmem:[#allocation14_spill] sm:$0xff] }
 0x281   :  { %6591 = vst [vmem:[#allocation49_spill] sm:$0xff] %v5566_v0  ;;  %3609 = vpow2.f32 %v2532_v21  ;;  %6593 = vst [vmem:[#allocation51_spill] sm:$0xff] %v5582_v7  ;;  %v2420_v21 = vadd.f32 %v3511_v12, %v6594_v38  ;;  %v2411_v49 = vpop.f32.mrf.mxu1  ;;  %v2802_v12 = vsel %vm1182_vm0, %v5566_v0, 0.0 }
 0x282   :  { %v5519_v15 = vpop.eup %3585  ;;  %3611 = vpow2.f32 %v2534_v3  ;;  %v2538_v56 = vmul.f32 1.442695, %v2507_v50  ;;  %v6596_v3 = vld [vmem:[#allocation16_spill] sm:$0xff] }
 0x283   :  { %v5528_v54 = vpop.eup %3587  ;;  %v2540_v29 = vsel %vm1182_vm0, %v5519_v15, 0.0  ;;  %3613 = vpow2.f32 %v2536_v61  ;;  %v5591_v14 = vpop.permute.xlu0 %1839 }
 0x284   :  { %v5534_v35 = vpop.eup %3589  ;;  %v2541_v27 = vsel %vm1182_vm0, %v5528_v54, 0.0  ;;  %6595 = vst [vmem:[#allocation14_spill] sm:$0xff] %v5591_v14  ;;  %3615 = vpow2.f32 %v2538_v56 }
 0x285   :  { %v5541_v4 = vpop.eup %3591  ;;  %v2542_v63 = vadd.f32 %v2541_v27, %v2540_v29  ;;  %v2543_v52 = vsel %vm1182_vm0, %v5534_v35, 0.0  ;;  %v5574_v29 = vmax.f32 %v2393_v25, 0.0  ;;  %v2805_v27 = vsel %vm1182_vm0, %v5507_v39, 0.0 }
 0x286   :  { %v5549_v44 = vpop.eup %3593  ;;  %v2545_v23 = vsel %vm1182_vm0, %v5541_v4, 0.0  ;;  %2806 = vadd.xlane.f32.xlu0 %v2805_v27  ;;  %v3514_v27 = vpop.f32.mrf.mxu1 }
 0x287   :  { %v2544_v28 = vadd.f32 %v2543_v52, %v2542_v63  ;;  %v5562_v57 = vpop.eup %3595  ;;  %v2547_v41 = vsel %vm1182_vm0, %v5549_v44, 0.0  ;;  %6592 = vst [vmem:[#allocation50_spill] sm:$0xff] %v5574_v29  ;;  %v2626_v52 = vsel %vm1182_vm0, %v5566_v0, -inf  ;;  %v2799_v38 = vsel %vm1182_vm0, %v5574_v29, 0.0 }
 0x288   :  { %v5572_v47 = vpop.eup %3597  ;;  %v2549_v26 = vsel %vm1182_vm0, %v5562_v57, 0.0  ;;  %2627 = vmax.xlane.f32.xlu1 %v2626_v52  ;;  %v5618_v52 = vpop.permute.xlu0 %1849  ;;  %v2433_v9 = vadd.f32 %v3514_v27, %v6607_v42  ;;  %v6610_v42 = vld [vmem:[#allocation7_spill] sm:$0xff] }
 0x289   :  { %v2546_v62 = vadd.f32 %v2545_v23, %v2544_v28  ;;  %v5580_v63 = vpop.eup %3599  ;;  %v2551_v19 = vsel %vm1182_vm0, %v5572_v47, 0.0  ;;  %v2417_v23 = vadd.f32 %v3510_v32, %v6596_v3  ;;  %v5608_v32 = vpop.permute.xlu1 %1854  ;;  %6600 = vst [vmem:[#allocation54_spill] sm:$0xff] %v5618_v52  ;;  %v6601_v3 = vld [vmem:[#allocation12_spill] sm:$0xff] }
 0x28a   :  { %v5589_v28 = vpop.eup %3601  ;;  %v2553_v50 = vsel %vm1182_vm0, %v5580_v63, 0.0  ;;  %6598 = vst [vmem:[#allocation52_spill] sm:$0xff] %v5608_v32  ;;  %v6602_v32 = vld [vmem:[#allocation15_spill] sm:$0xff] }
 0x28b   :  { %v2548_v24 = vadd.f32 %v2547_v41, %v2546_v62  ;;  %v2623_v62 = vsel %vm1182_vm0, %v5574_v29, -inf  ;;  %v5598_v61 = vpop.eup %3603  ;;  %v2555_v55 = vsel %vm1182_vm0, %v5589_v28, 0.0 }
 0x28c   :  { %2624 = vmax.xlane.f32.xlu0 %v2623_v62  ;;  %v5606_v56 = vpop.eup %3605  ;;  %2803 = vadd.xlane.f32.xlu1 %v2802_v12  ;;  %v2412_v62 = vadd.f32 %v2411_v49, %v6601_v3  ;;  %v2424_v12 = vpop.f32.mrf.mxu1 }
 0x28d   :  { %v2550_v51 = vadd.f32 %v2549_v26, %v2548_v24  ;;  %v5602_v24 = vmax.f32 %v2420_v21, 0.0  ;;  %v5616_v21 = vpop.eup %3607 }
 0x28e   :  { %v2561_v6 = vsel %vm1182_vm0, %v5616_v21, 0.0 }
 0x28f   :  { %v2552_v25 = vadd.f32 %v2551_v19, %v2550_v51  ;;  %6597 = vst [vmem:[#allocation16_spill] sm:$0xff] %v5602_v24  ;;  %v2557_v51 = vsel %vm1182_vm0, %v5598_v61, 0.0  ;;  %v5612_v19 = vmax.f32 %v2417_v23, 0.0 }
 0x290   :  { %2800 = vadd.xlane.f32.xlu0 %v2799_v38 }
 0x291   :  { %v2554_v41 = vadd.f32 %v2553_v50, %v2552_v25  ;;  %6599 = vst [vmem:[#allocation53_spill] sm:$0xff] %v5612_v19  ;;  %v2559_v50 = vsel %vm1182_vm0, %v5606_v56, 0.0 }
 0x293   :  { %v2556_v26 = vadd.f32 %v2555_v55, %v2554_v41  ;;  %v2644_v41 = vsel %vm1182_vm0, %v5602_v24, -inf  ;;  %v5625_v55 = vpop.eup %3609 }
 0x294   :  { %2645 = vmax.xlane.f32.xlu1 %v2644_v41  ;;  %v5635_v49 = vpop.eup %3611  ;;  %v2820_v41 = vsel %vm1182_vm0, %v5602_v24, 0.0 }
 0x295   :  { %v2558_v25 = vadd.f32 %v2557_v51, %v2556_v26  ;;  %v2409_v26 = vadd.f32 %v5553_v1, %v6602_v32  ;;  %v2641_v51 = vsel %vm1182_vm0, %v5612_v19, -inf  ;;  %v5643_v2 = vpop.eup %3613  ;;  %v3515_v32 = vpop.f32.mrf.mxu1  ;;  %v2565_v18 = vsel %vm1182_vm0, %v5635_v49, 0.0 }
 0x296   :  { %2642 = vmax.xlane.f32.xlu0 %v2641_v51  ;;  %v5654_v7 = vpop.eup %3615 }
 0x297   :  { %v2560_v23 = vadd.f32 %v2559_v50, %v2558_v25  ;;  %v2563_v25 = vsel %vm1182_vm0, %v5625_v55, 0.0  ;;  %v5639_v50 = vmax.f32 %v2412_v62, 0.0  ;;  %v5647_v58 = vmax.f32 %v2409_v26, 0.0  ;;  %v2427_v53 = vpop.f32.mrf.mxu1 }
 0x298   :  { %2821 = vadd.xlane.f32.xlu1 %v2820_v41  ;;  %v2428_v40 = vadd.f32 %v2427_v53, %v4998_v16 }
 0x299   :  { %v5633_v38 = vpop.xlane.xlu1 %1521  ;;  %v2562_v3 = vadd.f32 %v2561_v6, %v2560_v23  ;;  %v1346_v52 = vpop.xlane.xlu0 %1345  ;;  %6603 = vst [vmem:[#allocation12_spill] sm:$0xff] %v5639_v50  ;;  %6604 = vst [vmem:[#allocation15_spill] sm:$0xff] %v5647_v58  ;;  %v2817_v6 = vsel %vm1182_vm0, %v5612_v19, 0.0  ;;  %v6605_v23 = vld [vmem:[#allocation4_spill] sm:$0xff]  ;;  %v2638_v26 = vsel %vm1182_vm0, %v5639_v50, -inf }
 0x29a   :  { %v1388_v51 = vsub.f32 %v6605_v23, %v1346_v52  ;;  %2818 = vadd.xlane.f32.xlu0 %v2817_v6  ;;  %v2569_v52 = vsel %vm1182_vm0, %v5654_v7, 0.0  ;;  %v6608_v6 = vld [vmem:[#allocation5_spill] sm:$0xff] }
 0x29b   :  { %v2564_v1 = vadd.f32 %v2563_v25, %v2562_v3  ;;  %v2567_v3 = vsel %vm1182_vm0, %v5643_v2, 0.0  ;;  %v6606_v25 = vld [vmem:[#allocation17_spill] sm:$0xff] }
 0x29c   :  { %v2436_v41 = vadd.f32 %v3515_v32, %v6606_v25  ;;  %2639 = vmax.xlane.f32.xlu1 %v2638_v26  ;;  %v5672_v26 = vmax.f32 %v2433_v9, 0.0 }
 0x29d   :  { %v5652_v62 = vpop.xlane.xlu1 %1515  ;;  %v2566_v31 = vadd.f32 %v2565_v18, %v2564_v1  ;;  %v1340_v20 = vpop.xlane.xlu0 %1339  ;;  %v2635_v18 = vsel %vm1182_vm0, %v5647_v58, -inf  ;;  %v1406_v1 = vmul.f32 1.442695, %v1388_v51  ;;  %v2811_v51 = vsel %vm1182_vm0, %v5647_v58, 0.0 }
 0x29e   :  { %v1386_v13 = vsub.f32 %v6608_v6, %v1340_v20  ;;  %2636 = vmax.xlane.f32.xlu0 %v2635_v18  ;;  %v5667_v25 = vmax.f32 %v2436_v41, 0.0  ;;  %6611 = vst [vmem:[#allocation17_spill] sm:$0xff] %v5672_v26  ;;  %v2653_v60 = vsel %vm1182_vm0, %v5672_v26, -inf }
 0x29f   :  { %v2568_v14 = vadd.f32 %v2567_v3, %v2566_v31  ;;  %v2814_v31 = vsel %vm1182_vm0, %v5639_v50, 0.0  ;;  %3617 = vpow2.f32 %v1406_v1 }
 0x2a0   :  { %6609 = vst [vmem:[#allocation4_spill] sm:$0xff] %v5667_v25  ;;  %2815 = vadd.xlane.f32.xlu1 %v2814_v31  ;;  %v1402_v20 = vmul.f32 1.442695, %v1386_v13  ;;  %v2425_v31 = vadd.f32 %v2424_v12, %v6613_v48  ;;  %v2832_v16 = vsel %vm1182_vm0, %v5667_v25, 0.0 }
 0x2a1   :  { %v2570_v22 = vadd.f32 %v2569_v52, %v2568_v14  ;;  %v1343_v8 = vpop.xlane.xlu1 %1342  ;;  %v1349_v32 = vpop.xlane.xlu0 %1348  ;;  %v6612_v14 = vld [vmem:[#allocation6_spill] sm:$0xff] }
 0x2a2   :  { %v1389_v27 = vsub.f32 %v6610_v42, %v1349_v32  ;;  %v1387_v52 = vsub.f32 %v6612_v14, %v1343_v8  ;;  %2812 = vadd.xlane.f32.xlu0 %v2811_v51  ;;  %v2656_v32 = vsel %vm1182_vm0, %v5667_v25, -inf  ;;  %v5683_v8 = vmax.f32 %v2428_v40, 0.0 }
 0x2a3   :  { %v2571_v3 = vrot.slane %v2570_v22, 4  ;;  %v5687_v53 = vmax.f32 %v2425_v31, 0.0 }
 0x2a4   :  { %v1408_v18 = vmul.f32 1.442695, %v1389_v27  ;;  %2657 = vmax.xlane.f32.xlu1 %v2656_v32  ;;  %v1404_v13 = vmul.f32 1.442695, %v1387_v52  ;;  %6614 = vst [vmem:[#allocation24_spill] sm:$0xff] %v5683_v8  ;;  %v2829_v27 = vsel %vm1182_vm0, %v5672_v26, 0.0 }
 0x2a5   :  { %v2572_v41 = vadd.f32 %v2571_v3, %v2570_v22  ;;  %6615 = vst [vmem:[#allocation5_spill] sm:$0xff] %v5687_v53  ;;  %v2650_v12 = vsel %vm1182_vm0, %v5683_v8, -inf  ;;  %v2826_v3 = vsel %vm1182_vm0, %v5683_v8, 0.0  ;;  %v6616_v32 = vld [vmem:[#allocation13_spill] sm:$0xff] }
 0x2a6   :  { %3619 = vpow2.f32 %v1408_v18  ;;  %2654 = vmax.xlane.f32.xlu0 %v2653_v60  ;;  %v2647_v60 = vsel %vm1182_vm0, %v5687_v53, -inf }
 0x2a7   :  { %v2573_v9 = vrot.slane %v2572_v41, 2  ;;  %3621 = vpow2.f32 %v1402_v20  ;;  %v2823_v20 = vsel %vm1182_vm0, %v5687_v53, 0.0 }
 0x2a8   :  { %2833 = vadd.xlane.f32.xlu1 %v2832_v16  ;;  %3623 = vpow2.f32 %v1404_v13 }
 0x2a9   :  { %v2574_v1 = vadd.f32 %v2573_v9, %v2572_v41 }
 0x2aa   :  { %2830 = vadd.xlane.f32.xlu0 %v2829_v27 }
 0x2ab   :  { %v2575_v22 = vrot.slane %v2574_v1, 1 }
 0x2ac   :  { %2651 = vmax.xlane.f32.xlu1 %v2650_v12  ;;  %v5695_v40 = vpop.eup %3617 }
 0x2ad   :  { %v2576_v48 = vadd.f32 %v2575_v22, %v2574_v1  ;;  %v1440_v18 = vsel %vm1182_vm0, %v5695_v40, 0.0  ;;  %v5710_v1 = vpop.xlane.xlu0 %1524 }
 0x2ae   :  { %2648 = vmax.xlane.f32.xlu0 %v2647_v60 }
 0x2af   :  { %3625 = vrcp.f32 %v2576_v48  ;;  %v1358_v52 = vpop.xlane.xlu1 %1357 }
 0x2b0   :  { %2827 = vadd.xlane.f32.xlu1 %v2826_v3  ;;  %v1392_v9 = vsub.f32 %v6616_v32, %v1358_v52 }
 0x2b2   :  { %2824 = vadd.xlane.f32.xlu0 %v2823_v20  ;;  %v1414_v13 = vmul.f32 1.442695, %v1392_v9 }
 0x2b3   :  { %v5699_v51 = vpop.eup %3619  ;;  %v5716_v48 = vpop.xlane.xlu1 %1533 }
 0x2b4   :  { %v5705_v41 = vpop.eup %3621  ;;  %v1443_v31 = vsel %vm1182_vm0, %v5699_v51, 0.0  ;;  %1441 = vadd.xlane.f32.xlu1 %v1440_v18  ;;  %3627 = vpow2.f32 %v1414_v13 }
 0x2b5   :  { %v1434_v16 = vsel %vm1182_vm0, %v5705_v41, 0.0  ;;  %v5714_v22 = vpop.eup %3623 }
 0x2b6   :  { %6617 = vst [vmem:[#allocation7_spill] sm:$0xff] %v5714_v22  ;;  %1444 = vadd.xlane.f32.xlu0 %v1443_v31  ;;  %v1437_v12 = vsel %vm1182_vm0, %v5714_v22, 0.0 }
 0x2b8   :  { %1435 = vadd.xlane.f32.xlu1 %v1434_v16  ;;  %v5728_v16 = vpop.xlane.xlu0 %1518 }
 0x2ba   :  { %1438 = vadd.xlane.f32.xlu0 %v1437_v12 }
 0x2bc   :  { %v3626_v27 = vpop.eup %3625 }
 0x2bd   :  { %v2578_v60 = vmul.f32 %v3626_v27, %v5519_v15  ;;  %v2579_v3 = vmul.f32 %v3626_v27, %v5528_v54  ;;  %v2580_v20 = vmul.f32 %v3626_v27, %v5534_v35  ;;  %v2581_v52 = vmul.f32 %v3626_v27, %v5541_v4 }
 0x2be   :  { %v2582_v18 = vmul.f32 %v3626_v27, %v5549_v44  ;;  %v2583_v9 = vmul.f32 %v3626_v27, %v5562_v57  ;;  %v2584_v31 = vmul.f32 %v3626_v27, %v5572_v47  ;;  %v2585_v13 = vmul.f32 %v3626_v27, %v5580_v63  ;;  %v6618_v63 = vld [vmem:[#allocation18_spill] sm:$0xff] }
 0x2bf   :  { %v2586_v22 = vmul.f32 %v3626_v27, %v5589_v28  ;;  %v2587_v15 = vmul.f32 %v3626_v27, %v5598_v61  ;;  %v2588_v54 = vmul.f32 %v3626_v27, %v5606_v56  ;;  %v2589_v35 = vmul.f32 %v3626_v27, %v5616_v21  ;;  %3148 = vst.msk [vmem:[%s6332_s9 + $0x80] sm:$0xff] %vm1182_vm0, %v2578_v60  ;;  %v1361_v28 = vpop.xlane.xlu0 %1360  ;;  %v6619_v56 = vld [vmem:[#allocation19_spill] sm:$0xff] }
 0x2c0   :  { %3149 = vst.msk [vmem:[%s6332_s9 + $0x88] sm:$0xff] %vm1182_vm0, %v2579_v3  ;;  %3150 = vst.msk [vmem:[%s6332_s9 + $0x90] sm:$0xff] %vm1182_vm0, %v2580_v20  ;;  %v2590_v4 = vmul.f32 %v3626_v27, %v5625_v55  ;;  %v2591_v44 = vmul.f32 %v3626_v27, %v5635_v49  ;;  %v2592_v57 = vmul.f32 %v3626_v27, %v5643_v2  ;;  %v1352_v2 = vpop.xlane.xlu1 %1351  ;;  %v6620_v3 = vld [vmem:[#allocation22_spill] sm:$0xff] }
 0x2c1   :  { %3151 = vst.msk [vmem:[%s6332_s9 + $0x98] sm:$0xff] %vm1182_vm0, %v2581_v52  ;;  %v2593_v47 = vmul.f32 %v3626_v27, %v5654_v7  ;;  %3152 = vst.msk [vmem:[%s6332_s9 + $0xa0] sm:$0xff] %vm1182_vm0, %v2582_v18  ;;  %v1390_v7 = vsub.f32 %v6618_v63, %v1352_v2  ;;  %v1393_v21 = vsub.f32 %v6619_v56, %v1361_v28  ;;  %v5804_v55 = vpop.eup %3627  ;;  %v6621_v18 = vld [vmem:[#allocation26_spill] sm:$0xff] }
 0x2c2   :  { %3153 = vst.msk [vmem:[%s6332_s9 + $0xa8] sm:$0xff] %vm1182_vm0, %v2583_v9  ;;  %3154 = vst.msk [vmem:[%s6332_s9 + $0xb0] sm:$0xff] %vm1182_vm0, %v2584_v31  ;;  %v1452_v27 = vsel %vm1182_vm0, %v5804_v55, 0.0 }
 0x2c3   :  { %3155 = vst.msk [vmem:[%s6332_s9 + $0xb8] sm:$0xff] %vm1182_vm0, %v2585_v13  ;;  %3156 = vst.msk [vmem:[%s6332_s9 + $0xc0] sm:$0xff] %vm1182_vm0, %v2586_v22  ;;  %v1410_v61 = vmul.f32 1.442695, %v1390_v7  ;;  %v1416_v49 = vmul.f32 1.442695, %v1393_v21  ;;  %1453 = vadd.xlane.f32.xlu1 %v1452_v27 }
 0x2c4   :  { %3157 = vst.msk [vmem:[%s6332_s9 + $0xc8] sm:$0xff] %vm1182_vm0, %v2587_v15  ;;  %3158 = vst.msk [vmem:[%s6332_s9 + $0xd0] sm:$0xff] %vm1182_vm0, %v2588_v54  ;;  %v5806_v22 = vpop.xlane.xlu1 %1527  ;;  %v5810_v12 = vpop.xlane.xlu0 %1536 }
 0x2c5   :  { %3159 = vst.msk [vmem:[%s6332_s9 + $0xd8] sm:$0xff] %vm1182_vm0, %v2589_v35  ;;  %3160 = vst.msk [vmem:[%s6332_s9 + $0xe0] sm:$0xff] %vm1182_vm0, %v2590_v4  ;;  %3629 = vpow2.f32 %v1410_v61  ;;  %v6622_v4 = vld [vmem:[#allocation29_spill] sm:$0xff] }
 0x2c6   :  { %3161 = vst.msk [vmem:[%s6332_s9 + $0xe8] sm:$0xff] %vm1182_vm0, %v2591_v44  ;;  %3162 = vst.msk [vmem:[%s6332_s9 + $0xf0] sm:$0xff] %vm1182_vm0, %v2592_v57  ;;  %3631 = vpow2.f32 %v1416_v49 }
 0x2c7   :  { %3163 = vst.msk [vmem:[%s6332_s9 + $0xf8] sm:$0xff] %vm1182_vm0, %v2593_v47  ;;  %v6623_v47 = vld [vmem:[#allocation30_spill] sm:$0xff] }
 0x2c8   :  { %v1370_v60 = vpop.xlane.xlu1 %1369 }
 0x2c9   :  { %v1396_v20 = vsub.f32 %v6620_v3, %v1370_v60  ;;  %v1355_v52 = vpop.xlane.xlu0 %1354 }
 0x2ca   :  { %v1391_v9 = vsub.f32 %v6621_v18, %v1355_v52 }
 0x2cb   :  { %v1422_v31 = vmul.f32 1.442695, %v1396_v20 }
 0x2cc   :  { %v1412_v13 = vmul.f32 1.442695, %v1391_v9  ;;  %v5814_v15 = vpop.xlane.xlu1 %1545 }
 0x2cd   :  { %3633 = vpow2.f32 %v1422_v31  ;;  %v5816_v54 = vpop.xlane.xlu0 %1530 }
 0x2ce   :  { %3635 = vpow2.f32 %v1412_v13 }
 0x2d0   :  { %v1364_v35 = vpop.xlane.xlu1 %1363 }
 0x2d1   :  { %v1394_v44 = vsub.f32 %v6622_v4, %v1364_v35  ;;  %v1373_v57 = vpop.xlane.xlu0 %1372 }
 0x2d2   :  { %v1397_v2 = vsub.f32 %v6623_v47, %v1373_v57  ;;  %v5820_v7 = vpop.eup %3629 }
 0x2d3   :  { %6624 = vst [vmem:[#allocation6_spill] sm:$0xff] %v5820_v7  ;;  %v1418_v28 = vmul.f32 1.442695, %v1394_v44  ;;  %v5822_v61 = vpop.eup %3631  ;;  %v1446_v27 = vsel %vm1182_vm0, %v5820_v7, 0.0 }
 0x2d4   :  { %6625 = vst [vmem:[#allocation20_spill] sm:$0xff] %v5822_v61  ;;  %v1424_v21 = vmul.f32 1.442695, %v1397_v2  ;;  %v5824_v49 = vpop.xlane.xlu1 %1539  ;;  %1447 = vadd.xlane.f32.xlu1 %v1446_v27  ;;  %v1455_v60 = vsel %vm1182_vm0, %v5822_v61, 0.0 }
 0x2d5   :  { %3637 = vpow2.f32 %v1418_v28  ;;  %v5830_v20 = vpop.xlane.xlu0 %1548  ;;  %1456 = vadd.xlane.f32.xlu0 %v1455_v60 }
 0x2d6   :  { %3639 = vpow2.f32 %v1424_v21 }
 0x2d8   :  { %v1382_v52 = vpop.xlane.xlu1 %1381 }
 0x2d9   :  { %v1400_v9 = vsub.f32 %v5134_v59, %v1382_v52  ;;  %v1367_v31 = vpop.xlane.xlu0 %1366 }
 0x2da   :  { %v5833_v13 = vpop.eup %3633  ;;  %v1395_v35 = vsub.f32 %v5124_v36, %v1367_v31 }
 0x2db   :  { %6626 = vst [vmem:[#allocation13_spill] sm:$0xff] %v5833_v13  ;;  %v5836_v44 = vpop.eup %3635  ;;  %v1430_v57 = vmul.f32 1.442695, %v1400_v9  ;;  %v1464_v2 = vsel %vm1182_vm0, %v5833_v13, 0.0 }
 0x2dc   :  { %6627 = vst [vmem:[#allocation18_spill] sm:$0xff] %v5836_v44  ;;  %v1420_v28 = vmul.f32 1.442695, %v1395_v35  ;;  %v5840_v27 = vpop.xlane.xlu1 %1557  ;;  %1465 = vadd.xlane.f32.xlu1 %v1464_v2  ;;  %v1449_v21 = vsel %vm1182_vm0, %v5836_v44, 0.0 }
 0x2dd   :  { %3641 = vpow2.f32 %v1430_v57  ;;  %1450 = vadd.xlane.f32.xlu0 %v1449_v21  ;;  %v5844_v60 = vpop.xlane.xlu0 %1542 }
 0x2de   :  { %3643 = vpow2.f32 %v1420_v28 }
 0x2e0   :  { %v1376_v52 = vpop.xlane.xlu1 %1375 }
 0x2e1   :  { %v1398_v31 = vsub.f32 %v5148_v46, %v1376_v52  ;;  %v1385_v61 = vpop.xlane.xlu0 %1384 }
 0x2e2   :  { %v5847_v9 = vpop.eup %3637  ;;  %v1401_v13 = vsub.f32 %v5154_v43, %v1385_v61 }
 0x2e3   :  { %6628 = vst [vmem:[#allocation19_spill] sm:$0xff] %v5847_v9  ;;  %v5850_v35 = vpop.eup %3639  ;;  %v1426_v7 = vmul.f32 1.442695, %v1398_v31  ;;  %v1458_v2 = vsel %vm1182_vm0, %v5847_v9, 0.0 }
 0x2e4   :  { %6629 = vst [vmem:[#allocation22_spill] sm:$0xff] %v5850_v35  ;;  %v1432_v44 = vmul.f32 1.442695, %v1401_v13  ;;  %v5854_v57 = vpop.xlane.xlu1 %1551  ;;  %1459 = vadd.xlane.f32.xlu1 %v1458_v2  ;;  %v1467_v28 = vsel %vm1182_vm0, %v5850_v35, 0.0 }
 0x2e5   :  { %3645 = vpow2.f32 %v1426_v7  ;;  %1468 = vadd.xlane.f32.xlu0 %v1467_v28  ;;  %v5858_v21 = vpop.xlane.xlu0 %1560 }
 0x2e6   :  { %6630 = vst [vmem:[#allocation26_spill] sm:$0xff] %v5858_v21  ;;  %3647 = vpow2.f32 %v1432_v44 }
 0x2e8   :  { %v2613_v52 = vpop.xlane.xlu1 %2612 }
 0x2e9   :  { %v1379_v61 = vpop.xlane.xlu0 %1378  ;;  %v2659_v35 = vsub.f32 %v5329_v17, %v2613_v52 }
 0x2ea   :  { %v5860_v43 = vpop.eup %3641  ;;  %v1399_v31 = vsub.f32 %v5335_v11, %v1379_v61 }
 0x2eb   :  { %6631 = vst [vmem:[#allocation29_spill] sm:$0xff] %v5860_v43  ;;  %v5863_v46 = vpop.eup %3643  ;;  %v1476_v13 = vsel %vm1182_vm0, %v5860_v43, 0.0 }
 0x2ec   :  { %6632 = vst [vmem:[#allocation30_spill] sm:$0xff] %v5863_v46  ;;  %v1428_v2 = vmul.f32 1.442695, %v1399_v31  ;;  %1477 = vadd.xlane.f32.xlu1 %v1476_v13  ;;  %v1461_v7 = vsel %vm1182_vm0, %v5863_v46, 0.0  ;;  %v5869_v28 = vpop.xlane.xlu1 %2788 }
 0x2ed   :  { %6633 = vst [vmem:[#allocation55_spill] sm:$0xff] %v5869_v28  ;;  %1462 = vadd.xlane.f32.xlu0 %v1461_v7  ;;  %v5871_v44 = vpop.xlane.xlu0 %1554  ;;  %v2675_v7 = vmul.f32 1.442695, %v2659_v35 }
 0x2ee   :  { %3649 = vpow2.f32 %v1428_v2 }
 0x2f0   :  { %v2622_v9 = vpop.xlane.xlu1 %2621 }
 0x2f1   :  { %v2619_v61 = vpop.xlane.xlu0 %2618  ;;  %v2662_v11 = vsub.f32 %v5352_v10, %v2622_v9 }
 0x2f2   :  { %v5875_v21 = vpop.eup %3645  ;;  %v2661_v31 = vsub.f32 %v5356_v5, %v2619_v61 }
 0x2f3   :  { %6634 = vst [vmem:[#allocation56_spill] sm:$0xff] %v5875_v21  ;;  %v5878_v13 = vpop.eup %3647  ;;  %v1470_v46 = vsel %vm1182_vm0, %v5875_v21, 0.0  ;;  %v2681_v43 = vmul.f32 1.442695, %v2662_v11 }
 0x2f4   :  { %6635 = vst [vmem:[#allocation57_spill] sm:$0xff] %v5878_v13  ;;  %v2679_v28 = vmul.f32 1.442695, %v2661_v31  ;;  %1471 = vadd.xlane.f32.xlu1 %v1470_v46  ;;  %v1479_v52 = vsel %vm1182_vm0, %v5878_v13, 0.0 }
 0x2f5   :  { %1480 = vadd.xlane.f32.xlu0 %v1479_v52  ;;  %3651 = vpow2.f32 %v2681_v43  ;;  %v5884_v9 = vpop.xlane.xlu0 %2794 }
 0x2f6   :  { %3653 = vpow2.f32 %v2679_v28 }
 0x2f7   :  { %3655 = vpow2.f32 %v2675_v7 }
 0x2fb   :  { %v5886_v2 = vpop.eup %3649 }
 0x2fc   :  { %6636 = vst [vmem:[#allocation58_spill] sm:$0xff] %v5886_v2  ;;  %v1473_v61 = vsel %vm1182_vm0, %v5886_v2, 0.0 }
 0x2fd   :  { %1474 = vadd.xlane.f32.xlu0 %v1473_v61 }
 0x2ff   :  { %v2616_v21 = vpop.xlane.xlu0 %2615 }
 0x300   :  { %v2660_v11 = vsub.f32 %v5477_v45, %v2616_v21  ;;  %v5893_v46 = vpop.xlane.xlu1 %2797 }
 0x302   :  { %v5891_v35 = vpop.eup %3651  ;;  %v2677_v43 = vmul.f32 1.442695, %v2660_v11 }
 0x303   :  { %6637 = vst [vmem:[#allocation59_spill] sm:$0xff] %v5891_v35  ;;  %v5895_v31 = vpop.eup %3653  ;;  %v2716_v28 = vsel %vm1182_vm0, %v5891_v35, 0.0  ;;  %v5903_v61 = vpop.xlane.xlu0 %2791 }
 0x304   :  { %6638 = vst [vmem:[#allocation60_spill] sm:$0xff] %v5895_v31  ;;  %v2713_v7 = vsel %vm1182_vm0, %v5895_v31, 0.0  ;;  %2717 = vadd.xlane.f32.xlu1 %v2716_v28  ;;  %v5901_v52 = vpop.eup %3655  ;;  %3657 = vpow2.f32 %v2677_v43  ;;  %6640 = vst [vmem:[#allocation62_spill] sm:$0xff] %v5903_v61  ;;  %v2634_v21 = vpop.xlane.xlu1 %2633 }
 0x305   :  { %6639 = vst [vmem:[#allocation61_spill] sm:$0xff] %v5901_v52  ;;  %2714 = vadd.xlane.f32.xlu0 %v2713_v7  ;;  %v2666_v2 = vsub.f32 %v5503_v33, %v2634_v21  ;;  %v2707_v45 = vsel %vm1182_vm0, %v5901_v52, 0.0 }
 0x307   :  { %v2631_v11 = vpop.xlane.xlu0 %2630  ;;  %v2689_v13 = vmul.f32 1.442695, %v2666_v2 }
 0x308   :  { %v2665_v35 = vsub.f32 %v5507_v39, %v2631_v11 }
 0x309   :  { %2708 = vadd.xlane.f32.xlu0 %v2707_v45  ;;  %3659 = vpow2.f32 %v2689_v13  ;;  %v5909_v28 = vpop.xlane.xlu1 %2809 }
 0x30a   :  { %v2687_v31 = vmul.f32 1.442695, %v2665_v35 }
 0x30c   :  { %3661 = vpow2.f32 %v2687_v31 }
 0x30f   :  { %v5913_v61 = vpop.xlane.xlu0 %2806 }
 0x310   :  { %6642 = vst [vmem:[#allocation64_spill] sm:$0xff] %v5913_v61 }
 0x311   :  { %v5911_v43 = vpop.eup %3657  ;;  %v2628_v21 = vpop.xlane.xlu1 %2627 }
 0x312   :  { %6641 = vst [vmem:[#allocation63_spill] sm:$0xff] %v5911_v43  ;;  %v2710_v7 = vsel %vm1182_vm0, %v5911_v43, 0.0  ;;  %v2664_v52 = vsub.f32 %v5566_v0, %v2628_v21 }
 0x313   :  { %2711 = vadd.xlane.f32.xlu1 %v2710_v7 }
 0x314   :  { %v2685_v2 = vmul.f32 1.442695, %v2664_v52 }
 0x315   :  { %v2625_v45 = vpop.xlane.xlu0 %2624  ;;  %v5921_v35 = vpop.xlane.xlu1 %2803 }
 0x316   :  { %v2663_v11 = vsub.f32 %v5574_v29, %v2625_v45  ;;  %v5919_v13 = vpop.eup %3659  ;;  %6644 = vst [vmem:[#allocation66_spill] sm:$0xff] %v5921_v35  ;;  %3663 = vpow2.f32 %v2685_v2 }
 0x317   :  { %6643 = vst [vmem:[#allocation65_spill] sm:$0xff] %v5919_v13  ;;  %v2728_v7 = vsel %vm1182_vm0, %v5919_v13, 0.0 }
 0x318   :  { %v2683_v31 = vmul.f32 1.442695, %v2663_v11  ;;  %2729 = vadd.xlane.f32.xlu1 %v2728_v7 }
 0x319   :  { %v5923_v39 = vpop.eup %3661  ;;  %v5925_v33 = vpop.xlane.xlu0 %2800 }
 0x31a   :  { %6645 = vst [vmem:[#allocation67_spill] sm:$0xff] %v5923_v39  ;;  %6646 = vst [vmem:[#allocation68_spill] sm:$0xff] %v5925_v33  ;;  %v2725_v21 = vsel %vm1182_vm0, %v5923_v39, 0.0  ;;  %3665 = vpow2.f32 %v2683_v31  ;;  %v6650_v31 = vld [vmem:[#allocation28_spill] sm:$0xff] }
 0x31b   :  { %2726 = vadd.xlane.f32.xlu0 %v2725_v21  ;;  %v1741_v21 = vsub.f32 %v6605_v23, %v6650_v31 }
 0x31d   :  { %v2646_v52 = vpop.xlane.xlu1 %2645 }
 0x31e   :  { %v2670_v45 = vsub.f32 %v5602_v24, %v2646_v52  ;;  %v6651_v24 = vld [vmem:[#allocation33_spill] sm:$0xff] }
 0x31f   :  { %v2643_v43 = vpop.xlane.xlu0 %2642 }
 0x320   :  { %v2697_v0 = vmul.f32 1.442695, %v2670_v45  ;;  %v2669_v2 = vsub.f32 %v5612_v19, %v2643_v43  ;;  %v1742_v45 = vsub.f32 %v6610_v42, %v6651_v24 }
 0x321   :  { %v5933_v11 = vpop.xlane.xlu1 %2821 }
 0x322   :  { %6647 = vst [vmem:[#allocation69_spill] sm:$0xff] %v5933_v11  ;;  %3667 = vpow2.f32 %v2697_v0  ;;  %v2695_v33 = vmul.f32 1.442695, %v2669_v2 }
 0x323   :  { %v5935_v29 = vpop.xlane.xlu0 %2818  ;;  %v5938_v39 = vpop.eup %3663 }
 0x324   :  { %6648 = vst [vmem:[#allocation70_spill] sm:$0xff] %v5935_v29  ;;  %3669 = vpow2.f32 %v2695_v33  ;;  %6649 = vst [vmem:[#allocation71_spill] sm:$0xff] %v5938_v39  ;;  %v2722_v33 = vsel %vm1182_vm0, %v5938_v39, 0.0  ;;  %v1757_v29 = vmul.f32 %v1741_v21, %v1741_v21  ;;  %v1563_v21 = vmul.f32 0.125, %v5652_v62 }
 0x325   :  { %v2640_v7 = vpop.xlane.xlu1 %2639  ;;  %2723 = vadd.xlane.f32.xlu1 %v2722_v33  ;;  %v1564_v62 = vmul.f32 0.125, %v5728_v16 }
 0x326   :  { %v2668_v13 = vsub.f32 %v5639_v50, %v2640_v7  ;;  %v1565_v7 = vmul.f32 0.125, %v5633_v38 }
 0x327   :  { %v2637_v52 = vpop.xlane.xlu0 %2636  ;;  %v5949_v2 = vpop.eup %3665 }
 0x328   :  { %v2693_v43 = vmul.f32 1.442695, %v2668_v13  ;;  %v2667_v19 = vsub.f32 %v5647_v58, %v2637_v52  ;;  %6653 = vst [vmem:[#allocation33_spill] sm:$0xff] %v5949_v2  ;;  %v2719_v11 = vsel %vm1182_vm0, %v5949_v2, 0.0  ;;  %v1758_v13 = vmul.f32 %v1742_v45, %v1742_v45 }
 0x329   :  { %v5945_v0 = vpop.xlane.xlu1 %2815  ;;  %2720 = vadd.xlane.f32.xlu0 %v2719_v11  ;;  %v1566_v52 = vmul.f32 0.125, %v5710_v1  ;;  %v1581_v39 = vsub.f32 %v6605_v23, %v1565_v7 }
 0x32a   :  { %6652 = vst [vmem:[#allocation28_spill] sm:$0xff] %v5945_v0  ;;  %3671 = vpow2.f32 %v2693_v43  ;;  %v2691_v50 = vmul.f32 1.442695, %v2667_v19  ;;  %v1773_v19 = vsub.f32 0.0, %v1757_v29  ;;  %v1774_v33 = vsub.f32 0.0, %v1758_v13 }
 0x32b   :  { %v5954_v35 = vpop.xlane.xlu0 %2812  ;;  %v1582_v45 = vsub.f32 %v6610_v42, %v1566_v52  ;;  %v1597_v29 = vmul.f32 %v1581_v39, %v1581_v39  ;;  %v1579_v13 = vsub.f32 %v6608_v6, %v1563_v21  ;;  %v6660_v42 = vld [vmem:[#allocation34_spill] sm:$0xff] }
 0x32c   :  { %6654 = vst [vmem:[#allocation72_spill] sm:$0xff] %v5954_v35  ;;  %3673 = vpow2.f32 %v2691_v50  ;;  %v6657_v50 = vld [vmem:[#allocation21_spill] sm:$0xff]  ;;  %v1869_v7 = vmul.f32 %v5484_v34, %v1773_v19  ;;  %v1740_v52 = vsub.f32 %v6612_v14, %v6660_v42  ;;  %v1580_v19 = vsub.f32 %v6612_v14, %v1564_v62 }
 0x32d   :  { %v2658_v0 = vpop.xlane.xlu1 %2657  ;;  %v1739_v23 = vsub.f32 %v6608_v6, %v6657_v50  ;;  %v1598_v16 = vmul.f32 %v1582_v45, %v1582_v45 }
 0x32e   :  { %v2674_v58 = vsub.f32 %v5667_v25, %v2658_v0  ;;  %v1596_v62 = vmul.f32 %v1580_v19, %v1580_v19 }
 0x32f   :  { %v5959_v38 = vpop.eup %3667  ;;  %v2655_v43 = vpop.xlane.xlu0 %2654  ;;  %v1755_v39 = vmul.f32 %v1739_v23, %v1739_v23 }
 0x330   :  { %6655 = vst [vmem:[#allocation73_spill] sm:$0xff] %v5959_v38  ;;  %v2705_v2 = vmul.f32 1.442695, %v2674_v58  ;;  %v2673_v35 = vsub.f32 %v5672_v26, %v2655_v43  ;;  %v2740_v11 = vsel %vm1182_vm0, %v5959_v38, 0.0  ;;  %v1870_v38 = vmul.f32 %v5505_v30, %v1774_v33 }
 0x331   :  { %v5965_v1 = vpop.eup %3669  ;;  %v5970_v0 = vpop.xlane.xlu1 %2833  ;;  %2741 = vadd.xlane.f32.xlu1 %v2740_v11  ;;  %v1887_v11 = vmul.f32 1.442695, %v1869_v7  ;;  %v1756_v33 = vmul.f32 %v1740_v52, %v1740_v52 }
 0x332   :  { %6656 = vst [vmem:[#allocation74_spill] sm:$0xff] %v5965_v1  ;;  %6658 = vst [vmem:[#allocation21_spill] sm:$0xff] %v5970_v0  ;;  %3675 = vpow2.f32 %v2705_v2  ;;  %v2703_v58 = vmul.f32 1.442695, %v2673_v35  ;;  %v2737_v43 = vsel %vm1182_vm0, %v5965_v1, 0.0  ;;  %v1613_v35 = vsub.f32 0.0, %v1597_v29 }
 0x333   :  { %v5977_v26 = vpop.xlane.xlu0 %2830  ;;  %2738 = vadd.xlane.f32.xlu0 %v2737_v43  ;;  %v1595_v1 = vmul.f32 %v1579_v13, %v1579_v13  ;;  %v1889_v25 = vmul.f32 1.442695, %v1870_v38  ;;  %v1614_v43 = vsub.f32 0.0, %v1598_v16  ;;  %v1772_v52 = vsub.f32 0.0, %v1756_v33 }
 0x334   :  { %6659 = vst [vmem:[#allocation75_spill] sm:$0xff] %v5977_v26  ;;  %3677 = vpow2.f32 %v2703_v58  ;;  %v1771_v58 = vsub.f32 0.0, %v1755_v39  ;;  %v1631_v29 = vmul.f32 1.442695, %v1613_v35 }
 0x335   :  { %v2652_v2 = vpop.xlane.xlu1 %2651  ;;  %v1611_v38 = vsub.f32 0.0, %v1595_v1  ;;  %v1633_v16 = vmul.f32 1.442695, %v1614_v43  ;;  %v6666_v1 = vld [vmem:[#allocation38_spill] sm:$0xff] }
 0x336   :  { %v2672_v6 = vsub.f32 %v5683_v8, %v2652_v2  ;;  %v1867_v39 = vmul.f32 %v5364_v37, %v1771_v58  ;;  %v1569_v2 = vmul.f32 0.125, %v5716_v48  ;;  %v1745_v19 = vsub.f32 %v6616_v32, %v6666_v1 }
 0x337   :  { %v5984_v21 = vpop.eup %3671  ;;  %v2649_v26 = vpop.xlane.xlu0 %2648 }
 0x338   :  { %6661 = vst [vmem:[#allocation34_spill] sm:$0xff] %v5984_v21  ;;  %v2701_v0 = vmul.f32 1.442695, %v2672_v6  ;;  %v2671_v61 = vsub.f32 %v5687_v53, %v2649_v26  ;;  %v2734_v45 = vsel %vm1182_vm0, %v5984_v21, 0.0  ;;  %v1627_v6 = vmul.f32 1.442695, %v1611_v38 }
 0x339   :  { %v5987_v23 = vpop.xlane.xlu1 %2827  ;;  %v5991_v14 = vpop.eup %3673  ;;  %2735 = vadd.xlane.f32.xlu1 %v2734_v45  ;;  %v1883_v48 = vmul.f32 1.442695, %v1867_v39  ;;  %v1585_v45 = vsub.f32 %v6616_v32, %v1569_v2  ;;  %v1761_v38 = vmul.f32 %v1745_v19, %v1745_v19 }
 0x33a   :  { %6662 = vst [vmem:[#allocation76_spill] sm:$0xff] %v5987_v23  ;;  %6663 = vst [vmem:[#allocation77_spill] sm:$0xff] %v5991_v14  ;;  %3679 = vpow2.f32 %v2701_v0  ;;  %v2699_v7 = vmul.f32 1.442695, %v2671_v61  ;;  %v2731_v13 = vsel %vm1182_vm0, %v5991_v14, 0.0  ;;  %v1612_v61 = vsub.f32 0.0, %v1596_v62 }
 0x33b   :  { %3681 = vpow2.f32 %v1887_v11  ;;  %v5995_v26 = vpop.xlane.xlu0 %2824  ;;  %2732 = vadd.xlane.f32.xlu0 %v2731_v13  ;;  %v6674_v23 = vld [vmem:[#allocation7_spill] sm:$0xff] }
 0x33c   :  { %6664 = vst [vmem:[#allocation78_spill] sm:$0xff] %v5995_v26  ;;  %3683 = vpow2.f32 %v1889_v25  ;;  %v6667_v25 = vld [vmem:[#allocation23_spill] sm:$0xff]  ;;  %v1629_v62 = vmul.f32 1.442695, %v1612_v61 }
 0x33d   :  { %3685 = vpow2.f32 %v2699_v7  ;;  %v1442_v35 = vpop.xlane.xlu1 %1441  ;;  %v1868_v33 = vmul.f32 %v6667_v25, %v1772_v52 }
 0x33e   :  { %3687 = vpow2.f32 %v1631_v29 }
 0x33f   :  { %v5999_v0 = vpop.eup %3675  ;;  %3689 = vrcp.f32 %v1442_v35  ;;  %v1445_v11 = vpop.xlane.xlu0 %1444  ;;  %v1885_v52 = vmul.f32 1.442695, %v1868_v33  ;;  %v1601_v35 = vmul.f32 %v1585_v45, %v1585_v45 }
 0x340   :  { %6665 = vst [vmem:[#allocation79_spill] sm:$0xff] %v5999_v0  ;;  %v2752_v58 = vsel %vm1182_vm0, %v5999_v0, 0.0  ;;  %3691 = vrcp.f32 %v1445_v11 }
 0x341   :  { %v6006_v43 = vpop.eup %3677  ;;  %3693 = vpow2.f32 %v1633_v16  ;;  %2753 = vadd.xlane.f32.xlu1 %v2752_v58  ;;  %v1436_v29 = vpop.xlane.xlu1 %1435  ;;  %v1777_v16 = vsub.f32 0.0, %v1761_v38  ;;  %v1617_v11 = vsub.f32 0.0, %v1601_v35  ;;  %v6671_v58 = vld [vmem:[#allocation48_spill] sm:$0xff] }
 0x342   :  { %6668 = vst [vmem:[#allocation38_spill] sm:$0xff] %v6006_v43  ;;  %v2749_v7 = vsel %vm1182_vm0, %v6006_v43, 0.0  ;;  %3695 = vrcp.f32 %v1436_v29 }
 0x343   :  { %3697 = vpow2.f32 %v1627_v6  ;;  %2750 = vadd.xlane.f32.xlu0 %v2749_v7  ;;  %v1439_v13 = vpop.xlane.xlu0 %1438  ;;  %v1873_v33 = vmul.f32 %v6671_v58, %v1777_v16  ;;  %v1639_v38 = vmul.f32 1.442695, %v1617_v11 }
 0x344   :  { %3699 = vrcp.f32 %v1439_v13  ;;  %v1567_v13 = vmul.f32 0.125, %v5806_v22 }
 0x345   :  { %3701 = vpow2.f32 %v1883_v48 }
 0x346   :  { %3703 = vpow2.f32 %v1629_v62  ;;  %v6672_v62 = vld [vmem:[#allocation36_spill] sm:$0xff] }
 0x347   :  { %v6011_v39 = vpop.eup %3679  ;;  %3705 = vpow2.f32 %v1885_v52  ;;  %v1743_v7 = vsub.f32 %v6618_v63, %v6672_v62 }
 0x348   :  { %6669 = vst [vmem:[#allocation23_spill] sm:$0xff] %v6011_v39  ;;  %v3682_v32 = vpop.eup %3681  ;;  %v2746_v2 = vsel %vm1182_vm0, %v6011_v39, 0.0  ;;  %v1895_v39 = vmul.f32 1.442695, %v1873_v33 }
 0x349   :  { %v3684_v61 = vpop.eup %3683  ;;  %2747 = vadd.xlane.f32.xlu1 %v2746_v2  ;;  %v1570_v2 = vmul.f32 0.125, %v5810_v12  ;;  %v1759_v8 = vmul.f32 %v1743_v7, %v1743_v7 }
 0x34a   :  { %v6015_v19 = vpop.eup %3685 }
 0x34b   :  { %6670 = vst [vmem:[#allocation80_spill] sm:$0xff] %v6015_v19  ;;  %v3688_v6 = vpop.eup %3687  ;;  %v2743_v48 = vsel %vm1182_vm0, %v6015_v19, 0.0  ;;  %v6673_v19 = vld [vmem:[#allocation37_spill] sm:$0xff] }
 0x34c   :  { %v3690_v45 = vpop.eup %3689  ;;  %2744 = vadd.xlane.f32.xlu0 %v2743_v48  ;;  %v1454_v16 = vpop.xlane.xlu1 %1453  ;;  %v1746_v48 = vsub.f32 %v6619_v56, %v6673_v19 }
 0x34d   :  { %v3692_v29 = vpop.eup %3691  ;;  %v1500_v52 = vmul.f32 %v3690_v45, %v5695_v40  ;;  %3707 = vrcp.f32 %v1454_v16  ;;  %v1583_v40 = vsub.f32 %v6618_v63, %v1567_v13  ;;  %v6675_v63 = vld [vmem:[#allocation35_spill] sm:$0xff] }
 0x34e   :  { %v3694_v35 = vpop.eup %3693  ;;  %v1501_v43 = vmul.f32 %v3692_v29, %v5699_v51  ;;  %3709 = vpow2.f32 %v1639_v38  ;;  %v1586_v51 = vsub.f32 %v6619_v56, %v1570_v2  ;;  %v1568_v56 = vmul.f32 0.125, %v5816_v54  ;;  %v6677_v2 = vld [vmem:[#allocation2_spill] sm:$0xff] }
 0x34f   :  { %v3696_v0 = vpop.eup %3695  ;;  %v1917_v14 = vadd.f32 %v3688_v6, %v1500_v52  ;;  %3711 = vpow2.f32 %v1895_v39  ;;  %v1762_v6 = vmul.f32 %v1746_v48, %v1746_v48 }
 0x350   :  { %v3698_v21 = vpop.eup %3697  ;;  %v1498_v11 = vmul.f32 %v3696_v0, %v5705_v41  ;;  %v1918_v26 = vadd.f32 %v3694_v35, %v1501_v43  ;;  %v1573_v41 = vmul.f32 0.125, %v5814_v15  ;;  %v1775_v35 = vsub.f32 0.0, %v1759_v8 }
 0x351   :  { %v3700_v22 = vpop.eup %3699  ;;  %v1933_v12 = vadd.f32 %v3682_v32, %v1917_v14  ;;  %v1744_v14 = vsub.f32 %v6621_v18, %v6675_v63  ;;  %v1599_v32 = vmul.f32 %v1583_v40, %v1583_v40  ;;  %v1602_v15 = vmul.f32 %v1586_v51, %v1586_v51 }
 0x352   :  { %v3702_v45 = vpop.eup %3701  ;;  %v1915_v29 = vadd.f32 %v3698_v21, %v1498_v11  ;;  %v1934_v33 = vadd.f32 %v3684_v61, %v1918_v26  ;;  %v1499_v53 = vmul.f32 %v3700_v22, %v6674_v23  ;;  %v6676_v21 = vld [vmem:[#allocation43_spill] sm:$0xff]  ;;  %v1778_v54 = vsub.f32 0.0, %v1762_v6 }
 0x353   :  { %v3704_v58 = vpop.eup %3703  ;;  %v1949_v52 = vmul.f32 0.33333334, %v1933_v12  ;;  %v1749_v23 = vsub.f32 %v6620_v3, %v6676_v21  ;;  %v1589_v39 = vsub.f32 %v6620_v3, %v1573_v41  ;;  %v1584_v13 = vsub.f32 %v6621_v18, %v1568_v56  ;;  %v6678_v3 = vld [vmem:[#allocation40_spill] sm:$0xff]  ;;  %v6680_v56 = vld [vmem:[#allocation41_spill] sm:$0xff] }
 0x354   :  { %v1931_v0 = vadd.f32 %v3702_v45, %v1915_v29  ;;  %v1950_v43 = vmul.f32 0.33333334, %v1934_v33  ;;  %v1916_v7 = vadd.f32 %v3704_v58, %v1499_v53  ;;  %v3706_v38 = vpop.eup %3705  ;;  %v194_v53 = vld [vmem:[%s6329_s8 + $0x78] sm:$0xff]  ;;  %v1615_v58 = vsub.f32 0.0, %v1599_v32  ;;  %v6679_v45 = vld [vmem:[#allocation47_spill] sm:$0xff] }
 0x355   :  { %1965 = vst.msk [vmem:[%s6333_s10 + $0x10] sm:$0xff] %vm1182_vm0, %v1949_v52  ;;  %v1871_v16 = vmul.f32 %v6677_v2, %v1775_v35  ;;  %v1760_v48 = vmul.f32 %v1744_v14, %v1744_v14  ;;  %v1765_v11 = vmul.f32 %v1749_v23, %v1749_v23  ;;  %v1618_v22 = vsub.f32 0.0, %v1602_v15 }
 0x356   :  { %v1947_v26 = vmul.f32 0.33333334, %v1931_v0  ;;  %1966 = vst.msk [vmem:[%s6333_s10 + $0x18] sm:$0xff] %vm1182_vm0, %v1950_v43  ;;  %v1932_v8 = vadd.f32 %v3706_v38, %v1916_v7  ;;  %v1747_v40 = vsub.f32 %v6622_v4, %v6678_v3  ;;  %v1874_v51 = vmul.f32 %v6679_v45, %v1778_v54 }
 0x357   :  { %v1605_v29 = vmul.f32 %v1589_v39, %v1589_v39  ;;  %v1571_v18 = vmul.f32 0.125, %v5824_v49  ;;  %v1635_v33 = vmul.f32 1.442695, %v1615_v58  ;;  %v1600_v6 = vmul.f32 %v1584_v13, %v1584_v13  ;;  %v193_v49 = vld [vmem:[%s6329_s8 + $0x70] sm:$0xff]  ;;  %v6681_v58 = vld [vmem:[#allocation10_spill] sm:$0xff] }
 0x358   :  { %1963 = vst.msk [vmem:[%s6333_s10] sm:$0xff] %vm1182_vm0, %v1947_v26  ;;  %v1948_v61 = vmul.f32 0.33333334, %v1932_v8  ;;  %v1574_v52 = vmul.f32 0.125, %v5830_v20  ;;  %v1891_v43 = vmul.f32 1.442695, %v1871_v16  ;;  %v1763_v32 = vmul.f32 %v1747_v40, %v1747_v40 }
 0x359   :  { %v1776_v7 = vsub.f32 0.0, %v1760_v48  ;;  %v1781_v38 = vsub.f32 0.0, %v1765_v11  ;;  %v1641_v35 = vmul.f32 1.442695, %v1618_v22  ;;  %v1750_v23 = vsub.f32 %v6623_v47, %v6680_v56  ;;  %v6682_v16 = vld [vmem:[#allocation14_spill] sm:$0xff] }
 0x35a   :  { %1864 = vperm.xlu1 %3518, %v194_v53   ;;  %1964 = vst.msk [vmem:[%s6333_s10 + $0x8] sm:$0xff] %vm1182_vm0, %v1948_v61  ;;  %v3708_v12 = vpop.eup %3707  ;;  %v1897_v8 = vmul.f32 1.442695, %v1874_v51  ;;  %v1587_v53 = vsub.f32 %v6622_v4, %v1571_v18  ;;  %v1616_v54 = vsub.f32 0.0, %v1600_v6  ;;  %v1590_v39 = vsub.f32 %v6623_v47, %v1574_v52  ;;  %v6683_v52 = vld [vmem:[#allocation39_spill] sm:$0xff] }
 0x35b   :  { %v1504_v41 = vmul.f32 %v3708_v12, %v5804_v55  ;;  %v3710_v0 = vpop.eup %3709  ;;  %v1621_v55 = vsub.f32 0.0, %v1605_v29  ;;  %v1872_v13 = vmul.f32 %v6681_v58, %v1776_v7  ;;  %v1877_v48 = vmul.f32 %v6682_v16, %v1781_v38 }
 0x35c   :  { %v3712_v20 = vpop.eup %3711  ;;  %v1779_v11 = vsub.f32 0.0, %v1763_v32  ;;  %v1766_v22 = vmul.f32 %v1750_v23, %v1750_v23  ;;  %v1603_v51 = vmul.f32 %v1587_v53, %v1587_v53  ;;  %v1577_v4 = vmul.f32 0.125, %v5840_v27  ;;  %v6684_v27 = vld [vmem:[#allocation9_spill] sm:$0xff] }
 0x35d   :  { %v1448_v14 = vpop.xlane.xlu1 %1447  ;;  %v1921_v15 = vadd.f32 %v3710_v0, %v1504_v41  ;;  %v1647_v12 = vmul.f32 1.442695, %v1621_v55  ;;  %v1637_v29 = vmul.f32 1.442695, %v1616_v54  ;;  %v1606_v18 = vmul.f32 %v1590_v39, %v1590_v39 }
 0x35e   :  { %3713 = vrcp.f32 %v1448_v14  ;;  %v1457_v26 = vpop.xlane.xlu0 %1456  ;;  %v1572_v47 = vmul.f32 0.125, %v5844_v60  ;;  %v1903_v6 = vmul.f32 1.442695, %v1877_v48  ;;  %v1748_v41 = vsub.f32 %v5124_v36, %v6683_v52 }
 0x35f   :  { %3715 = vrcp.f32 %v1457_v26  ;;  %v1937_v61 = vadd.f32 %v3712_v20, %v1921_v15  ;;  %v1782_v7 = vsub.f32 0.0, %v1766_v22  ;;  %v1875_v38 = vmul.f32 %v6684_v27, %v1779_v11  ;;  %v6687_v11 = vld [vmem:[#allocation6_spill] sm:$0xff] }
 0x360   :  { %3717 = vpow2.f32 %v1635_v33  ;;  %v1593_v60 = vsub.f32 %v5134_v59, %v1577_v4  ;;  %v1622_v14 = vsub.f32 0.0, %v1606_v18  ;;  %v1588_v32 = vsub.f32 %v5124_v36, %v1572_v47  ;;  %v6689_v4 = vld [vmem:[#allocation31_spill] sm:$0xff]  ;;  %v6690_v18 = vld [vmem:[#allocation20_spill] sm:$0xff] }
 0x361   :  { %3719 = vpow2.f32 %v1641_v35  ;;  %v1953_v40 = vmul.f32 0.33333334, %v1937_v61  ;;  %v1619_v35 = vsub.f32 0.0, %v1603_v51  ;;  %v1764_v23 = vmul.f32 %v1748_v41, %v1748_v41  ;;  %v6688_v51 = vld [vmem:[#allocation44_spill] sm:$0xff] }
 0x362   :  { %1859 = vperm.xlu0 %3517, %v193_v49   ;;  %3721 = vpow2.f32 %v1891_v43  ;;  %v1893_v43 = vmul.f32 1.442695, %v1872_v13  ;;  %v6685_v49 = vld [vmem:[#allocation51_spill] sm:$0xff]  ;;  %v1899_v20 = vmul.f32 1.442695, %v1875_v38  ;;  %v1609_v55 = vmul.f32 %v1593_v60, %v1593_v60  ;;  %v6686_v13 = vld [vmem:[#allocation26_spill] sm:$0xff] }
 0x363   :  { %3723 = vpow2.f32 %v1897_v8  ;;  %1969 = vst.msk [vmem:[%s6333_s10 + $0x30] sm:$0xff] %vm1182_vm0, %v1953_v40  ;;  %v1878_v15 = vmul.f32 %v6685_v49, %v1782_v7  ;;  %v1643_v8 = vmul.f32 1.442695, %v1619_v35  ;;  %v1575_v53 = vmul.f32 0.125, %v5854_v57 }
 0x364   :  { %v1649_v39 = vmul.f32 1.442695, %v1622_v14  ;;  %v1604_v61 = vmul.f32 %v1588_v32, %v1588_v32  ;;  %v1578_v48 = vmul.f32 0.125, %v6686_v13  ;;  %v6691_v14 = vld [vmem:[#allocation32_spill] sm:$0xff] }
 0x365   :  { %v1466_v33 = vpop.xlane.xlu1 %1465  ;;  %v1905_v41 = vmul.f32 1.442695, %v1878_v15  ;;  %v1591_v7 = vsub.f32 %v6689_v4, %v1575_v53  ;;  %v6693_v53 = vld [vmem:[#allocation13_spill] sm:$0xff] }
 0x366   :  { %3725 = vrcp.f32 %v1466_v33  ;;  %v1451_v0 = vpop.xlane.xlu0 %1450  ;;  %v1620_v60 = vsub.f32 0.0, %v1604_v61  ;;  %v1594_v32 = vsub.f32 %v6691_v14, %v1578_v48  ;;  %v1576_v48 = vmul.f32 0.125, %v5871_v44 }
 0x367   :  { %3727 = vrcp.f32 %v1451_v0 }
 0x368   :  { %3729 = vpow2.f32 %v1647_v12  ;;  %v1780_v12 = vsub.f32 0.0, %v1764_v23  ;;  %v1610_v61 = vmul.f32 %v1594_v32, %v1594_v32 }
 0x369   :  { %3731 = vpow2.f32 %v1637_v29  ;;  %v1751_v29 = vsub.f32 %v6689_v4, %v6688_v51 }
 0x36a   :  { %3733 = vpow2.f32 %v1903_v6 }
 0x36b   :  { %3735 = vpow2.f32 %v1893_v43  ;;  %v3714_v26 = vpop.eup %3713  ;;  %v1625_v43 = vsub.f32 0.0, %v1609_v55  ;;  %v1767_v13 = vmul.f32 %v1751_v29, %v1751_v29  ;;  %v1607_v55 = vmul.f32 %v1591_v7, %v1591_v7 }
 0x36c   :  { %v3716_v54 = vpop.eup %3715  ;;  %v1502_v22 = vmul.f32 %v3714_v26, %v6687_v11  ;;  %v6692_v26 = vld [vmem:[#allocation8_spill] sm:$0xff] }
 0x36d   :  { %v1460_v40 = vpop.xlane.xlu1 %1459  ;;  %v3718_v36 = vpop.eup %3717  ;;  %v1505_v47 = vmul.f32 %v3716_v54, %v6690_v18  ;;  %v1876_v54 = vmul.f32 %v6692_v26, %v1780_v12  ;;  %v1623_v32 = vsub.f32 0.0, %v1607_v55 }
 0x36e   :  { %3737 = vrcp.f32 %v1460_v40  ;;  %v1469_v33 = vpop.xlane.xlu0 %1468  ;;  %v3720_v6 = vpop.eup %3719  ;;  %v1919_v57 = vadd.f32 %v3718_v36, %v1502_v22 }
 0x36f   :  { %3739 = vrcp.f32 %v1469_v33  ;;  %v3722_v0 = vpop.eup %3721  ;;  %v1922_v38 = vadd.f32 %v3720_v6, %v1505_v47  ;;  %v1901_v33 = vmul.f32 1.442695, %v1876_v54  ;;  %v1783_v6 = vsub.f32 0.0, %v1767_v13 }
 0x370   :  { %3741 = vpow2.f32 %v1643_v8  ;;  %v3724_v35 = vpop.eup %3723  ;;  %v1935_v23 = vadd.f32 %v3722_v0, %v1919_v57  ;;  %v1655_v8 = vmul.f32 1.442695, %v1625_v43  ;;  %v6695_v0 = vld [vmem:[#allocation3_spill] sm:$0xff]  ;;  %v6696_v43 = vld [vmem:[#allocation42_spill] sm:$0xff]  ;;  %v1626_v54 = vsub.f32 0.0, %v1610_v61 }
 0x371   :  { %3743 = vpow2.f32 %v1649_v39  ;;  %v1938_v11 = vadd.f32 %v3724_v35, %v1922_v38  ;;  %v1645_v39 = vmul.f32 1.442695, %v1620_v60  ;;  %v1752_v7 = vsub.f32 %v6696_v43, %v6695_v0 }
 0x372   :  { %3745 = vpow2.f32 %v1899_v20  ;;  %v1951_v22 = vmul.f32 0.33333334, %v1935_v23  ;;  %v6694_v20 = vld [vmem:[#allocation18_spill] sm:$0xff]  ;;  %v2933_v38 = vsub.f32 %v5356_v5, %v6650_v31  ;;  %v1592_v13 = vsub.f32 %v6696_v43, %v1576_v48 }
 0x373   :  { %v3726_v15 = vpop.eup %3725  ;;  %3747 = vpow2.f32 %v1905_v41  ;;  %v1954_v36 = vmul.f32 0.33333334, %v1938_v11  ;;  %v1657_v61 = vmul.f32 1.442695, %v1626_v54 }
 0x374   :  { %v3728_v40 = vpop.eup %3727  ;;  %v1508_v4 = vmul.f32 %v3726_v15, %v6693_v53  ;;  %1967 = vst.msk [vmem:[%s6333_s10 + $0x20] sm:$0xff] %vm1182_vm0, %v1951_v22  ;;  %v6697_v15 = vld [vmem:[#allocation54_spill] sm:$0xff]  ;;  %v1768_v53 = vmul.f32 %v1752_v7, %v1752_v7  ;;  %v1608_v48 = vmul.f32 %v1592_v13, %v1592_v13 }
 0x375   :  { %v3730_v18 = vpop.eup %3729  ;;  %v1503_v12 = vmul.f32 %v3728_v40, %v6694_v20  ;;  %v1478_v29 = vpop.xlane.xlu1 %1477  ;;  %1970 = vst.msk [vmem:[%s6333_s10 + $0x38] sm:$0xff] %vm1182_vm0, %v1954_v36  ;;  %v1879_v22 = vmul.f32 %v6697_v15, %v1783_v6  ;;  %v1651_v20 = vmul.f32 1.442695, %v1623_v32  ;;  %v6700_v32 = vld [vmem:[#allocation55_spill] sm:$0xff] }
 0x376   :  { %v3732_v47 = vpop.eup %3731  ;;  %v1925_v41 = vadd.f32 %v3730_v18, %v1508_v4  ;;  %3749 = vrcp.f32 %v1478_v29  ;;  %v1463_v57 = vpop.xlane.xlu0 %1462  ;;  %v2949_v4 = vmul.f32 %v2933_v38, %v2933_v38  ;;  %v2837_v29 = vmul.f32 0.125, %v5884_v9 }
 0x377   :  { %v3734_v44 = vpop.eup %3733  ;;  %v1920_v35 = vadd.f32 %v3732_v47, %v1503_v12  ;;  %3751 = vrcp.f32 %v1463_v57  ;;  %v2838_v12 = vmul.f32 0.125, %v5893_v46  ;;  %v6699_v47 = vld [vmem:[#allocation22_spill] sm:$0xff]  ;;  %v2934_v57 = vsub.f32 %v5352_v10, %v6651_v24 }
 0x378   :  { %v3736_v60 = vpop.eup %3735  ;;  %3753 = vpow2.f32 %v1655_v8  ;;  %v1941_v23 = vadd.f32 %v3734_v44, %v1925_v41  ;;  %v6698_v8 = vld [vmem:[#allocation19_spill] sm:$0xff]  ;;  %v1907_v41 = vmul.f32 1.442695, %v1879_v22  ;;  %v1784_v38 = vsub.f32 0.0, %v1768_v53  ;;  %v6701_v53 = vld [vmem:[#allocation52_spill] sm:$0xff] }
 0x379   :  { %3755 = vpow2.f32 %v1645_v39  ;;  %v1936_v11 = vadd.f32 %v3736_v60, %v1920_v35  ;;  %v2965_v35 = vsub.f32 0.0, %v2949_v4  ;;  %v2854_v54 = vsub.f32 %v5352_v10, %v2838_v12 }
 0x37a   :  { %v1957_v40 = vmul.f32 0.33333334, %v1941_v23  ;;  %3757 = vpow2.f32 %v1901_v33  ;;  %v2835_v23 = vmul.f32 0.125, %v6700_v32  ;;  %v2853_v22 = vsub.f32 %v5356_v5, %v2837_v29  ;;  %v6702_v5 = vld [vmem:[#allocation29_spill] sm:$0xff] }
 0x37b   :  { %v3738_v36 = vpop.eup %3737  ;;  %v1952_v18 = vmul.f32 0.33333334, %v1936_v11  ;;  %v1624_v11 = vsub.f32 0.0, %v1608_v48  ;;  %v1880_v4 = vmul.f32 %v6701_v53, %v1784_v38  ;;  %v2870_v10 = vmul.f32 %v2854_v54, %v2854_v54 }
 0x37c   :  { %v3740_v31 = vpop.eup %3739  ;;  %1973 = vst.msk [vmem:[%s6333_s10 + $0x50] sm:$0xff] %vm1182_vm0, %v1957_v40  ;;  %v1506_v55 = vmul.f32 %v3738_v36, %v6698_v8  ;;  %v2950_v40 = vmul.f32 %v2934_v57, %v2934_v57  ;;  %v2851_v48 = vsub.f32 %v5329_v17, %v2835_v23  ;;  %v2869_v29 = vmul.f32 %v2853_v22, %v2853_v22  ;;  %v6704_v22 = vld [vmem:[#allocation62_spill] sm:$0xff] }
 0x37d   :  { %v3742_v39 = vpop.eup %3741  ;;  %1968 = vst.msk [vmem:[%s6333_s10 + $0x28] sm:$0xff] %vm1182_vm0, %v1952_v18  ;;  %v1509_v33 = vmul.f32 %v3740_v31, %v6699_v47  ;;  %v1472_v46 = vpop.xlane.xlu1 %1471  ;;  %v2931_v31 = vsub.f32 %v5329_v17, %v6657_v50  ;;  %v6703_v50 = vld [vmem:[#allocation30_spill] sm:$0xff]  ;;  %v2886_v17 = vsub.f32 0.0, %v2870_v10 }
 0x37e   :  { %v3744_v6 = vpop.eup %3743  ;;  %v1923_v44 = vadd.f32 %v3742_v39, %v1506_v55  ;;  %3759 = vrcp.f32 %v1472_v46  ;;  %v1481_v43 = vpop.xlane.xlu0 %1480  ;;  %v2981_v55 = vmul.f32 %v2965_v35, %v5484_v34  ;;  %v2867_v38 = vmul.f32 %v2851_v48, %v2851_v48 }
 0x37f   :  { %v3746_v7 = vpop.eup %3745  ;;  %v1926_v9 = vadd.f32 %v3744_v6, %v1509_v33  ;;  %3761 = vrcp.f32 %v1481_v43  ;;  %v2966_v33 = vsub.f32 0.0, %v2950_v40  ;;  %v2947_v57 = vmul.f32 %v2931_v31, %v2931_v31  ;;  %v6705_v40 = vld [vmem:[#allocation56_spill] sm:$0xff] }
 0x380   :  { %v3748_v60 = vpop.eup %3747  ;;  %3763 = vpow2.f32 %v1651_v20  ;;  %v1939_v13 = vadd.f32 %v3746_v7, %v1923_v44  ;;  %v2999_v7 = vmul.f32 1.442695, %v2981_v55  ;;  %v2885_v35 = vsub.f32 0.0, %v2869_v29 }
 0x381   :  { %3765 = vpow2.f32 %v1657_v61  ;;  %v1942_v24 = vadd.f32 %v3748_v60, %v1926_v9  ;;  %v1653_v61 = vmul.f32 1.442695, %v1624_v11  ;;  %v2982_v60 = vmul.f32 %v2966_v33, %v5505_v30  ;;  %v6706_v30 = vld [vmem:[#allocation57_spill] sm:$0xff] }
 0x382   :  { %3767 = vpow2.f32 %v1907_v41  ;;  %v1955_v36 = vmul.f32 0.33333334, %v1939_v13  ;;  %v1909_v41 = vmul.f32 1.442695, %v1880_v4  ;;  %v2963_v23 = vsub.f32 0.0, %v2947_v57 }
 0x383   :  { %v3750_v18 = vpop.eup %3749  ;;  %v1958_v20 = vmul.f32 0.33333334, %v1942_v24  ;;  %v2905_v11 = vmul.f32 1.442695, %v2886_v17  ;;  %v2836_v24 = vmul.f32 0.125, %v6704_v22  ;;  %v2883_v4 = vsub.f32 0.0, %v2867_v38 }
 0x384   :  { %v3752_v8 = vpop.eup %3751  ;;  %1971 = vst.msk [vmem:[%s6333_s10 + $0x40] sm:$0xff] %vm1182_vm0, %v1955_v36  ;;  %v1512_v12 = vmul.f32 %v3750_v18, %v6702_v5  ;;  %v2903_v31 = vmul.f32 1.442695, %v2885_v35  ;;  %v3001_v10 = vmul.f32 1.442695, %v2982_v60  ;;  %v6707_v5 = vld [vmem:[#allocation27_spill] sm:$0xff]  ;;  %v2979_v29 = vmul.f32 %v2963_v23, %v5364_v37 }
 0x385   :  { %v3754_v39 = vpop.eup %3753  ;;  %1974 = vst.msk [vmem:[%s6333_s10 + $0x58] sm:$0xff] %vm1182_vm0, %v1958_v20  ;;  %v1507_v34 = vmul.f32 %v3752_v8, %v6703_v50  ;;  %v2899_v33 = vmul.f32 1.442695, %v2883_v4  ;;  %v6708_v37 = vld [vmem:[#allocation64_spill] sm:$0xff]  ;;  %v6709_v38 = vld [vmem:[#allocation58_spill] sm:$0xff] }
 0x386   :  { %v3756_v47 = vpop.eup %3755  ;;  %v6145_v46 = vadd.f32 %v3754_v39, %v1512_v12  ;;  %v1475_v6 = vpop.xlane.xlu0 %1474  ;;  %v2932_v12 = vsub.f32 %v6707_v5, %v6660_v42  ;;  %v2995_v42 = vmul.f32 1.442695, %v2979_v29  ;;  %v2841_v17 = vmul.f32 0.125, %v6708_v37  ;;  %v6714_v37 = vld [vmem:[#allocation66_spill] sm:$0xff] }
 0x387   :  { %v1924_v44 = vadd.f32 %v3756_v47, %v1507_v34  ;;  %3769 = vrcp.f32 %v1475_v6  ;;  %v3758_v43 = vpop.eup %3757  ;;  %v2852_v34 = vsub.f32 %v6707_v5, %v2836_v24  ;;  %v6712_v5 = vld [vmem:[#allocation59_spill] sm:$0xff] }
 0x388   :  { %3771 = vpow2.f32 %v1653_v61  ;;  %v2948_v6 = vmul.f32 %v2932_v12, %v2932_v12 }
 0x389   :  { %v1940_v9 = vadd.f32 %v3758_v43, %v1924_v44  ;;  %3773 = vpow2.f32 %v1909_v41  ;;  %v2868_v43 = vmul.f32 %v2852_v34, %v2852_v34 }
 0x38a   :  { %3775 = vpow2.f32 %v2999_v7  ;;  %v2842_v7 = vmul.f32 0.125, %v5909_v28  ;;  %v2964_v60 = vsub.f32 0.0, %v2948_v6 }
 0x38b   :  { %v3760_v32 = vpop.eup %3759  ;;  %v1956_v54 = vmul.f32 0.33333334, %v1940_v9  ;;  %v2884_v22 = vsub.f32 0.0, %v2868_v43 }
 0x38c   :  { %v3762_v13 = vpop.eup %3761  ;;  %v1510_v36 = vmul.f32 %v3760_v32, %v6705_v40  ;;  %v6710_v32 = vld [vmem:[#allocation11_spill] sm:$0xff]  ;;  %v2980_v4 = vmul.f32 %v2964_v60, %v6667_v25 }
 0x38d   :  { %v3764_v18 = vpop.eup %3763  ;;  %1972 = vst.msk [vmem:[%s6333_s10 + $0x48] sm:$0xff] %vm1182_vm0, %v1956_v54  ;;  %v1513_v20 = vmul.f32 %v3762_v13, %v6706_v30  ;;  %v2718_v8 = vpop.xlane.xlu1 %2717  ;;  %v2938_v23 = vsub.f32 %v6710_v32, %v6673_v19  ;;  %v6711_v54 = vld [vmem:[#allocation46_spill] sm:$0xff]  ;;  %v2858_v24 = vsub.f32 %v6710_v32, %v2842_v7 }
 0x38e   :  { %v3766_v55 = vpop.eup %3765  ;;  %v1927_v39 = vadd.f32 %v3764_v18, %v1510_v36  ;;  %v2715_v61 = vpop.xlane.xlu0 %2714  ;;  %3777 = vrcp.f32 %v2718_v8  ;;  %v2937_v13 = vsub.f32 %v6711_v54, %v6666_v1  ;;  %v2857_v40 = vsub.f32 %v6711_v54, %v2841_v17  ;;  %v6716_v32 = vld [vmem:[#allocation50_spill] sm:$0xff] }
 0x38f   :  { %v3768_v48 = vpop.eup %3767  ;;  %v6158_v50 = vadd.f32 %v3766_v55, %v1513_v20  ;;  %3779 = vrcp.f32 %v2715_v61  ;;  %v2901_v55 = vmul.f32 1.442695, %v2884_v22  ;;  %v6713_v61 = vld [vmem:[#allocation60_spill] sm:$0xff]  ;;  %v2997_v34 = vmul.f32 1.442695, %v2980_v4  ;;  %v6718_v22 = vld [vmem:[#allocation49_spill] sm:$0xff] }
 0x390   :  { %3781 = vpow2.f32 %v2905_v11  ;;  %v1943_v47 = vadd.f32 %v3768_v48, %v1927_v39  ;;  %v2953_v20 = vmul.f32 %v2937_v13, %v2937_v13  ;;  %v2873_v39 = vmul.f32 %v2857_v40, %v2857_v40 }
 0x391   :  { %3783 = vpow2.f32 %v2903_v31  ;;  %v2954_v31 = vmul.f32 %v2938_v23, %v2938_v23  ;;  %v2840_v17 = vmul.f32 0.125, %v6714_v37  ;;  %v2935_v23 = vsub.f32 %v6716_v32, %v6672_v62 }
 0x392   :  { %3785 = vpow2.f32 %v3001_v10  ;;  %v1959_v41 = vmul.f32 0.33333334, %v1943_v47  ;;  %v2709_v57 = vpop.xlane.xlu0 %2708  ;;  %v2874_v10 = vmul.f32 %v2858_v24, %v2858_v24  ;;  %v2889_v7 = vsub.f32 0.0, %v2873_v39 }
 0x393   :  { %3787 = vrcp.f32 %v2709_v57  ;;  %v2970_v47 = vsub.f32 0.0, %v2954_v31  ;;  %v2936_v24 = vsub.f32 %v6718_v22, %v6675_v63 }
 0x394   :  { %v3770_v44 = vpop.eup %3769  ;;  %1975 = vst.msk [vmem:[%s6333_s10 + $0x60] sm:$0xff] %vm1182_vm0, %v1959_v41  ;;  %3789 = vpow2.f32 %v2899_v33  ;;  %v2969_v41 = vsub.f32 0.0, %v2953_v20  ;;  %v2911_v62 = vmul.f32 1.442695, %v2889_v7 }
 0x395   :  { %v1511_v35 = vmul.f32 %v3770_v44, %v6709_v38  ;;  %v3772_v9 = vpop.eup %3771  ;;  %3791 = vpow2.f32 %v2995_v42  ;;  %v2890_v44 = vsub.f32 0.0, %v2874_v10  ;;  %v2986_v54 = vmul.f32 %v2970_v47, %v6679_v45 }
 0x396   :  { %v3774_v11 = vpop.eup %3773  ;;  %v2856_v45 = vsub.f32 %v6718_v22, %v2840_v17 }
 0x397   :  { %v1928_v28 = vadd.f32 %v3772_v9, %v1511_v35  ;;  %v3776_v18 = vpop.eup %3775  ;;  %v6715_v35 = vld [vmem:[#allocation61_spill] sm:$0xff]  ;;  %v2913_v31 = vmul.f32 1.442695, %v2890_v44 }
 0x398   :  { %v2872_v39 = vmul.f32 %v2856_v45, %v2856_v45 }
 0x399   :  { %v1944_v36 = vadd.f32 %v3774_v11, %v1928_v28  ;;  %v6717_v28 = vld [vmem:[#allocation48_spill] sm:$0xff] }
 0x39a   :  { %v2985_v11 = vmul.f32 %v2969_v41, %v6717_v28  ;;  %v6722_v41 = vld [vmem:[#allocation70_spill] sm:$0xff]  ;;  %v2888_v7 = vsub.f32 0.0, %v2872_v39 }
 0x39b   :  { %v3778_v30 = vpop.eup %3777  ;;  %v1960_v8 = vmul.f32 0.33333334, %v1944_v36 }
 0x39c   :  { %v3780_v19 = vpop.eup %3779  ;;  %v2774_v1 = vmul.f32 %v3778_v30, %v6712_v5  ;;  %v2712_v29 = vpop.xlane.xlu1 %2711  ;;  %v3007_v10 = vmul.f32 1.442695, %v2985_v11  ;;  %v2952_v5 = vmul.f32 %v2936_v24, %v2936_v24  ;;  %v2909_v22 = vmul.f32 1.442695, %v2888_v7 }
 0x39d   :  { %v3782_v12 = vpop.eup %3781  ;;  %1976 = vst.msk [vmem:[%s6333_s10 + $0x68] sm:$0xff] %vm1182_vm0, %v1960_v8  ;;  %v2773_v48 = vmul.f32 %v3780_v19, %v6713_v61  ;;  %3793 = vrcp.f32 %v2712_v29  ;;  %v2951_v8 = vmul.f32 %v2935_v23, %v2935_v23  ;;  %v3009_v19 = vmul.f32 1.442695, %v2986_v54  ;;  %v6720_v61 = vld [vmem:[#allocation69_spill] sm:$0xff]  ;;  %v6725_v23 = vld [vmem:[#allocation15_spill] sm:$0xff] }
 0x39e   :  { %v3784_v25 = vpop.eup %3783  ;;  %v3030_v33 = vadd.f32 %v3782_v12, %v2774_v1  ;;  %3795 = vpow2.f32 %v2901_v55  ;;  %v2939_v54 = vsub.f32 %v6725_v23, %v6678_v3 }
 0x39f   :  { %v3786_v6 = vpop.eup %3785  ;;  %v3029_v57 = vadd.f32 %v3784_v25, %v2773_v48  ;;  %3797 = vpow2.f32 %v2997_v34  ;;  %v2846_v48 = vmul.f32 0.125, %v6720_v61  ;;  %v2967_v29 = vsub.f32 0.0, %v2951_v8  ;;  %v6721_v25 = vld [vmem:[#allocation16_spill] sm:$0xff] }
 0x3a0   :  { %v3788_v42 = vpop.eup %3787  ;;  %v3046_v43 = vadd.f32 %v3786_v6, %v3030_v33  ;;  %v2942_v34 = vsub.f32 %v6721_v25, %v6680_v56  ;;  %v2968_v33 = vsub.f32 0.0, %v2952_v5 }
 0x3a1   :  { %v3045_v38 = vadd.f32 %v3776_v18, %v3029_v57  ;;  %v2771_v9 = vmul.f32 %v3788_v42, %v6715_v35  ;;  %v3790_v60 = vpop.eup %3789  ;;  %v6719_v18 = vld [vmem:[#allocation68_spill] sm:$0xff]  ;;  %v2730_v20 = vpop.xlane.xlu1 %2729  ;;  %v2845_v57 = vmul.f32 0.125, %v6722_v41  ;;  %v6723_v42 = vld [vmem:[#allocation63_spill] sm:$0xff]  ;;  %v2862_v37 = vsub.f32 %v6721_v25, %v2846_v48 }
 0x3a2   :  { %v3062_v13 = vmul.f32 0.33333334, %v3046_v43  ;;  %v3792_v4 = vpop.eup %3791  ;;  %v2839_v30 = vmul.f32 0.125, %v6719_v18  ;;  %3799 = vrcp.f32 %v2730_v20  ;;  %v2983_v17 = vmul.f32 %v2967_v29, %v6677_v2 }
 0x3a3   :  { %v3061_v40 = vmul.f32 0.33333334, %v3045_v38  ;;  %v3027_v36 = vadd.f32 %v3790_v60, %v2771_v9  ;;  %v6724_v38 = vld [vmem:[#allocation53_spill] sm:$0xff]  ;;  %v2958_v9 = vmul.f32 %v2942_v34, %v2942_v34  ;;  %v2878_v24 = vmul.f32 %v2862_v37, %v2862_v37 }
 0x3a4   :  { %3167 = vst.msk [vmem:[%s6333_s10 + $0x98] sm:$0xff] %vm1182_vm0, %v3062_v13  ;;  %v2727_v55 = vpop.xlane.xlu0 %2726  ;;  %v2855_v12 = vsub.f32 %v6716_v32, %v2839_v30  ;;  %v2941_v35 = vsub.f32 %v6724_v38, %v6676_v21  ;;  %v2984_v32 = vmul.f32 %v2968_v33, %v6681_v58  ;;  %v2861_v28 = vsub.f32 %v6724_v38, %v2845_v57  ;;  %v6727_v58 = vld [vmem:[#allocation12_spill] sm:$0xff] }
 0x3a5   :  { %3166 = vst.msk [vmem:[%s6333_s10 + $0x90] sm:$0xff] %vm1182_vm0, %v3061_v40  ;;  %v3043_v63 = vadd.f32 %v3792_v4, %v3027_v36  ;;  %3801 = vrcp.f32 %v2727_v55  ;;  %v6726_v40 = vld [vmem:[#allocation28_spill] sm:$0xff]  ;;  %v3003_v2 = vmul.f32 1.442695, %v2983_v17  ;;  %v2940_v45 = vsub.f32 %v6727_v58, %v6683_v52  ;;  %v6730_v52 = vld [vmem:[#allocation67_spill] sm:$0xff] }
 0x3a6   :  { %3803 = vpow2.f32 %v2913_v31  ;;  %v2871_v6 = vmul.f32 %v2855_v12, %v2855_v12  ;;  %v2844_v36 = vmul.f32 0.125, %v6726_v40  ;;  %v2957_v4 = vmul.f32 %v2941_v35, %v2941_v35 }
 0x3a7   :  { %v3059_v1 = vmul.f32 0.33333334, %v3043_v63  ;;  %3805 = vpow2.f32 %v2911_v62  ;;  %v2974_v31 = vsub.f32 0.0, %v2958_v9  ;;  %v3005_v30 = vmul.f32 1.442695, %v2984_v32  ;;  %v6728_v63 = vld [vmem:[#allocation72_spill] sm:$0xff] }
 0x3a8   :  { %3807 = vpow2.f32 %v3009_v19  ;;  %v2887_v13 = vsub.f32 0.0, %v2871_v6  ;;  %v2955_v62 = vmul.f32 %v2939_v54, %v2939_v54  ;;  %v2843_v3 = vmul.f32 0.125, %v6728_v63 }
 0x3a9   :  { %3164 = vst.msk [vmem:[%s6333_s10 + $0x80] sm:$0xff] %vm1182_vm0, %v3059_v1  ;;  %3809 = vpow2.f32 %v3007_v10  ;;  %v2877_v55 = vmul.f32 %v2861_v28, %v2861_v28  ;;  %v6729_v10 = vld [vmem:[#allocation65_spill] sm:$0xff]  ;;  %v2894_v12 = vsub.f32 0.0, %v2878_v24  ;;  %v2860_v39 = vsub.f32 %v6727_v58, %v2844_v36  ;;  %v6734_v58 = vld [vmem:[#allocation71_spill] sm:$0xff] }
 0x3aa   :  { %v3794_v47 = vpop.eup %3793  ;;  %v2907_v19 = vmul.f32 1.442695, %v2887_v13  ;;  %v2973_v25 = vsub.f32 0.0, %v2957_v4  ;;  %v2990_v34 = vmul.f32 %v2974_v31, %v6685_v49  ;;  %v2956_v6 = vmul.f32 %v2940_v45, %v2940_v45  ;;  %v6731_v13 = vld [vmem:[#allocation5_spill] sm:$0xff]  ;;  %v6732_v31 = vld [vmem:[#allocation76_spill] sm:$0xff] }
 0x3ab   :  { %v2772_v44 = vmul.f32 %v3794_v47, %v6723_v42  ;;  %v3796_v43 = vpop.eup %3795  ;;  %v2859_v41 = vsub.f32 %v6725_v23, %v2843_v3  ;;  %v2921_v7 = vmul.f32 1.442695, %v2894_v12  ;;  %v2876_v37 = vmul.f32 %v2860_v39, %v2860_v39 }
 0x3ac   :  { %v3798_v56 = vpop.eup %3797  ;;  %v2989_v38 = vmul.f32 %v2973_v25, %v6682_v16  ;;  %v2971_v35 = vsub.f32 0.0, %v2955_v62  ;;  %v3017_v49 = vmul.f32 1.442695, %v2990_v34  ;;  %v2943_v28 = vsub.f32 %v6731_v13, %v6688_v51 }
 0x3ad   :  { %v3028_v60 = vadd.f32 %v3796_v43, %v2772_v44  ;;  %v2893_v44 = vsub.f32 0.0, %v2877_v55  ;;  %v2875_v32 = vmul.f32 %v2859_v41, %v2859_v41 }
 0x3ae   :  { %v2724_v20 = vpop.xlane.xlu1 %2723  ;;  %v2987_v24 = vmul.f32 %v2971_v35, %v6684_v27  ;;  %v2959_v4 = vmul.f32 %v2943_v28, %v2943_v28 }
 0x3af   :  { %v3044_v11 = vadd.f32 %v3798_v56, %v3028_v60  ;;  %v3800_v18 = vpop.eup %3799  ;;  %3811 = vrcp.f32 %v2724_v20  ;;  %v2972_v56 = vsub.f32 0.0, %v2956_v6  ;;  %v2919_v23 = vmul.f32 1.442695, %v2893_v44 }
 0x3b0   :  { %v2778_v5 = vmul.f32 %v3800_v18, %v6729_v10  ;;  %3813 = vpow2.f32 %v2909_v22  ;;  %v3015_v22 = vmul.f32 1.442695, %v2989_v38  ;;  %v2891_v36 = vsub.f32 0.0, %v2875_v32 }
 0x3b1   :  { %v3060_v21 = vmul.f32 0.33333334, %v3044_v11  ;;  %v2892_v11 = vsub.f32 0.0, %v2876_v37  ;;  %v2988_v40 = vmul.f32 %v2972_v56, %v6692_v26  ;;  %v3011_v3 = vmul.f32 1.442695, %v2987_v24  ;;  %v6740_v56 = vld [vmem:[#allocation25_spill] sm:$0xff] }
 0x3b2   :  { %v3802_v8 = vpop.eup %3801  ;;  %v2721_v48 = vpop.xlane.xlu0 %2720  ;;  %v2915_v20 = vmul.f32 1.442695, %v2891_v36  ;;  %v2975_v39 = vsub.f32 0.0, %v2959_v4  ;;  %v1754_v32 = vsub.f32 %v6691_v14, %v6740_v56 }
 0x3b3   :  { %3165 = vst.msk [vmem:[%s6333_s10 + $0x88] sm:$0xff] %vm1182_vm0, %v3060_v21  ;;  %v3804_v1 = vpop.eup %3803  ;;  %v2777_v61 = vmul.f32 %v3802_v8, %v6730_v52  ;;  %3815 = vrcp.f32 %v2721_v48  ;;  %v2917_v51 = vmul.f32 1.442695, %v2892_v11  ;;  %v2848_v21 = vmul.f32 0.125, %v6732_v31  ;;  %v6737_v52 = vld [vmem:[#allocation21_spill] sm:$0xff] }
 0x3b4   :  { %v3806_v29 = vpop.eup %3805  ;;  %v3034_v47 = vadd.f32 %v3804_v1, %v2778_v5  ;;  %3817 = vpow2.f32 %v3005_v30  ;;  %v6733_v30 = vld [vmem:[#allocation24_spill] sm:$0xff]  ;;  %v3013_v27 = vmul.f32 1.442695, %v2988_v40  ;;  %v6736_v5 = vld [vmem:[#allocation33_spill] sm:$0xff]  ;;  %v2991_v38 = vmul.f32 %v2975_v39, %v6697_v15  ;;  %v6741_v15 = vld [vmem:[#allocation74_spill] sm:$0xff] }
 0x3b5   :  { %v3808_v33 = vpop.eup %3807  ;;  %v3033_v57 = vadd.f32 %v3806_v29, %v2777_v61  ;;  %3819 = vpow2.f32 %v2907_v19  ;;  %v2944_v62 = vsub.f32 %v6733_v30, %v6695_v0  ;;  %v6735_v19 = vld [vmem:[#allocation78_spill] sm:$0xff]  ;;  %v2850_v61 = vmul.f32 0.125, %v6737_v52  ;;  %v6745_v39 = vld [vmem:[#allocation45_spill] sm:$0xff] }
 0x3b6   :  { %v3810_v42 = vpop.eup %3809  ;;  %v3050_v43 = vadd.f32 %v3808_v33, %v3034_v47  ;;  %3821 = vpow2.f32 %v3003_v2  ;;  %v2847_v55 = vmul.f32 0.125, %v6735_v19  ;;  %v2864_v0 = vsub.f32 %v6733_v30, %v2848_v21 }
 0x3b7   :  { %v3049_v17 = vadd.f32 %v3810_v42, %v3033_v57  ;;  %v2960_v25 = vmul.f32 %v2944_v62, %v2944_v62  ;;  %v6738_v42 = vld [vmem:[#allocation4_spill] sm:$0xff]  ;;  %v1753_v52 = vsub.f32 %v5134_v59, %v6745_v39 }
 0x3b8   :  { %v3066_v9 = vmul.f32 0.33333334, %v3050_v43  ;;  %v2863_v6 = vsub.f32 %v6731_v13, %v2847_v55  ;;  %v2866_v44 = vsub.f32 %v6738_v42, %v2850_v61  ;;  %v2880_v43 = vmul.f32 %v2864_v0, %v2864_v0  ;;  %v6744_v55 = vld [vmem:[#allocation34_spill] sm:$0xff] }
 0x3b9   :  { %v3065_v54 = vmul.f32 0.33333334, %v3049_v17  ;;  %v2976_v35 = vsub.f32 0.0, %v2960_v25  ;;  %v2946_v28 = vsub.f32 %v6738_v42, %v6740_v56  ;;  %v6746_v25 = vld [vmem:[#allocation77_spill] sm:$0xff] }
 0x3ba   :  { %v2742_v60 = vpop.xlane.xlu1 %2741  ;;  %3171 = vst.msk [vmem:[%s6333_s10 + $0xb8] sm:$0xff] %vm1182_vm0, %v3066_v9  ;;  %v2896_v40 = vsub.f32 0.0, %v2880_v43 }
 0x3bb   :  { %3823 = vrcp.f32 %v2742_v60  ;;  %3170 = vst.msk [vmem:[%s6333_s10 + $0xb0] sm:$0xff] %vm1182_vm0, %v3065_v54  ;;  %v2992_v14 = vmul.f32 %v2976_v35, %v6701_v53 }
 0x3bc   :  { %3825 = vpow2.f32 %v2921_v7  ;;  %v2739_v16 = vpop.xlane.xlu0 %2738  ;;  %v3812_v2 = vpop.eup %3811  ;;  %v6739_v7 = vld [vmem:[#allocation73_spill] sm:$0xff] }
 0x3bd   :  { %3827 = vrcp.f32 %v2739_v16  ;;  %v3814_v18 = vpop.eup %3813  ;;  %v2776_v45 = vmul.f32 %v3812_v2, %v6734_v58  ;;  %v2882_v16 = vmul.f32 %v2866_v44, %v2866_v44  ;;  %v3019_v2 = vmul.f32 1.442695, %v2991_v38 }
 0x3be   :  { %3829 = vpow2.f32 %v3017_v49 }
 0x3bf   :  { %3831 = vpow2.f32 %v2919_v23  ;;  %v3032_v10 = vadd.f32 %v3814_v18, %v2776_v45  ;;  %v2879_v23 = vmul.f32 %v2863_v6, %v2863_v6  ;;  %v1770_v18 = vmul.f32 %v1754_v32, %v1754_v32 }
 0x3c0   :  { %3833 = vpow2.f32 %v3015_v22  ;;  %v3816_v63 = vpop.eup %3815  ;;  %v6742_v22 = vld [vmem:[#allocation75_spill] sm:$0xff]  ;;  %v2898_v45 = vsub.f32 0.0, %v2882_v16 }
 0x3c1   :  { %v3818_v26 = vpop.eup %3817  ;;  %v2775_v1 = vmul.f32 %v3816_v63, %v6736_v5  ;;  %v2849_v24 = vmul.f32 0.125, %v6742_v22  ;;  %v2895_v30 = vsub.f32 0.0, %v2879_v23  ;;  %v6743_v63 = vld [vmem:[#allocation17_spill] sm:$0xff] }
 0x3c2   :  { %v2736_v8 = vpop.xlane.xlu1 %2735  ;;  %v3820_v12 = vpop.eup %3819  ;;  %v3048_v34 = vadd.f32 %v3818_v26, %v3032_v10  ;;  %v3021_v26 = vmul.f32 1.442695, %v2992_v14  ;;  %v2945_v61 = vsub.f32 %v6743_v63, %v6745_v39 }
 0x3c3   :  { %3835 = vrcp.f32 %v2736_v8  ;;  %v3822_v29 = vpop.eup %3821  ;;  %v3031_v47 = vadd.f32 %v3820_v12, %v2775_v1  ;;  %v2962_v8 = vmul.f32 %v2946_v28, %v2946_v28  ;;  %v1786_v12 = vsub.f32 0.0, %v1770_v18  ;;  %v6748_v18 = vld [vmem:[#allocation79_spill] sm:$0xff] }
 0x3c4   :  { %3837 = vpow2.f32 %v2917_v51  ;;  %v2733_v48 = vpop.xlane.xlu0 %2732  ;;  %v3064_v41 = vmul.f32 0.33333334, %v3048_v34 }
 0x3c5   :  { %3839 = vrcp.f32 %v2733_v48  ;;  %v3047_v57 = vadd.f32 %v3822_v29, %v3031_v47  ;;  %v2923_v48 = vmul.f32 1.442695, %v2895_v30  ;;  %v2978_v59 = vsub.f32 0.0, %v2962_v8 }
 0x3c6   :  { %3841 = vpow2.f32 %v3013_v27  ;;  %3169 = vst.msk [vmem:[%s6333_s10 + $0xa8] sm:$0xff] %vm1182_vm0, %v3064_v41  ;;  %v2925_v27 = vmul.f32 1.442695, %v2896_v40 }
 0x3c7   :  { %3843 = vpow2.f32 %v2915_v20  ;;  %v3063_v49 = vmul.f32 0.33333334, %v3047_v57 }
 0x3c8   :  { %v3824_v33 = vpop.eup %3823  ;;  %3845 = vpow2.f32 %v3011_v3  ;;  %v2865_v3 = vsub.f32 %v6743_v63, %v2849_v24 }
 0x3c9   :  { %v2782_v37 = vmul.f32 %v3824_v33, %v6739_v7  ;;  %v3826_v17 = vpop.eup %3825  ;;  %3168 = vst.msk [vmem:[%s6333_s10 + $0xa0] sm:$0xff] %vm1182_vm0, %v3063_v49  ;;  %3847 = vpow2.f32 %v3019_v2  ;;  %v2929_v33 = vmul.f32 1.442695, %v2898_v45  ;;  %v2961_v49 = vmul.f32 %v2945_v61, %v2945_v61  ;;  %v6747_v2 = vld [vmem:[#allocation23_spill] sm:$0xff] }
 0x3ca   :  { %v3828_v9 = vpop.eup %3827  ;;  %v2754_v51 = vpop.xlane.xlu1 %2753  ;;  %v2881_v6 = vmul.f32 %v2865_v3, %v2865_v3 }
 0x3cb   :  { %v3038_v60 = vadd.f32 %v3826_v17, %v2782_v37  ;;  %v3830_v54 = vpop.eup %3829  ;;  %v2781_v13 = vmul.f32 %v3828_v9, %v6741_v15  ;;  %v1769_v17 = vmul.f32 %v1753_v52, %v1753_v52  ;;  %v2977_v23 = vsub.f32 0.0, %v2961_v49 }
 0x3cc   :  { %v3832_v11 = vpop.eup %3831  ;;  %v2751_v20 = vpop.xlane.xlu0 %2750  ;;  %v2897_v9 = vsub.f32 0.0, %v2881_v6 }
 0x3cd   :  { %v3054_v36 = vadd.f32 %v3830_v54, %v3038_v60  ;;  %v3037_v4 = vadd.f32 %v3832_v11, %v2781_v13  ;;  %v3834_v31 = vpop.eup %3833  ;;  %v1785_v54 = vsub.f32 0.0, %v1769_v17 }
 0x3ce   :  { %v2927_v15 = vmul.f32 1.442695, %v2897_v9 }
 0x3cf   :  { %v3070_v21 = vmul.f32 0.33333334, %v3054_v36  ;;  %v3053_v62 = vadd.f32 %v3834_v31, %v3037_v4 }
 0x3d0   :  { %v3836_v58 = vpop.eup %3835 }
 0x3d1   :  { %3175 = vst.msk [vmem:[%s6333_s10 + $0xd8] sm:$0xff] %vm1182_vm0, %v3070_v21  ;;  %v3838_v53 = vpop.eup %3837  ;;  %v3069_v19 = vmul.f32 0.33333334, %v3053_v62  ;;  %v2780_v10 = vmul.f32 %v3836_v58, %v6744_v55  ;;  %v6749_v62 = vld [vmem:[#allocation80_spill] sm:$0xff] }
 0x3d2   :  { %v2748_v5 = vpop.xlane.xlu1 %2747  ;;  %v3840_v1 = vpop.eup %3839 }
 0x3d3   :  { %3849 = vrcp.f32 %v2748_v5  ;;  %v3842_v0 = vpop.eup %3841  ;;  %3174 = vst.msk [vmem:[%s6333_s10 + $0xd0] sm:$0xff] %vm1182_vm0, %v3069_v19  ;;  %v3036_v29 = vadd.f32 %v3838_v53, %v2780_v10  ;;  %v2779_v34 = vmul.f32 %v3840_v1, %v6746_v25 }
 0x3d4   :  { %3851 = vrcp.f32 %v2754_v51  ;;  %v3844_v47 = vpop.eup %3843 }
 0x3d5   :  { %3853 = vpow2.f32 %v2925_v27  ;;  %v2745_v41 = vpop.xlane.xlu0 %2744  ;;  %v3052_v57 = vadd.f32 %v3842_v0, %v3036_v29  ;;  %v3035_v42 = vadd.f32 %v3844_v47, %v2779_v34  ;;  %v3846_v43 = vpop.eup %3845 }
 0x3d6   :  { %3855 = vrcp.f32 %v2745_v41  ;;  %v1865_v44 = vpop.permute.xlu1 %1864  ;;  %v3848_v16 = vpop.eup %3847 }
 0x3d7   :  { %3857 = vpow2.f32 %v3021_v26  ;;  %v1882_v7 = vmul.f32 %v1865_v44, %v1786_v12  ;;  %v2994_v37 = vmul.f32 %v2978_v59, %v1865_v44  ;;  %v3068_v38 = vmul.f32 0.33333334, %v3052_v57  ;;  %v6750_v12 = vld [vmem:[#allocation38_spill] sm:$0xff] }
 0x3d8   :  { %3859 = vpow2.f32 %v2923_v48  ;;  %v3051_v35 = vadd.f32 %v3846_v43, %v3035_v42 }
 0x3d9   :  { %3861 = vpow2.f32 %v2929_v33  ;;  %v1913_v60 = vmul.f32 1.442695, %v1882_v7  ;;  %v3025_v56 = vmul.f32 1.442695, %v2994_v37  ;;  %3173 = vst.msk [vmem:[%s6333_s10 + $0xc8] sm:$0xff] %vm1182_vm0, %v3068_v38 }
 0x3da   :  { %v3067_v32 = vmul.f32 0.33333334, %v3051_v35  ;;  %3863 = vrcp.f32 %v2751_v20 }
 0x3db   :  { %3865 = vpow2.f32 %v1913_v60 }
 0x3dc   :  { %3172 = vst.msk [vmem:[%s6333_s10 + $0xc0] sm:$0xff] %vm1182_vm0, %v3067_v32  ;;  %3867 = vpow2.f32 %v3025_v56 }
 0x3dd   :  { %v1860_v13 = vpop.permute.xlu0 %1859  ;;  %3869 = vpow2.f32 %v2927_v15 }
 0x3de   :  { %v1881_v28 = vmul.f32 %v1860_v13, %v1785_v54  ;;  %v2993_v11 = vmul.f32 %v2977_v23, %v1860_v13 }
 0x3e0   :  { %v3850_v22 = vpop.eup %3849  ;;  %v1911_v24 = vmul.f32 1.442695, %v1881_v28  ;;  %v3023_v40 = vmul.f32 1.442695, %v2993_v11 }
 0x3e1   :  { %v3852_v36 = vpop.eup %3851  ;;  %v2784_v14 = vmul.f32 %v3850_v22, %v6747_v2 }
 0x3e2   :  { %v3854_v4 = vpop.eup %3853  ;;  %3871 = vpow2.f32 %v1911_v24  ;;  %v2786_v30 = vmul.f32 %v3852_v36, %v6748_v18 }
 0x3e3   :  { %v3856_v51 = vpop.eup %3855  ;;  %v3040_v31 = vadd.f32 %v3854_v4, %v2784_v14  ;;  %3873 = vpow2.f32 %v3023_v40 }
 0x3e4   :  { %v3858_v21 = vpop.eup %3857  ;;  %v2783_v58 = vmul.f32 %v3856_v51, %v6749_v62 }
 0x3e5   :  { %v3860_v45 = vpop.eup %3859  ;;  %v3056_v63 = vadd.f32 %v3858_v21, %v3040_v31 }
 0x3e6   :  { %v3862_v3 = vpop.eup %3861  ;;  %v3039_v27 = vadd.f32 %v3860_v45, %v2783_v58 }
 0x3e7   :  { %v3864_v20 = vpop.eup %3863  ;;  %v3072_v8 = vmul.f32 0.33333334, %v3056_v63  ;;  %v3042_v26 = vadd.f32 %v3862_v3, %v2786_v30 }
 0x3e8   :  { %v3866_v53 = vpop.eup %3865  ;;  %v3055_v19 = vadd.f32 %v3848_v16, %v3039_v27  ;;  %v2785_v39 = vmul.f32 %v3864_v20, %v6750_v12 }
 0x3e9   :  { %v3868_v55 = vpop.eup %3867  ;;  %3177 = vst.msk [vmem:[%s6333_s10 + $0xe8] sm:$0xff] %vm1182_vm0, %v3072_v8  ;;  %v1946_v10 = vadd.f32 %v3866_v53, %v6158_v50 }
 0x3ea   :  { %v3071_v5 = vmul.f32 0.33333334, %v3055_v19  ;;  %v3058_v1 = vadd.f32 %v3868_v55, %v3042_v26  ;;  %v3870_v0 = vpop.eup %3869 }
 0x3eb   :  { %v1962_v52 = vmul.f32 0.33333334, %v1946_v10  ;;  %v3041_v48 = vadd.f32 %v3870_v0, %v2785_v39 }
 0x3ec   :  { %3176 = vst.msk [vmem:[%s6333_s10 + $0xe0] sm:$0xff] %vm1182_vm0, %v3071_v5  ;;  %v3074_v61 = vmul.f32 0.33333334, %v3058_v1 }
 0x3ed   :  { %1978 = vst.msk [vmem:[%s6333_s10 + $0x78] sm:$0xff] %vm1182_vm0, %v1962_v52 }
 0x3ee   :  { %3179 = vst.msk [vmem:[%s6333_s10 + $0xf8] sm:$0xff] %vm1182_vm0, %v3074_v61 }
 0x3ef   :  { %v3872_v50 = vpop.eup %3871 }
 0x3f0   :  { %v3874_v29 = vpop.eup %3873  ;;  %v1945_v25 = vadd.f32 %v3872_v50, %v6145_v46 }
 0x3f1   :  { %v3057_v34 = vadd.f32 %v3874_v29, %v3041_v48 }
 0x3f2   :  { %v1961_v47 = vmul.f32 0.33333334, %v1945_v25 }
 0x3f3   :  { %v3073_v33 = vmul.f32 0.33333334, %v3057_v34 }
 0x3f4   :  { %1977 = vst.msk [vmem:[%s6333_s10 + $0x70] sm:$0xff] %vm1182_vm0, %v1961_v47 }
 0x3f5   :  { %3178 = vst.msk [vmem:[%s6333_s10 + $0xf0] sm:$0xff] %vm1182_vm0, %v3073_v33 }

</bundles_post_ra>
